<compile_context>
chip_gen: v7x
topology: tpu7x:2x2x1
jax: 0.10.0
libtpu: 0.0.40
codegen_flags: <defaults>
</compile_context>

<pallas_src>
import functools

import jax
import jax.numpy as jnp
from jax.experimental import pallas as pl
from jax.experimental.pallas import tpu as pltpu


_NEG_SENTINEL = -1.0e9  # maps to exactly 0 after the fused BN+ReLU prologue
_BN_EPS = 1e-5


# ----------------------------- Pallas kernels ------------------------------

def _gemm_kernel(*refs, prologue, relu):
    """Tiled GEMM with optional per-K BN+ReLU prologue and bias(+ReLU) epilogue."""
    if prologue:
        a_ref, w_ref, b_ref, s_ref, t_ref, o_ref, acc_ref = refs
    else:
        a_ref, w_ref, b_ref, o_ref, acc_ref = refs
        s_ref = t_ref = None

    k = pl.program_id(2)

    @pl.when(k == 0)
    def _():
        acc_ref[...] = jnp.zeros_like(acc_ref)

    if prologue:
        a = a_ref[...].astype(jnp.float32)
        a = jnp.maximum(a * s_ref[...] + t_ref[...], 0.0).astype(jnp.bfloat16)
    else:
        a = a_ref[...]
    acc_ref[...] += jnp.dot(a, w_ref[...], preferred_element_type=jnp.float32)

    @pl.when(k == pl.num_programs(2) - 1)
    def _():
        y = acc_ref[...] + b_ref[...]
        if relu:
            y = jnp.maximum(y, 0.0)
        o_ref[...] = y


def _maxpool3x3s2_kernel(ee_ref, eo_ref, oe_ref, oo_ref, o_ref):
    # 3x3 / stride 2 / pad 1 max pool expressed over even/odd quarter slabs.
    ho, wo = o_ref.shape[1], o_ref.shape[2]
    m = ee_ref[:, 0:ho, 0:wo, :]
    m = jnp.maximum(m, ee_ref[:, 0:ho, 1:wo + 1, :])
    m = jnp.maximum(m, ee_ref[:, 1:ho + 1, 0:wo, :])
    m = jnp.maximum(m, ee_ref[:, 1:ho + 1, 1:wo + 1, :])
    m = jnp.maximum(m, eo_ref[:, 0:ho, 0:wo, :])
    m = jnp.maximum(m, eo_ref[:, 1:ho + 1, 0:wo, :])
    m = jnp.maximum(m, oe_ref[:, 0:ho, 0:wo, :])
    m = jnp.maximum(m, oe_ref[:, 0:ho, 1:wo + 1, :])
    m = jnp.maximum(m, oo_ref[:, 0:ho, 0:wo, :])
    o_ref[...] = m


def _avgpool2x2_kernel(ee_ref, eo_ref, oe_ref, oo_ref, o_ref):
    o_ref[...] = 0.25 * (ee_ref[...] + eo_ref[...] + oe_ref[...] + oo_ref[...])


def _bn_relu_avgpool3_kernel(x_ref, s_ref, t_ref, o_ref):
    # fused eval-mode BN -> ReLU -> AvgPool2d(3) (stride 3, floor division)
    ho, wo = o_ref.shape[1], o_ref.shape[2]
    s = s_ref[...]
    t = t_ref[...]
    for oi in range(ho):
        for oj in range(wo):
            win = x_ref[:, 3 * oi:3 * oi + 3, 3 * oj:3 * oj + 3, :]
            y = jnp.maximum(win * s + t, 0.0)
            o_ref[:, oi:oi + 1, oj:oj + 1, :] = (
                jnp.sum(y, axis=(1, 2), keepdims=True) * (1.0 / 9.0))


# ------------------------------ GEMM wrapper --------------------------------

def _round_up(v, m):
    return (v + m - 1) // m * m


def _pick_tile(dim, max_full, split):
    """Return (tile, padded_dim); single full-extent tile if it is small enough."""
    p = _round_up(dim, 8)
    if p <= max_full:
        return p, p
    return split, _round_up(dim, split)


def pallas_gemm(a, wm, bias, scale=None, shift=None, relu=False):
    """out = epilogue( prologue(a) @ wm + bias ).

    prologue (optional): per-K-column scale/shift + ReLU (pre-activation BN).
    epilogue: + bias, optional ReLU.  bf16 MXU operands, f32 accumulation,
    lane-dense (128-multiple) output columns.
    """
    a = a.astype(jnp.bfloat16)
    wm = wm.astype(jnp.bfloat16)
    m, k = a.shape
    k2, n = wm.shape
    assert k == k2
    prologue = scale is not None

    tm, mp = _pick_tile(m, 256, 256)
    tk, kp = _pick_tile(k, 1024, 512)
    tn = 128
    npad = _round_up(n, tn)

    a_p = jnp.pad(a, ((0, mp - m), (0, kp - k)))
    w_p = jnp.pad(wm, ((0, kp - k), (0, npad - n)))
    b_p = jnp.pad(bias.astype(jnp.float32), (0, npad - n)).reshape(1, npad)

    in_specs = [pl.BlockSpec((tm, tk), lambda i, j, kk: (i, kk)),
                pl.BlockSpec((tk, tn), lambda i, j, kk: (kk, j)),
                pl.BlockSpec((1, tn), lambda i, j, kk: (0, j))]
    args = [a_p, w_p, b_p]
    if prologue:
        s_p = jnp.pad(scale.astype(jnp.float32), (0, kp - k)).reshape(1, kp)
        t_p = jnp.pad(shift.astype(jnp.float32), (0, kp - k)).reshape(1, kp)
        in_specs += [pl.BlockSpec((1, tk), lambda i, j, kk: (0, kk)),
                     pl.BlockSpec((1, tk), lambda i, j, kk: (0, kk))]
        args += [s_p, t_p]

    grid = (mp // tm, npad // tn, kp // tk)
    out = pl.pallas_call(
        functools.partial(_gemm_kernel, prologue=prologue, relu=relu),
        out_shape=jax.ShapeDtypeStruct((mp, npad), jnp.float32),
        grid_spec=pltpu.PrefetchScalarGridSpec(
            num_scalar_prefetch=0,
            grid=grid,
            in_specs=in_specs,
            out_specs=pl.BlockSpec((tm, tn), lambda i, j, kk: (i, j)),
            scratch_shapes=[pltpu.VMEM((tm, tn), jnp.float32)]),
        compiler_params=pltpu.CompilerParams(
            dimension_semantics=("parallel", "parallel", "arbitrary"),
            vmem_limit_bytes=32 * 1024 * 1024),
        cost_estimate=pl.CostEstimate(
            flops=2 * mp * npad * kp,
            transcendentals=0,
            bytes_accessed=a_p.size * 2 + w_p.size * 2 + mp * npad * 4),
    )(*args)
    return out[:m, :n]


# ------------------------------ conv wrapper ---------------------------------

def _im2col(x, kh, kw, stride, pad, pad_value_per_channel=None):
    n, h, w, c = x.shape
    if pad > 0:
        hp, wp = h + 2 * pad, w + 2 * pad
        if pad_value_per_channel is None:
            xp = jnp.pad(x, ((0, 0), (pad, pad), (pad, pad), (0, 0)))
        else:
            # per-channel sentinel padding (maps to 0 after fused BN+ReLU prologue)
            xp = jnp.broadcast_to(
                pad_value_per_channel.astype(x.dtype).reshape(1, 1, 1, c),
                (n, hp, wp, c))
            xp = xp.at[:, pad:pad + h, pad:pad + w, :].set(x)
    else:
        xp = x
    ho = (h + 2 * pad - kh) // stride + 1
    wo = (w + 2 * pad - kw) // stride + 1
    cols = [xp[:, i:i + stride * ho:stride, j:j + stride * wo:stride, :]
            for i in range(kh) for j in range(kw)]
    a = jnp.concatenate(cols, axis=-1).reshape(n * ho * wo, kh * kw * c)
    return a, (n, ho, wo)


def conv_forward(x, p):
    """Convolution as an im2col GEMM with fused BN / ReLU per prepared params."""
    a, (n, ho, wo) = _im2col(x, p["kh"], p["kw"], p["stride"], p["pad"],
                             pad_value_per_channel=p.get("pad_c"))
    y = pallas_gemm(a, p["wm"], p["bias"],
                    scale=p.get("scale_k"), shift=p.get("shift_k"),
                    relu=p["relu_out"])
    return y.reshape(n, ho, wo, p["wm"].shape[1])


# ------------------------------ pooling wrappers -----------------------------

def pallas_maxpool_3x2x1(x):
    # MaxPool2d(kernel=3, stride=2, padding=1); requires even H, W.
    n, h, w, c = x.shape
    assert h % 2 == 0 and w % 2 == 0
    ho, wo = h // 2, w // 2
    xp = jnp.pad(x, ((0, 0), (1, 1), (1, 1), (0, 0)), constant_values=-3.0e38)
    ee = xp[:, 0::2, 0::2, :]
    eo = xp[:, 0::2, 1::2, :]
    oe = xp[:, 1::2, 0::2, :]
    oo = xp[:, 1::2, 1::2, :]
    in_spec = pl.BlockSpec((1, ho + 1, wo + 1, c), lambda b: (b, 0, 0, 0))
    return pl.pallas_call(
        _maxpool3x3s2_kernel,
        out_shape=jax.ShapeDtypeStruct((n, ho, wo, c), jnp.float32),
        grid=(n,),
        in_specs=[in_spec] * 4,
        out_specs=pl.BlockSpec((1, ho, wo, c), lambda b: (b, 0, 0, 0)),
        compiler_params=pltpu.CompilerParams(dimension_semantics=("parallel",)),
    )(ee, eo, oe, oo)


def pallas_avgpool_2x2(x):
    n, h, w, c = x.shape
    assert h % 2 == 0 and w % 2 == 0
    ho, wo = h // 2, w // 2
    ee = x[:, 0::2, 0::2, :]
    eo = x[:, 0::2, 1::2, :]
    oe = x[:, 1::2, 0::2, :]
    oo = x[:, 1::2, 1::2, :]
    spec = pl.BlockSpec((1, ho, wo, c), lambda b: (b, 0, 0, 0))
    return pl.pallas_call(
        _avgpool2x2_kernel,
        out_shape=jax.ShapeDtypeStruct((n, ho, wo, c), jnp.float32),
        grid=(n,),
        in_specs=[spec] * 4,
        out_specs=spec,
        compiler_params=pltpu.CompilerParams(dimension_semantics=("parallel",)),
    )(ee, eo, oe, oo)


def pallas_bn_relu_avgpool3(x, scale, shift):
    # fused eval-mode BN -> ReLU -> AvgPool2d(3); returns flattened (N, C*Ho*Wo).
    n, h, w, c = x.shape
    assert h >= 3 and w >= 3
    ho, wo = (h - 3) // 3 + 1, (w - 3) // 3 + 1
    out = pl.pallas_call(
        _bn_relu_avgpool3_kernel,
        out_shape=jax.ShapeDtypeStruct((n, ho, wo, c), jnp.float32),
        grid=(n,),
        in_specs=[pl.BlockSpec((1, h, w, c), lambda b: (b, 0, 0, 0)),
                  pl.BlockSpec((1, 1, 1, c), lambda b: (0, 0, 0, 0)),
                  pl.BlockSpec((1, 1, 1, c), lambda b: (0, 0, 0, 0))],
        out_specs=pl.BlockSpec((1, ho, wo, c), lambda b: (b, 0, 0, 0)),
        compiler_params=pltpu.CompilerParams(dimension_semantics=("parallel",)),
    )(x, scale.reshape(1, 1, 1, c), shift.reshape(1, 1, 1, c))
    # match PyTorch's NCHW flatten order before the classifier
    return jnp.transpose(out, (0, 3, 1, 2)).reshape(n, -1)


# --------------------------- parameter creation ------------------------------

def _init_bn(key, c):
    k1, k2, k3, k4 = jax.random.split(key, 4)
    return dict(
        gamma=jax.random.uniform(k1, (c,), jnp.float32, 0.5, 1.5),
        beta=jax.random.normal(k2, (c,), jnp.float32) * 0.1,
        mean=jax.random.normal(k3, (c,), jnp.float32) * 0.1,
        var=jax.random.uniform(k4, (c,), jnp.float32, 0.5, 1.5),
    )


def _init_conv(key, kh, kw, cin, cout, bias):
    k1, k2 = jax.random.split(key)
    fan_in = kh * kw * cin
    w = jax.random.normal(k1, (kh, kw, cin, cout), jnp.float32) * (fan_in ** -0.5)
    if bias:
        b = jax.random.normal(k2, (cout,), jnp.float32) * 0.01
    else:
        b = jnp.zeros((cout,), jnp.float32)
    return dict(w=w, b=b)


def init_densenet(key, in_channel, num_classes, growth_rate=32,
                  block_layers=(6, 12, 24, 16)):
    keys = iter(jax.random.split(key, 256))
    params = {}
    # block1: Conv2d(in,64,7,2,3) -> BN -> ReLU -> MaxPool(3,2,1)
    params["conv1"] = _init_conv(next(keys), 7, 7, in_channel, 64, bias=True)
    params["bn1"] = _init_bn(next(keys), 64)

    channels = 64
    blocks = []
    for i, layers in enumerate(block_layers):
        dlayers = []
        ch = channels
        for _ in range(layers):
            dlayers.append(dict(
                bn=_init_bn(next(keys), ch),
                conv=_init_conv(next(keys), 3, 3, ch, growth_rate, bias=False),
            ))
            ch += growth_rate
        channels = ch
        blocks.append(dict(kind="dense", layers=dlayers))
        if i != len(block_layers) - 1:
            blocks.append(dict(
                kind="transition",
                bn=_init_bn(next(keys), channels),
                conv=_init_conv(next(keys), 1, 1, channels, channels // 2, bias=True),
            ))
            channels //= 2
    params["blocks"] = blocks
    params["bn_final"] = _init_bn(next(keys), channels)
    params["fc"] = dict(
        w=jax.random.normal(next(keys), (channels, num_classes), jnp.float32)
        * (channels ** -0.5),
        b=jax.random.normal(next(keys), (num_classes,), jnp.float32) * 0.01,
    )
    return params


# --------------------- BN folding / fusion preparation -----------------------

def _prep_preact_conv(bn, conv, stride, pad):
    """conv_block / transition head:  BN -> ReLU -> Conv, fused as GEMM prologue."""
    kh, kw, cin, cout = conv["w"].shape
    s = bn["gamma"] * jax.lax.rsqrt(bn["var"] + _BN_EPS)
    t = bn["beta"] - bn["mean"] * s
    d = dict(
        wm=conv["w"].reshape(kh * kw * cin, cout).astype(jnp.bfloat16),
        bias=conv["b"].astype(jnp.float32),
        scale_k=jnp.tile(s, kh * kw).astype(jnp.float32),
        shift_k=jnp.tile(t, kh * kw).astype(jnp.float32),
        kh=kh, kw=kw, stride=stride, pad=pad, relu_out=False,
    )
    if pad > 0:
        # sentinel v with s*v + t == _NEG_SENTINEL, so relu(s*v + t) == 0 exactly
        d["pad_c"] = ((_NEG_SENTINEL - t) / s).astype(jnp.float32)
    return d


def prepare_params(params):
    prep = {}

    # conv1 -> bn1 -> relu : fold BN into conv1, fuse ReLU into GEMM epilogue
    g, be, mu, var = (params["bn1"][k] for k in ("gamma", "beta", "mean", "var"))
    s1 = g * jax.lax.rsqrt(var + _BN_EPS)
    kh, kw, cin, cout = params["conv1"]["w"].shape
    w1 = params["conv1"]["w"] * s1
    b1 = (params["conv1"]["b"] - mu) * s1 + be
    prep["conv1"] = dict(
        wm=w1.reshape(kh * kw * cin, cout).astype(jnp.bfloat16),
        bias=b1.astype(jnp.float32),
        kh=kh, kw=kw, stride=2, pad=3, relu_out=True,
    )

    blocks = []
    for blk in params["blocks"]:
        if blk["kind"] == "dense":
            blocks.append(dict(
                kind="dense",
                layers=[_prep_preact_conv(l["bn"], l["conv"], stride=1, pad=1)
                        for l in blk["layers"]],
            ))
        else:
            blocks.append(dict(kind="transition",
                               **_prep_preact_conv(blk["bn"], blk["conv"],
                                                   stride=1, pad=0)))
    prep["blocks"] = blocks

    g, be, mu, var = (params["bn_final"][k] for k in ("gamma", "beta", "mean", "var"))
    sf = g * jax.lax.rsqrt(var + _BN_EPS)
    prep["bn_final_scale"] = sf.astype(jnp.float32)
    prep["bn_final_shift"] = (be - mu * sf).astype(jnp.float32)

    prep["fc"] = dict(wm=params["fc"]["w"].astype(jnp.bfloat16),
                      bias=params["fc"]["b"].astype(jnp.float32))
    return prep


# -------------------------------- forward ------------------------------------

def densenet_forward(prep, x_nchw):
    # NCHW (PyTorch) -> NHWC (TPU: channels on the lane axis)
    x = jnp.transpose(x_nchw, (0, 2, 3, 1)).astype(jnp.float32)

    # block1: Conv7x7/s2 (BN folded, ReLU fused) -> MaxPool(3,2,1)
    x = conv_forward(x, prep["conv1"])
    x = pallas_maxpool_3x2x1(x)

    # block2: dense blocks + transitions (pre-activation BN+ReLU fused in the GEMM)
    for blk in prep["blocks"]:
        if blk["kind"] == "dense":
            for layer in blk["layers"]:
                out = conv_forward(x, layer)
                # torch.cat((out, x), dim=1)  (channel concat in NHWC)
                x = jnp.concatenate([out, x], axis=-1)
        else:
            x = conv_forward(x, blk)      # fused BN+ReLU + 1x1 conv
            x = pallas_avgpool_2x2(x)

    # final BN -> ReLU -> AvgPool2d(3) fused, then classifier
    x = pallas_bn_relu_avgpool3(x, prep["bn_final_scale"], prep["bn_final_shift"])
    x = pallas_gemm(x, prep["fc"]["wm"], prep["fc"]["bias"])
    return x


# ---------------------------------- main --------------------------------------

if __name__ == "__main__":
    key = jax.random.PRNGKey(0)
    kp, kx = jax.random.split(key)

    # Small configuration consistent with the module:
    #   in_channel=3, num_classes=10, growth_rate=8, block_layers=[2, 2].
    # Input 32x32: 32 -> 16 (7x7 s2) -> 8 (maxpool) -> 8 (dense) -> 4 (transition)
    # -> 4 (dense) -> 1 (AvgPool2d(3)), so the final avg-pool collapses the map
    # to 1x1 before the Linear classifier, as the reference code requires.
    params = init_densenet(kp, in_channel=3, num_classes=10,
                           growth_rate=8, block_layers=(2, 2))
    prep = prepare_params(params)

    x = jax.random.normal(kx, (2, 3, 32, 32), jnp.float32)

    fwd = jax.jit(functools.partial(densenet_forward, prep))
    y = fwd(x)
    jax.block_until_ready(y)

    assert y.shape == (2, 10), y.shape
    assert bool(jnp.all(jnp.isfinite(y)))
    print("KERNEL_OK")
</pallas_src>

<mosaic_0001>
module attributes {stable_mosaic.version = 11 : i64} {
  func.func @_gemm_kernel(%arg0: i32, %arg1: i32, %arg2: i32, %arg3: memref<256x152xbf16, #tpu.memory_space<vmem>>, %arg4: memref<152x128xbf16, #tpu.memory_space<vmem>>, %arg5: memref<1x128xf32, #tpu.memory_space<vmem>>, %arg6: memref<256x128xf32, #tpu.memory_space<vmem>>, %arg7: memref<256x128xf32, #tpu.memory_space<vmem>>) attributes {dimension_semantics = [#tpu.dimension_semantics<parallel>, #tpu.dimension_semantics<parallel>, #tpu.dimension_semantics<arbitrary>], iteration_bounds = array<i64: 2, 1, 1>, scalar_prefetch = 0 : i64, scratch_operands = 1 : i64, tpu.core_type = #tpu.core_type<tc>, window_params = [{transform_indices = @transform_0, window_bounds = array<i64: 256, 152>}, {transform_indices = @transform_1, window_bounds = array<i64: 152, 128>}, {transform_indices = @transform_2, window_bounds = array<i64: 1, 128>}, {transform_indices = @transform_3, window_bounds = array<i64: 256, 128>}]} {
    %c0_i32 = arith.constant 0 : i32
    %0 = arith.cmpi eq, %arg2, %c0_i32 : i32
    %1 = arith.extui %0 : i1 to i32
    %c0_i32_0 = arith.constant 0 : i32
    %2 = arith.cmpi ne, %1, %c0_i32_0 : i32
    scf.if %2 {
      %cst_10 = arith.constant 0.000000e+00 : f32
      %12 = vector.broadcast %cst_10 : f32 to vector<256x128xf32>
      %c0_11 = arith.constant 0 : index
      %c0_12 = arith.constant 0 : index
      %13 = vector.load %arg7[%c0_11, %c0_12] : memref<256x128xf32, #tpu.memory_space<vmem>>, vector<256x128xf32>
      tpu.vector_store %arg7[%c0_11, %c0_12], %12 {strides = array<i32>} : memref<256x128xf32, #tpu.memory_space<vmem>>, vector<256x128xf32>,
    } else {
    }
    %c0 = arith.constant 0 : index
    %c0_1 = arith.constant 0 : index
    %3 = vector.load %arg3[%c0, %c0_1] : memref<256x152xbf16, #tpu.memory_space<vmem>>, vector<256x152xbf16>
    %c0_2 = arith.constant 0 : index
    %c0_3 = arith.constant 0 : index
    %4 = vector.load %arg7[%c0_2, %c0_3] : memref<256x128xf32, #tpu.memory_space<vmem>>, vector<256x128xf32>
    %c0_4 = arith.constant 0 : index
    %c0_5 = arith.constant 0 : index
    %5 = vector.load %arg4[%c0_4, %c0_5] : memref<152x128xbf16, #tpu.memory_space<vmem>>, vector<152x128xbf16>
    %cst = arith.constant dense<0.000000e+00> : vector<256x128xf32>
    %6 = tpu.matmul %3, %5, %cst {dimension_numbers = #tpu.dot_dimension_numbers<[1], [0], [0], [1], [0, 0, 1, 1], [], []>} : vector<256x152xbf16>, vector<152x128xbf16>, vector<256x128xf32> -> vector<256x128xf32>
    %7 = arith.addf %4, %6 : vector<256x128xf32>
    %c0_6 = arith.constant 0 : index
    %c0_7 = arith.constant 0 : index
    %8 = vector.load %arg7[%c0_6, %c0_7] : memref<256x128xf32, #tpu.memory_space<vmem>>, vector<256x128xf32>
    tpu.vector_store %arg7[%c0_6, %c0_7], %7 {strides = array<i32>} : memref<256x128xf32, #tpu.memory_space<vmem>>, vector<256x128xf32>,
    %c0_i32_8 = arith.constant 0 : i32
    %9 = arith.cmpi eq, %arg2, %c0_i32_8 : i32
    %10 = arith.extui %9 : i1 to i32
    %c0_i32_9 = arith.constant 0 : i32
    %11 = arith.cmpi ne, %10, %c0_i32_9 : i32
    scf.if %11 {
      %c0_10 = arith.constant 0 : index
      %c0_11 = arith.constant 0 : index
      %12 = vector.load %arg7[%c0_10, %c0_11] : memref<256x128xf32, #tpu.memory_space<vmem>>, vector<256x128xf32>
      %c0_12 = arith.constant 0 : index
      %c0_13 = arith.constant 0 : index
      %13 = vector.load %arg5[%c0_12, %c0_13] : memref<1x128xf32, #tpu.memory_space<vmem>>, vector<1x128xf32>
      %14 = vector.broadcast %13 : vector<1x128xf32> to vector<256x128xf32>
      %15 = arith.addf %12, %14 : vector<256x128xf32>
      %cst_14 = arith.constant 0.000000e+00 : f32
      %16 = vector.broadcast %cst_14 : f32 to vector<256x128xf32>
      %17 = arith.maximumf %15, %16 : vector<256x128xf32>
      %c0_15 = arith.constant 0 : index
      %c0_16 = arith.constant 0 : index
      %18 = vector.load %arg6[%c0_15, %c0_16] : memref<256x128xf32, #tpu.memory_space<vmem>>, vector<256x128xf32>
      tpu.vector_store %arg6[%c0_15, %c0_16], %17 {strides = array<i32>} : memref<256x128xf32, #tpu.memory_space<vmem>>, vector<256x128xf32>,
    } else {
    }
    return
  }
  func.func @transform_0(%arg0: i32, %arg1: i32, %arg2: i32) -> (i32, i32) {
    %c0_i32 = arith.constant 0 : i32
    return %arg0, %arg2 : i32, i32
  }
  func.func @transform_1(%arg0: i32, %arg1: i32, %arg2: i32) -> (i32, i32) {
    %c0_i32 = arith.constant 0 : i32
    return %arg2, %arg1 : i32, i32
  }
  func.func @transform_2(%arg0: i32, %arg1: i32, %arg2: i32) -> (i32, i32) {
    %c0_i32 = arith.constant 0 : i32
    %c0_i32_0 = arith.constant 0 : i32
    return %c0_i32, %arg1 : i32, i32
  }
  func.func @transform_3(%arg0: i32, %arg1: i32, %arg2: i32) -> (i32, i32) {
    %c0_i32 = arith.constant 0 : i32
    return %arg0, %arg1 : i32, i32
  }
}

module attributes {stable_mosaic.version = 11 : i64} {
  func.func @_maxpool3x3s2_kernel(%arg0: i32, %arg1: memref<1x9x9x64xf32, #tpu.memory_space<vmem>>, %arg2: memref<1x9x9x64xf32, #tpu.memory_space<vmem>>, %arg3: memref<1x9x9x64xf32, #tpu.memory_space<vmem>>, %arg4: memref<1x9x9x64xf32, #tpu.memory_space<vmem>>, %arg5: memref<1x8x8x64xf32, #tpu.memory_space<vmem>>) attributes {dimension_semantics = [#tpu.dimension_semantics<parallel>], iteration_bounds = array<i64: 2>, scalar_prefetch = 0 : i64, scratch_operands = 0 : i64, tpu.core_type = #tpu.core_type<tc>, window_params = [{transform_indices = @transform_0, window_bounds = array<i64: 1, 9, 9, 64>}, {transform_indices = @transform_1, window_bounds = array<i64: 1, 9, 9, 64>}, {transform_indices = @transform_2, window_bounds = array<i64: 1, 9, 9, 64>}, {transform_indices = @transform_3, window_bounds = array<i64: 1, 9, 9, 64>}, {transform_indices = @transform_4, window_bounds = array<i64: 1, 8, 8, 64>}]} {
    %c0 = arith.constant 0 : index
    %c0_0 = arith.constant 0 : index
    %c0_1 = arith.constant 0 : index
    %c0_2 = arith.constant 0 : index
    %0 = vector.load %arg1[%c0, %c0_0, %c0_1, %c0_2] : memref<1x9x9x64xf32, #tpu.memory_space<vmem>>, vector<1x8x8x64xf32>
    %c0_3 = arith.constant 0 : index
    %c0_4 = arith.constant 0 : index
    %c1 = arith.constant 1 : index
    %c0_5 = arith.constant 0 : index
    %1 = vector.load %arg1[%c0_3, %c0_4, %c1, %c0_5] : memref<1x9x9x64xf32, #tpu.memory_space<vmem>>, vector<1x8x8x64xf32>
    %2 = arith.maximumf %0, %1 : vector<1x8x8x64xf32>
    %c0_6 = arith.constant 0 : index
    %c1_7 = arith.constant 1 : index
    %c0_8 = arith.constant 0 : index
    %c0_9 = arith.constant 0 : index
    %3 = vector.load %arg1[%c0_6, %c1_7, %c0_8, %c0_9] : memref<1x9x9x64xf32, #tpu.memory_space<vmem>>, vector<1x8x8x64xf32>
    %4 = arith.maximumf %2, %3 : vector<1x8x8x64xf32>
    %c0_10 = arith.constant 0 : index
    %c1_11 = arith.constant 1 : index
    %c1_12 = arith.constant 1 : index
    %c0_13 = arith.constant 0 : index
    %5 = vector.load %arg1[%c0_10, %c1_11, %c1_12, %c0_13] : memref<1x9x9x64xf32, #tpu.memory_space<vmem>>, vector<1x8x8x64xf32>
    %6 = arith.maximumf %4, %5 : vector<1x8x8x64xf32>
    %c0_14 = arith.constant 0 : index
    %c0_15 = arith.constant 0 : index
    %c0_16 = arith.constant 0 : index
    %c0_17 = arith.constant 0 : index
    %7 = vector.load %arg2[%c0_14, %c0_15, %c0_16, %c0_17] : memref<1x9x9x64xf32, #tpu.memory_space<vmem>>, vector<1x8x8x64xf32>
    %8 = arith.maximumf %6, %7 : vector<1x8x8x64xf32>
    %c0_18 = arith.constant 0 : index
    %c1_19 = arith.constant 1 : index
    %c0_20 = arith.constant 0 : index
    %c0_21 = arith.constant 0 : index
    %9 = vector.load %arg2[%c0_18, %c1_19, %c0_20, %c0_21] : memref<1x9x9x64xf32, #tpu.memory_space<vmem>>, vector<1x8x8x64xf32>
    %10 = arith.maximumf %8, %9 : vector<1x8x8x64xf32>
    %c0_22 = arith.constant 0 : index
    %c0_23 = arith.constant 0 : index
    %c0_24 = arith.constant 0 : index
    %c0_25 = arith.constant 0 : index
    %11 = vector.load %arg3[%c0_22, %c0_23, %c0_24, %c0_25] : memref<1x9x9x64xf32, #tpu.memory_space<vmem>>, vector<1x8x8x64xf32>
    %12 = arith.maximumf %10, %11 : vector<1x8x8x64xf32>
    %c0_26 = arith.constant 0 : index
    %c0_27 = arith.constant 0 : index
    %c1_28 = arith.constant 1 : index
    %c0_29 = arith.constant 0 : index
    %13 = vector.load %arg3[%c0_26, %c0_27, %c1_28, %c0_29] : memref<1x9x9x64xf32, #tpu.memory_space<vmem>>, vector<1x8x8x64xf32>
    %14 = arith.maximumf %12, %13 : vector<1x8x8x64xf32>
    %c0_30 = arith.constant 0 : index
    %c0_31 = arith.constant 0 : index
    %c0_32 = arith.constant 0 : index
    %c0_33 = arith.constant 0 : index
    %15 = vector.load %arg4[%c0_30, %c0_31, %c0_32, %c0_33] : memref<1x9x9x64xf32, #tpu.memory_space<vmem>>, vector<1x8x8x64xf32>
    %16 = arith.maximumf %14, %15 : vector<1x8x8x64xf32>
    %c0_34 = arith.constant 0 : index
    %c0_35 = arith.constant 0 : index
    %c0_36 = arith.constant 0 : index
    %c0_37 = arith.constant 0 : index
    %17 = vector.load %arg5[%c0_34, %c0_35, %c0_36, %c0_37] : memref<1x8x8x64xf32, #tpu.memory_space<vmem>>, vector<1x8x8x64xf32>
    tpu.vector_store %arg5[%c0_34, %c0_35, %c0_36, %c0_37], %16 {strides = array<i32>} : memref<1x8x8x64xf32, #tpu.memory_space<vmem>>, vector<1x8x8x64xf32>,
    return
  }
  func.func @transform_0(%arg0: i32) -> (i32, i32, i32, i32) {
    %c0_i32 = arith.constant 0 : i32
    %c0_i32_0 = arith.constant 0 : i32
    %c0_i32_1 = arith.constant 0 : i32
    %c0_i32_2 = arith.constant 0 : i32
    return %arg0, %c0_i32, %c0_i32_0, %c0_i32_1 : i32, i32, i32, i32
  }
  func.func @transform_1(%arg0: i32) -> (i32, i32, i32, i32) {
    %c0_i32 = arith.constant 0 : i32
    %c0_i32_0 = arith.constant 0 : i32
    %c0_i32_1 = arith.constant 0 : i32
    %c0_i32_2 = arith.constant 0 : i32
    return %arg0, %c0_i32, %c0_i32_0, %c0_i32_1 : i32, i32, i32, i32
  }
  func.func @transform_2(%arg0: i32) -> (i32, i32, i32, i32) {
    %c0_i32 = arith.constant 0 : i32
    %c0_i32_0 = arith.constant 0 : i32
    %c0_i32_1 = arith.constant 0 : i32
    %c0_i32_2 = arith.constant 0 : i32
    return %arg0, %c0_i32, %c0_i32_0, %c0_i32_1 : i32, i32, i32, i32
  }
  func.func @transform_3(%arg0: i32) -> (i32, i32, i32, i32) {
    %c0_i32 = arith.constant 0 : i32
    %c0_i32_0 = arith.constant 0 : i32
    %c0_i32_1 = arith.constant 0 : i32
    %c0_i32_2 = arith.constant 0 : i32
    return %arg0, %c0_i32, %c0_i32_0, %c0_i32_1 : i32, i32, i32, i32
  }
  func.func @transform_4(%arg0: i32) -> (i32, i32, i32, i32) {
    %c0_i32 = arith.constant 0 : i32
    %c0_i32_0 = arith.constant 0 : i32
    %c0_i32_1 = arith.constant 0 : i32
    %c0_i32_2 = arith.constant 0 : i32
    return %arg0, %c0_i32, %c0_i32_0, %c0_i32_1 : i32, i32, i32, i32
  }
}

module attributes {stable_mosaic.version = 11 : i64} {
  func.func @_gemm_kernel(%arg0: i32, %arg1: i32, %arg2: i32, %arg3: memref<128x576xbf16, #tpu.memory_space<vmem>>, %arg4: memref<576x128xbf16, #tpu.memory_space<vmem>>, %arg5: memref<1x128xf32, #tpu.memory_space<vmem>>, %arg6: memref<1x576xf32, #tpu.memory_space<vmem>>, %arg7: memref<1x576xf32, #tpu.memory_space<vmem>>, %arg8: memref<128x128xf32, #tpu.memory_space<vmem>>, %arg9: memref<128x128xf32, #tpu.memory_space<vmem>>) attributes {dimension_semantics = [#tpu.dimension_semantics<parallel>, #tpu.dimension_semantics<parallel>, #tpu.dimension_semantics<arbitrary>], iteration_bounds = array<i64: 1, 1, 1>, scalar_prefetch = 0 : i64, scratch_operands = 1 : i64, tpu.core_type = #tpu.core_type<tc>, window_params = [{transform_indices = @transform_0, window_bounds = array<i64: 128, 576>}, {transform_indices = @transform_1, window_bounds = array<i64: 576, 128>}, {transform_indices = @transform_2, window_bounds = array<i64: 1, 128>}, {transform_indices = @transform_3, window_bounds = array<i64: 1, 576>}, {transform_indices = @transform_4, window_bounds = array<i64: 1, 576>}, {transform_indices = @transform_5, window_bounds = array<i64: 128, 128>}]} {
    %c0_i32 = arith.constant 0 : i32
    %0 = arith.cmpi eq, %arg2, %c0_i32 : i32
    %1 = arith.extui %0 : i1 to i32
    %c0_i32_0 = arith.constant 0 : i32
    %2 = arith.cmpi ne, %1, %c0_i32_0 : i32
    scf.if %2 {
      %cst_15 = arith.constant 0.000000e+00 : f32
      %22 = vector.broadcast %cst_15 : f32 to vector<128x128xf32>
      %c0_16 = arith.constant 0 : index
      %c0_17 = arith.constant 0 : index
      %23 = vector.load %arg9[%c0_16, %c0_17] : memref<128x128xf32, #tpu.memory_space<vmem>>, vector<128x128xf32>
      tpu.vector_store %arg9[%c0_16, %c0_17], %22 {strides = array<i32>} : memref<128x128xf32, #tpu.memory_space<vmem>>, vector<128x128xf32>,
    } else {
    }
    %c0 = arith.constant 0 : index
    %c0_1 = arith.constant 0 : index
    %3 = vector.load %arg3[%c0, %c0_1] : memref<128x576xbf16, #tpu.memory_space<vmem>>, vector<128x576xbf16>
    %4 = arith.extf %3 : vector<128x576xbf16> to vector<128x576xf32>
    %c0_2 = arith.constant 0 : index
    %c0_3 = arith.constant 0 : index
    %5 = vector.load %arg6[%c0_2, %c0_3] : memref<1x576xf32, #tpu.memory_space<vmem>>, vector<1x576xf32>
    %6 = vector.broadcast %5 : vector<1x576xf32> to vector<128x576xf32>
    %7 = arith.mulf %4, %6 : vector<128x576xf32>
    %c0_4 = arith.constant 0 : index
    %c0_5 = arith.constant 0 : index
    %8 = vector.load %arg7[%c0_4, %c0_5] : memref<1x576xf32, #tpu.memory_space<vmem>>, vector<1x576xf32>
    %9 = vector.broadcast %8 : vector<1x576xf32> to vector<128x576xf32>
    %10 = arith.addf %7, %9 : vector<128x576xf32>
    %cst = arith.constant 0.000000e+00 : f32
    %11 = vector.broadcast %cst : f32 to vector<128x576xf32>
    %12 = arith.maximumf %10, %11 : vector<128x576xf32>
    %13 = arith.truncf %12 : vector<128x576xf32> to vector<128x576xbf16>
    %c0_6 = arith.constant 0 : index
    %c0_7 = arith.constant 0 : index
    %14 = vector.load %arg9[%c0_6, %c0_7] : memref<128x128xf32, #tpu.memory_space<vmem>>, vector<128x128xf32>
    %c0_8 = arith.constant 0 : index
    %c0_9 = arith.constant 0 : index
    %15 = vector.load %arg4[%c0_8, %c0_9] : memref<576x128xbf16, #tpu.memory_space<vmem>>, vector<576x128xbf16>
    %cst_10 = arith.constant dense<0.000000e+00> : vector<128x128xf32>
    %16 = tpu.matmul %13, %15, %cst_10 {dimension_numbers = #tpu.dot_dimension_numbers<[1], [0], [0], [1], [0, 0, 1, 1], [], []>} : vector<128x576xbf16>, vector<576x128xbf16>, vector<128x128xf32> -> vector<128x128xf32>
    %17 = arith.addf %14, %16 : vector<128x128xf32>
    %c0_11 = arith.constant 0 : index
    %c0_12 = arith.constant 0 : index
    %18 = vector.load %arg9[%c0_11, %c0_12] : memref<128x128xf32, #tpu.memory_space<vmem>>, vector<128x128xf32>
    tpu.vector_store %arg9[%c0_11, %c0_12], %17 {strides = array<i32>} : memref<128x128xf32, #tpu.memory_space<vmem>>, vector<128x128xf32>,
    %c0_i32_13 = arith.constant 0 : i32
    %19 = arith.cmpi eq, %arg2, %c0_i32_13 : i32
    %20 = arith.extui %19 : i1 to i32
    %c0_i32_14 = arith.constant 0 : i32
    %21 = arith.cmpi ne, %20, %c0_i32_14 : i32
    scf.if %21 {
      %c0_15 = arith.constant 0 : index
      %c0_16 = arith.constant 0 : index
      %22 = vector.load %arg9[%c0_15, %c0_16] : memref<128x128xf32, #tpu.memory_space<vmem>>, vector<128x128xf32>
      %c0_17 = arith.constant 0 : index
      %c0_18 = arith.constant 0 : index
      %23 = vector.load %arg5[%c0_17, %c0_18] : memref<1x128xf32, #tpu.memory_space<vmem>>, vector<1x128xf32>
      %24 = vector.broadcast %23 : vector<1x128xf32> to vector<128x128xf32>
      %25 = arith.addf %22, %24 : vector<128x128xf32>
      %c0_19 = arith.constant 0 : index
      %c0_20 = arith.constant 0 : index
      %26 = vector.load %arg8[%c0_19, %c0_20] : memref<128x128xf32, #tpu.memory_space<vmem>>, vector<128x128xf32>
      tpu.vector_store %arg8[%c0_19, %c0_20], %25 {strides = array<i32>} : memref<128x128xf32, #tpu.memory_space<vmem>>, vector<128x128xf32>,
    } else {
    }
    return
  }
  func.func @transform_0(%arg0: i32, %arg1: i32, %arg2: i32) -> (i32, i32) {
    %c0_i32 = arith.constant 0 : i32
    return %arg0, %arg2 : i32, i32
  }
  func.func @transform_1(%arg0: i32, %arg1: i32, %arg2: i32) -> (i32, i32) {
    %c0_i32 = arith.constant 0 : i32
    return %arg2, %arg1 : i32, i32
  }
  func.func @transform_2(%arg0: i32, %arg1: i32, %arg2: i32) -> (i32, i32) {
    %c0_i32 = arith.constant 0 : i32
    %c0_i32_0 = arith.constant 0 : i32
    return %c0_i32, %arg1 : i32, i32
  }
  func.func @transform_3(%arg0: i32, %arg1: i32, %arg2: i32) -> (i32, i32) {
    %c0_i32 = arith.constant 0 : i32
    %c0_i32_0 = arith.constant 0 : i32
    return %c0_i32, %arg2 : i32, i32
  }
  func.func @transform_4(%arg0: i32, %arg1: i32, %arg2: i32) -> (i32, i32) {
    %c0_i32 = arith.constant 0 : i32
    %c0_i32_0 = arith.constant 0 : i32
    return %c0_i32, %arg2 : i32, i32
  }
  func.func @transform_5(%arg0: i32, %arg1: i32, %arg2: i32) -> (i32, i32) {
    %c0_i32 = arith.constant 0 : i32
    return %arg0, %arg1 : i32, i32
  }
}

module attributes {stable_mosaic.version = 11 : i64} {
  func.func @_gemm_kernel(%arg0: i32, %arg1: i32, %arg2: i32, %arg3: memref<128x648xbf16, #tpu.memory_space<vmem>>, %arg4: memref<648x128xbf16, #tpu.memory_space<vmem>>, %arg5: memref<1x128xf32, #tpu.memory_space<vmem>>, %arg6: memref<1x648xf32, #tpu.memory_space<vmem>>, %arg7: memref<1x648xf32, #tpu.memory_space<vmem>>, %arg8: memref<128x128xf32, #tpu.memory_space<vmem>>, %arg9: memref<128x128xf32, #tpu.memory_space<vmem>>) attributes {dimension_semantics = [#tpu.dimension_semantics<parallel>, #tpu.dimension_semantics<parallel>, #tpu.dimension_semantics<arbitrary>], iteration_bounds = array<i64: 1, 1, 1>, scalar_prefetch = 0 : i64, scratch_operands = 1 : i64, tpu.core_type = #tpu.core_type<tc>, window_params = [{transform_indices = @transform_0, window_bounds = array<i64: 128, 648>}, {transform_indices = @transform_1, window_bounds = array<i64: 648, 128>}, {transform_indices = @transform_2, window_bounds = array<i64: 1, 128>}, {transform_indices = @transform_3, window_bounds = array<i64: 1, 648>}, {transform_indices = @transform_4, window_bounds = array<i64: 1, 648>}, {transform_indices = @transform_5, window_bounds = array<i64: 128, 128>}]} {
    %c0_i32 = arith.constant 0 : i32
    %0 = arith.cmpi eq, %arg2, %c0_i32 : i32
    %1 = arith.extui %0 : i1 to i32
    %c0_i32_0 = arith.constant 0 : i32
    %2 = arith.cmpi ne, %1, %c0_i32_0 : i32
    scf.if %2 {
      %cst_15 = arith.constant 0.000000e+00 : f32
      %22 = vector.broadcast %cst_15 : f32 to vector<128x128xf32>
      %c0_16 = arith.constant 0 : index
      %c0_17 = arith.constant 0 : index
      %23 = vector.load %arg9[%c0_16, %c0_17] : memref<128x128xf32, #tpu.memory_space<vmem>>, vector<128x128xf32>
      tpu.vector_store %arg9[%c0_16, %c0_17], %22 {strides = array<i32>} : memref<128x128xf32, #tpu.memory_space<vmem>>, vector<128x128xf32>,
    } else {
    }
    %c0 = arith.constant 0 : index
    %c0_1 = arith.constant 0 : index
    %3 = vector.load %arg3[%c0, %c0_1] : memref<128x648xbf16, #tpu.memory_space<vmem>>, vector<128x648xbf16>
    %4 = arith.extf %3 : vector<128x648xbf16> to vector<128x648xf32>
    %c0_2 = arith.constant 0 : index
    %c0_3 = arith.constant 0 : index
    %5 = vector.load %arg6[%c0_2, %c0_3] : memref<1x648xf32, #tpu.memory_space<vmem>>, vector<1x648xf32>
    %6 = vector.broadcast %5 : vector<1x648xf32> to vector<128x648xf32>
    %7 = arith.mulf %4, %6 : vector<128x648xf32>
    %c0_4 = arith.constant 0 : index
    %c0_5 = arith.constant 0 : index
    %8 = vector.load %arg7[%c0_4, %c0_5] : memref<1x648xf32, #tpu.memory_space<vmem>>, vector<1x648xf32>
    %9 = vector.broadcast %8 : vector<1x648xf32> to vector<128x648xf32>
    %10 = arith.addf %7, %9 : vector<128x648xf32>
    %cst = arith.constant 0.000000e+00 : f32
    %11 = vector.broadcast %cst : f32 to vector<128x648xf32>
    %12 = arith.maximumf %10, %11 : vector<128x648xf32>
    %13 = arith.truncf %12 : vector<128x648xf32> to vector<128x648xbf16>
    %c0_6 = arith.constant 0 : index
    %c0_7 = arith.constant 0 : index
    %14 = vector.load %arg9[%c0_6, %c0_7] : memref<128x128xf32, #tpu.memory_space<vmem>>, vector<128x128xf32>
    %c0_8 = arith.constant 0 : index
    %c0_9 = arith.constant 0 : index
    %15 = vector.load %arg4[%c0_8, %c0_9] : memref<648x128xbf16, #tpu.memory_space<vmem>>, vector<648x128xbf16>
    %cst_10 = arith.constant dense<0.000000e+00> : vector<128x128xf32>
    %16 = tpu.matmul %13, %15, %cst_10 {dimension_numbers = #tpu.dot_dimension_numbers<[1], [0], [0], [1], [0, 0, 1, 1], [], []>} : vector<128x648xbf16>, vector<648x128xbf16>, vector<128x128xf32> -> vector<128x128xf32>
    %17 = arith.addf %14, %16 : vector<128x128xf32>
    %c0_11 = arith.constant 0 : index
    %c0_12 = arith.constant 0 : index
    %18 = vector.load %arg9[%c0_11, %c0_12] : memref<128x128xf32, #tpu.memory_space<vmem>>, vector<128x128xf32>
    tpu.vector_store %arg9[%c0_11, %c0_12], %17 {strides = array<i32>} : memref<128x128xf32, #tpu.memory_space<vmem>>, vector<128x128xf32>,
    %c0_i32_13 = arith.constant 0 : i32
    %19 = arith.cmpi eq, %arg2, %c0_i32_13 : i32
    %20 = arith.extui %19 : i1 to i32
    %c0_i32_14 = arith.constant 0 : i32
    %21 = arith.cmpi ne, %20, %c0_i32_14 : i32
    scf.if %21 {
      %c0_15 = arith.constant 0 : index
      %c0_16 = arith.constant 0 : index
      %22 = vector.load %arg9[%c0_15, %c0_16] : memref<128x128xf32, #tpu.memory_space<vmem>>, vector<128x128xf32>
      %c0_17 = arith.constant 0 : index
      %c0_18 = arith.constant 0 : index
      %23 = vector.load %arg5[%c0_17, %c0_18] : memref<1x128xf32, #tpu.memory_space<vmem>>, vector<1x128xf32>
      %24 = vector.broadcast %23 : vector<1x128xf32> to vector<128x128xf32>
      %25 = arith.addf %22, %24 : vector<128x128xf32>
      %c0_19 = arith.constant 0 : index
      %c0_20 = arith.constant 0 : index
      %26 = vector.load %arg8[%c0_19, %c0_20] : memref<128x128xf32, #tpu.memory_space<vmem>>, vector<128x128xf32>
      tpu.vector_store %arg8[%c0_19, %c0_20], %25 {strides = array<i32>} : memref<128x128xf32, #tpu.memory_space<vmem>>, vector<128x128xf32>,
    } else {
    }
    return
  }
  func.func @transform_0(%arg0: i32, %arg1: i32, %arg2: i32) -> (i32, i32) {
    %c0_i32 = arith.constant 0 : i32
    return %arg0, %arg2 : i32, i32
  }
  func.func @transform_1(%arg0: i32, %arg1: i32, %arg2: i32) -> (i32, i32) {
    %c0_i32 = arith.constant 0 : i32
    return %arg2, %arg1 : i32, i32
  }
  func.func @transform_2(%arg0: i32, %arg1: i32, %arg2: i32) -> (i32, i32) {
    %c0_i32 = arith.constant 0 : i32
    %c0_i32_0 = arith.constant 0 : i32
    return %c0_i32, %arg1 : i32, i32
  }
  func.func @transform_3(%arg0: i32, %arg1: i32, %arg2: i32) -> (i32, i32) {
    %c0_i32 = arith.constant 0 : i32
    %c0_i32_0 = arith.constant 0 : i32
    return %c0_i32, %arg2 : i32, i32
  }
  func.func @transform_4(%arg0: i32, %arg1: i32, %arg2: i32) -> (i32, i32) {
    %c0_i32 = arith.constant 0 : i32
    %c0_i32_0 = arith.constant 0 : i32
    return %c0_i32, %arg2 : i32, i32
  }
  func.func @transform_5(%arg0: i32, %arg1: i32, %arg2: i32) -> (i32, i32) {
    %c0_i32 = arith.constant 0 : i32
    return %arg0, %arg1 : i32, i32
  }
}

module attributes {stable_mosaic.version = 11 : i64} {
  func.func @_gemm_kernel(%arg0: i32, %arg1: i32, %arg2: i32, %arg3: memref<128x80xbf16, #tpu.memory_space<vmem>>, %arg4: memref<80x128xbf16, #tpu.memory_space<vmem>>, %arg5: memref<1x128xf32, #tpu.memory_space<vmem>>, %arg6: memref<1x80xf32, #tpu.memory_space<vmem>>, %arg7: memref<1x80xf32, #tpu.memory_space<vmem>>, %arg8: memref<128x128xf32, #tpu.memory_space<vmem>>, %arg9: memref<128x128xf32, #tpu.memory_space<vmem>>) attributes {dimension_semantics = [#tpu.dimension_semantics<parallel>, #tpu.dimension_semantics<parallel>, #tpu.dimension_semantics<arbitrary>], iteration_bounds = array<i64: 1, 1, 1>, scalar_prefetch = 0 : i64, scratch_operands = 1 : i64, tpu.core_type = #tpu.core_type<tc>, window_params = [{transform_indices = @transform_0, window_bounds = array<i64: 128, 80>}, {transform_indices = @transform_1, window_bounds = array<i64: 80, 128>}, {transform_indices = @transform_2, window_bounds = array<i64: 1, 128>}, {transform_indices = @transform_3, window_bounds = array<i64: 1, 80>}, {transform_indices = @transform_4, window_bounds = array<i64: 1, 80>}, {transform_indices = @transform_5, window_bounds = array<i64: 128, 128>}]} {
    %c0_i32 = arith.constant 0 : i32
    %0 = arith.cmpi eq, %arg2, %c0_i32 : i32
    %1 = arith.extui %0 : i1 to i32
    %c0_i32_0 = arith.constant 0 : i32
    %2 = arith.cmpi ne, %1, %c0_i32_0 : i32
    scf.if %2 {
      %cst_15 = arith.constant 0.000000e+00 : f32
      %22 = vector.broadcast %cst_15 : f32 to vector<128x128xf32>
      %c0_16 = arith.constant 0 : index
      %c0_17 = arith.constant 0 : index
      %23 = vector.load %arg9[%c0_16, %c0_17] : memref<128x128xf32, #tpu.memory_space<vmem>>, vector<128x128xf32>
      tpu.vector_store %arg9[%c0_16, %c0_17], %22 {strides = array<i32>} : memref<128x128xf32, #tpu.memory_space<vmem>>, vector<128x128xf32>,
    } else {
    }
    %c0 = arith.constant 0 : index
    %c0_1 = arith.constant 0 : index
    %3 = vector.load %arg3[%c0, %c0_1] : memref<128x80xbf16, #tpu.memory_space<vmem>>, vector<128x80xbf16>
    %4 = arith.extf %3 : vector<128x80xbf16> to vector<128x80xf32>
    %c0_2 = arith.constant 0 : index
    %c0_3 = arith.constant 0 : index
    %5 = vector.load %arg6[%c0_2, %c0_3] : memref<1x80xf32, #tpu.memory_space<vmem>>, vector<1x80xf32>
    %6 = vector.broadcast %5 : vector<1x80xf32> to vector<128x80xf32>
    %7 = arith.mulf %4, %6 : vector<128x80xf32>
    %c0_4 = arith.constant 0 : index
    %c0_5 = arith.constant 0 : index
    %8 = vector.load %arg7[%c0_4, %c0_5] : memref<1x80xf32, #tpu.memory_space<vmem>>, vector<1x80xf32>
    %9 = vector.broadcast %8 : vector<1x80xf32> to vector<128x80xf32>
    %10 = arith.addf %7, %9 : vector<128x80xf32>
    %cst = arith.constant 0.000000e+00 : f32
    %11 = vector.broadcast %cst : f32 to vector<128x80xf32>
    %12 = arith.maximumf %10, %11 : vector<128x80xf32>
    %13 = arith.truncf %12 : vector<128x80xf32> to vector<128x80xbf16>
    %c0_6 = arith.constant 0 : index
    %c0_7 = arith.constant 0 : index
    %14 = vector.load %arg9[%c0_6, %c0_7] : memref<128x128xf32, #tpu.memory_space<vmem>>, vector<128x128xf32>
    %c0_8 = arith.constant 0 : index
    %c0_9 = arith.constant 0 : index
    %15 = vector.load %arg4[%c0_8, %c0_9] : memref<80x128xbf16, #tpu.memory_space<vmem>>, vector<80x128xbf16>
    %cst_10 = arith.constant dense<0.000000e+00> : vector<128x128xf32>
    %16 = tpu.matmul %13, %15, %cst_10 {dimension_numbers = #tpu.dot_dimension_numbers<[1], [0], [0], [1], [0, 0, 1, 1], [], []>} : vector<128x80xbf16>, vector<80x128xbf16>, vector<128x128xf32> -> vector<128x128xf32>
    %17 = arith.addf %14, %16 : vector<128x128xf32>
    %c0_11 = arith.constant 0 : index
    %c0_12 = arith.constant 0 : index
    %18 = vector.load %arg9[%c0_11, %c0_12] : memref<128x128xf32, #tpu.memory_space<vmem>>, vector<128x128xf32>
    tpu.vector_store %arg9[%c0_11, %c0_12], %17 {strides = array<i32>} : memref<128x128xf32, #tpu.memory_space<vmem>>, vector<128x128xf32>,
    %c0_i32_13 = arith.constant 0 : i32
    %19 = arith.cmpi eq, %arg2, %c0_i32_13 : i32
    %20 = arith.extui %19 : i1 to i32
    %c0_i32_14 = arith.constant 0 : i32
    %21 = arith.cmpi ne, %20, %c0_i32_14 : i32
    scf.if %21 {
      %c0_15 = arith.constant 0 : index
      %c0_16 = arith.constant 0 : index
      %22 = vector.load %arg9[%c0_15, %c0_16] : memref<128x128xf32, #tpu.memory_space<vmem>>, vector<128x128xf32>
      %c0_17 = arith.constant 0 : index
      %c0_18 = arith.constant 0 : index
      %23 = vector.load %arg5[%c0_17, %c0_18] : memref<1x128xf32, #tpu.memory_space<vmem>>, vector<1x128xf32>
      %24 = vector.broadcast %23 : vector<1x128xf32> to vector<128x128xf32>
      %25 = arith.addf %22, %24 : vector<128x128xf32>
      %c0_19 = arith.constant 0 : index
      %c0_20 = arith.constant 0 : index
      %26 = vector.load %arg8[%c0_19, %c0_20] : memref<128x128xf32, #tpu.memory_space<vmem>>, vector<128x128xf32>
      tpu.vector_store %arg8[%c0_19, %c0_20], %25 {strides = array<i32>} : memref<128x128xf32, #tpu.memory_space<vmem>>, vector<128x128xf32>,
    } else {
    }
    return
  }
  func.func @transform_0(%arg0: i32, %arg1: i32, %arg2: i32) -> (i32, i32) {
    %c0_i32 = arith.constant 0 : i32
    return %arg0, %arg2 : i32, i32
  }
  func.func @transform_1(%arg0: i32, %arg1: i32, %arg2: i32) -> (i32, i32) {
    %c0_i32 = arith.constant 0 : i32
    return %arg2, %arg1 : i32, i32
  }
  func.func @transform_2(%arg0: i32, %arg1: i32, %arg2: i32) -> (i32, i32) {
    %c0_i32 = arith.constant 0 : i32
    %c0_i32_0 = arith.constant 0 : i32
    return %c0_i32, %arg1 : i32, i32
  }
  func.func @transform_3(%arg0: i32, %arg1: i32, %arg2: i32) -> (i32, i32) {
    %c0_i32 = arith.constant 0 : i32
    %c0_i32_0 = arith.constant 0 : i32
    return %c0_i32, %arg2 : i32, i32
  }
  func.func @transform_4(%arg0: i32, %arg1: i32, %arg2: i32) -> (i32, i32) {
    %c0_i32 = arith.constant 0 : i32
    %c0_i32_0 = arith.constant 0 : i32
    return %c0_i32, %arg2 : i32, i32
  }
  func.func @transform_5(%arg0: i32, %arg1: i32, %arg2: i32) -> (i32, i32) {
    %c0_i32 = arith.constant 0 : i32
    return %arg0, %arg1 : i32, i32
  }
}

module attributes {stable_mosaic.version = 11 : i64} {
  func.func @_avgpool2x2_kernel(%arg0: i32, %arg1: memref<1x4x4x40xf32, #tpu.memory_space<vmem>>, %arg2: memref<1x4x4x40xf32, #tpu.memory_space<vmem>>, %arg3: memref<1x4x4x40xf32, #tpu.memory_space<vmem>>, %arg4: memref<1x4x4x40xf32, #tpu.memory_space<vmem>>, %arg5: memref<1x4x4x40xf32, #tpu.memory_space<vmem>>) attributes {dimension_semantics = [#tpu.dimension_semantics<parallel>], iteration_bounds = array<i64: 2>, scalar_prefetch = 0 : i64, scratch_operands = 0 : i64, tpu.core_type = #tpu.core_type<tc>, window_params = [{transform_indices = @transform_0, window_bounds = array<i64: 1, 4, 4, 40>}, {transform_indices = @transform_1, window_bounds = array<i64: 1, 4, 4, 40>}, {transform_indices = @transform_2, window_bounds = array<i64: 1, 4, 4, 40>}, {transform_indices = @transform_3, window_bounds = array<i64: 1, 4, 4, 40>}, {transform_indices = @transform_4, window_bounds = array<i64: 1, 4, 4, 40>}]} {
    %c0 = arith.constant 0 : index
    %c0_0 = arith.constant 0 : index
    %c0_1 = arith.constant 0 : index
    %c0_2 = arith.constant 0 : index
    %0 = vector.load %arg1[%c0, %c0_0, %c0_1, %c0_2] : memref<1x4x4x40xf32, #tpu.memory_space<vmem>>, vector<1x4x4x40xf32>
    %c0_3 = arith.constant 0 : index
    %c0_4 = arith.constant 0 : index
    %c0_5 = arith.constant 0 : index
    %c0_6 = arith.constant 0 : index
    %1 = vector.load %arg2[%c0_3, %c0_4, %c0_5, %c0_6] : memref<1x4x4x40xf32, #tpu.memory_space<vmem>>, vector<1x4x4x40xf32>
    %2 = arith.addf %0, %1 : vector<1x4x4x40xf32>
    %c0_7 = arith.constant 0 : index
    %c0_8 = arith.constant 0 : index
    %c0_9 = arith.constant 0 : index
    %c0_10 = arith.constant 0 : index
    %3 = vector.load %arg3[%c0_7, %c0_8, %c0_9, %c0_10] : memref<1x4x4x40xf32, #tpu.memory_space<vmem>>, vector<1x4x4x40xf32>
    %4 = arith.addf %2, %3 : vector<1x4x4x40xf32>
    %c0_11 = arith.constant 0 : index
    %c0_12 = arith.constant 0 : index
    %c0_13 = arith.constant 0 : index
    %c0_14 = arith.constant 0 : index
    %5 = vector.load %arg4[%c0_11, %c0_12, %c0_13, %c0_14] : memref<1x4x4x40xf32, #tpu.memory_space<vmem>>, vector<1x4x4x40xf32>
    %6 = arith.addf %4, %5 : vector<1x4x4x40xf32>
    %cst = arith.constant 2.500000e-01 : f32
    %7 = vector.broadcast %cst : f32 to vector<1x4x4x40xf32>
    %8 = arith.mulf %7, %6 : vector<1x4x4x40xf32>
    %c0_15 = arith.constant 0 : index
    %c0_16 = arith.constant 0 : index
    %c0_17 = arith.constant 0 : index
    %c0_18 = arith.constant 0 : index
    %9 = vector.load %arg5[%c0_15, %c0_16, %c0_17, %c0_18] : memref<1x4x4x40xf32, #tpu.memory_space<vmem>>, vector<1x4x4x40xf32>
    tpu.vector_store %arg5[%c0_15, %c0_16, %c0_17, %c0_18], %8 {strides = array<i32>} : memref<1x4x4x40xf32, #tpu.memory_space<vmem>>, vector<1x4x4x40xf32>,
    return
  }
  func.func @transform_0(%arg0: i32) -> (i32, i32, i32, i32) {
    %c0_i32 = arith.constant 0 : i32
    %c0_i32_0 = arith.constant 0 : i32
    %c0_i32_1 = arith.constant 0 : i32
    %c0_i32_2 = arith.constant 0 : i32
    return %arg0, %c0_i32, %c0_i32_0, %c0_i32_1 : i32, i32, i32, i32
  }
  func.func @transform_1(%arg0: i32) -> (i32, i32, i32, i32) {
    %c0_i32 = arith.constant 0 : i32
    %c0_i32_0 = arith.constant 0 : i32
    %c0_i32_1 = arith.constant 0 : i32
    %c0_i32_2 = arith.constant 0 : i32
    return %arg0, %c0_i32, %c0_i32_0, %c0_i32_1 : i32, i32, i32, i32
  }
  func.func @transform_2(%arg0: i32) -> (i32, i32, i32, i32) {
    %c0_i32 = arith.constant 0 : i32
    %c0_i32_0 = arith.constant 0 : i32
    %c0_i32_1 = arith.constant 0 : i32
    %c0_i32_2 = arith.constant 0 : i32
    return %arg0, %c0_i32, %c0_i32_0, %c0_i32_1 : i32, i32, i32, i32
  }
  func.func @transform_3(%arg0: i32) -> (i32, i32, i32, i32) {
    %c0_i32 = arith.constant 0 : i32
    %c0_i32_0 = arith.constant 0 : i32
    %c0_i32_1 = arith.constant 0 : i32
    %c0_i32_2 = arith.constant 0 : i32
    return %arg0, %c0_i32, %c0_i32_0, %c0_i32_1 : i32, i32, i32, i32
  }
  func.func @transform_4(%arg0: i32) -> (i32, i32, i32, i32) {
    %c0_i32 = arith.constant 0 : i32
    %c0_i32_0 = arith.constant 0 : i32
    %c0_i32_1 = arith.constant 0 : i32
    %c0_i32_2 = arith.constant 0 : i32
    return %arg0, %c0_i32, %c0_i32_0, %c0_i32_1 : i32, i32, i32, i32
  }
}

module attributes {stable_mosaic.version = 11 : i64} {
  func.func @_gemm_kernel(%arg0: i32, %arg1: i32, %arg2: i32, %arg3: memref<32x360xbf16, #tpu.memory_space<vmem>>, %arg4: memref<360x128xbf16, #tpu.memory_space<vmem>>, %arg5: memref<1x128xf32, #tpu.memory_space<vmem>>, %arg6: memref<1x360xf32, #tpu.memory_space<vmem>>, %arg7: memref<1x360xf32, #tpu.memory_space<vmem>>, %arg8: memref<32x128xf32, #tpu.memory_space<vmem>>, %arg9: memref<32x128xf32, #tpu.memory_space<vmem>>) attributes {dimension_semantics = [#tpu.dimension_semantics<parallel>, #tpu.dimension_semantics<parallel>, #tpu.dimension_semantics<arbitrary>], iteration_bounds = array<i64: 1, 1, 1>, scalar_prefetch = 0 : i64, scratch_operands = 1 : i64, tpu.core_type = #tpu.core_type<tc>, window_params = [{transform_indices = @transform_0, window_bounds = array<i64: 32, 360>}, {transform_indices = @transform_1, window_bounds = array<i64: 360, 128>}, {transform_indices = @transform_2, window_bounds = array<i64: 1, 128>}, {transform_indices = @transform_3, window_bounds = array<i64: 1, 360>}, {transform_indices = @transform_4, window_bounds = array<i64: 1, 360>}, {transform_indices = @transform_5, window_bounds = array<i64: 32, 128>}]} {
    %c0_i32 = arith.constant 0 : i32
    %0 = arith.cmpi eq, %arg2, %c0_i32 : i32
    %1 = arith.extui %0 : i1 to i32
    %c0_i32_0 = arith.constant 0 : i32
    %2 = arith.cmpi ne, %1, %c0_i32_0 : i32
    scf.if %2 {
      %cst_15 = arith.constant 0.000000e+00 : f32
      %22 = vector.broadcast %cst_15 : f32 to vector<32x128xf32>
      %c0_16 = arith.constant 0 : index
      %c0_17 = arith.constant 0 : index
      %23 = vector.load %arg9[%c0_16, %c0_17] : memref<32x128xf32, #tpu.memory_space<vmem>>, vector<32x128xf32>
      tpu.vector_store %arg9[%c0_16, %c0_17], %22 {strides = array<i32>} : memref<32x128xf32, #tpu.memory_space<vmem>>, vector<32x128xf32>,
    } else {
    }
    %c0 = arith.constant 0 : index
    %c0_1 = arith.constant 0 : index
    %3 = vector.load %arg3[%c0, %c0_1] : memref<32x360xbf16, #tpu.memory_space<vmem>>, vector<32x360xbf16>
    %4 = arith.extf %3 : vector<32x360xbf16> to vector<32x360xf32>
    %c0_2 = arith.constant 0 : index
    %c0_3 = arith.constant 0 : index
    %5 = vector.load %arg6[%c0_2, %c0_3] : memref<1x360xf32, #tpu.memory_space<vmem>>, vector<1x360xf32>
    %6 = vector.broadcast %5 : vector<1x360xf32> to vector<32x360xf32>
    %7 = arith.mulf %4, %6 : vector<32x360xf32>
    %c0_4 = arith.constant 0 : index
    %c0_5 = arith.constant 0 : index
    %8 = vector.load %arg7[%c0_4, %c0_5] : memref<1x360xf32, #tpu.memory_space<vmem>>, vector<1x360xf32>
    %9 = vector.broadcast %8 : vector<1x360xf32> to vector<32x360xf32>
    %10 = arith.addf %7, %9 : vector<32x360xf32>
    %cst = arith.constant 0.000000e+00 : f32
    %11 = vector.broadcast %cst : f32 to vector<32x360xf32>
    %12 = arith.maximumf %10, %11 : vector<32x360xf32>
    %13 = arith.truncf %12 : vector<32x360xf32> to vector<32x360xbf16>
    %c0_6 = arith.constant 0 : index
    %c0_7 = arith.constant 0 : index
    %14 = vector.load %arg9[%c0_6, %c0_7] : memref<32x128xf32, #tpu.memory_space<vmem>>, vector<32x128xf32>
    %c0_8 = arith.constant 0 : index
    %c0_9 = arith.constant 0 : index
    %15 = vector.load %arg4[%c0_8, %c0_9] : memref<360x128xbf16, #tpu.memory_space<vmem>>, vector<360x128xbf16>
    %cst_10 = arith.constant dense<0.000000e+00> : vector<32x128xf32>
    %16 = tpu.matmul %13, %15, %cst_10 {dimension_numbers = #tpu.dot_dimension_numbers<[1], [0], [0], [1], [0, 0, 1, 1], [], []>} : vector<32x360xbf16>, vector<360x128xbf16>, vector<32x128xf32> -> vector<32x128xf32>
    %17 = arith.addf %14, %16 : vector<32x128xf32>
    %c0_11 = arith.constant 0 : index
    %c0_12 = arith.constant 0 : index
    %18 = vector.load %arg9[%c0_11, %c0_12] : memref<32x128xf32, #tpu.memory_space<vmem>>, vector<32x128xf32>
    tpu.vector_store %arg9[%c0_11, %c0_12], %17 {strides = array<i32>} : memref<32x128xf32, #tpu.memory_space<vmem>>, vector<32x128xf32>,
    %c0_i32_13 = arith.constant 0 : i32
    %19 = arith.cmpi eq, %arg2, %c0_i32_13 : i32
    %20 = arith.extui %19 : i1 to i32
    %c0_i32_14 = arith.constant 0 : i32
    %21 = arith.cmpi ne, %20, %c0_i32_14 : i32
    scf.if %21 {
      %c0_15 = arith.constant 0 : index
      %c0_16 = arith.constant 0 : index
      %22 = vector.load %arg9[%c0_15, %c0_16] : memref<32x128xf32, #tpu.memory_space<vmem>>, vector<32x128xf32>
      %c0_17 = arith.constant 0 : index
      %c0_18 = arith.constant 0 : index
      %23 = vector.load %arg5[%c0_17, %c0_18] : memref<1x128xf32, #tpu.memory_space<vmem>>, vector<1x128xf32>
      %24 = vector.broadcast %23 : vector<1x128xf32> to vector<32x128xf32>
      %25 = arith.addf %22, %24 : vector<32x128xf32>
      %c0_19 = arith.constant 0 : index
      %c0_20 = arith.constant 0 : index
      %26 = vector.load %arg8[%c0_19, %c0_20] : memref<32x128xf32, #tpu.memory_space<vmem>>, vector<32x128xf32>
      tpu.vector_store %arg8[%c0_19, %c0_20], %25 {strides = array<i32>} : memref<32x128xf32, #tpu.memory_space<vmem>>, vector<32x128xf32>,
    } else {
    }
    return
  }
  func.func @transform_0(%arg0: i32, %arg1: i32, %arg2: i32) -> (i32, i32) {
    %c0_i32 = arith.constant 0 : i32
    return %arg0, %arg2 : i32, i32
  }
  func.func @transform_1(%arg0: i32, %arg1: i32, %arg2: i32) -> (i32, i32) {
    %c0_i32 = arith.constant 0 : i32
    return %arg2, %arg1 : i32, i32
  }
  func.func @transform_2(%arg0: i32, %arg1: i32, %arg2: i32) -> (i32, i32) {
    %c0_i32 = arith.constant 0 : i32
    %c0_i32_0 = arith.constant 0 : i32
    return %c0_i32, %arg1 : i32, i32
  }
  func.func @transform_3(%arg0: i32, %arg1: i32, %arg2: i32) -> (i32, i32) {
    %c0_i32 = arith.constant 0 : i32
    %c0_i32_0 = arith.constant 0 : i32
    return %c0_i32, %arg2 : i32, i32
  }
  func.func @transform_4(%arg0: i32, %arg1: i32, %arg2: i32) -> (i32, i32) {
    %c0_i32 = arith.constant 0 : i32
    %c0_i32_0 = arith.constant 0 : i32
    return %c0_i32, %arg2 : i32, i32
  }
  func.func @transform_5(%arg0: i32, %arg1: i32, %arg2: i32) -> (i32, i32) {
    %c0_i32 = arith.constant 0 : i32
    return %arg0, %arg1 : i32, i32
  }
}

module attributes {stable_mosaic.version = 11 : i64} {
  func.func @_gemm_kernel(%arg0: i32, %arg1: i32, %arg2: i32, %arg3: memref<32x432xbf16, #tpu.memory_space<vmem>>, %arg4: memref<432x128xbf16, #tpu.memory_space<vmem>>, %arg5: memref<1x128xf32, #tpu.memory_space<vmem>>, %arg6: memref<1x432xf32, #tpu.memory_space<vmem>>, %arg7: memref<1x432xf32, #tpu.memory_space<vmem>>, %arg8: memref<32x128xf32, #tpu.memory_space<vmem>>, %arg9: memref<32x128xf32, #tpu.memory_space<vmem>>) attributes {dimension_semantics = [#tpu.dimension_semantics<parallel>, #tpu.dimension_semantics<parallel>, #tpu.dimension_semantics<arbitrary>], iteration_bounds = array<i64: 1, 1, 1>, scalar_prefetch = 0 : i64, scratch_operands = 1 : i64, tpu.core_type = #tpu.core_type<tc>, window_params = [{transform_indices = @transform_0, window_bounds = array<i64: 32, 432>}, {transform_indices = @transform_1, window_bounds = array<i64: 432, 128>}, {transform_indices = @transform_2, window_bounds = array<i64: 1, 128>}, {transform_indices = @transform_3, window_bounds = array<i64: 1, 432>}, {transform_indices = @transform_4, window_bounds = array<i64: 1, 432>}, {transform_indices = @transform_5, window_bounds = array<i64: 32, 128>}]} {
    %c0_i32 = arith.constant 0 : i32
    %0 = arith.cmpi eq, %arg2, %c0_i32 : i32
    %1 = arith.extui %0 : i1 to i32
    %c0_i32_0 = arith.constant 0 : i32
    %2 = arith.cmpi ne, %1, %c0_i32_0 : i32
    scf.if %2 {
      %cst_15 = arith.constant 0.000000e+00 : f32
      %22 = vector.broadcast %cst_15 : f32 to vector<32x128xf32>
      %c0_16 = arith.constant 0 : index
      %c0_17 = arith.constant 0 : index
      %23 = vector.load %arg9[%c0_16, %c0_17] : memref<32x128xf32, #tpu.memory_space<vmem>>, vector<32x128xf32>
      tpu.vector_store %arg9[%c0_16, %c0_17], %22 {strides = array<i32>} : memref<32x128xf32, #tpu.memory_space<vmem>>, vector<32x128xf32>,
    } else {
    }
    %c0 = arith.constant 0 : index
    %c0_1 = arith.constant 0 : index
    %3 = vector.load %arg3[%c0, %c0_1] : memref<32x432xbf16, #tpu.memory_space<vmem>>, vector<32x432xbf16>
    %4 = arith.extf %3 : vector<32x432xbf16> to vector<32x432xf32>
    %c0_2 = arith.constant 0 : index
    %c0_3 = arith.constant 0 : index
    %5 = vector.load %arg6[%c0_2, %c0_3] : memref<1x432xf32, #tpu.memory_space<vmem>>, vector<1x432xf32>
    %6 = vector.broadcast %5 : vector<1x432xf32> to vector<32x432xf32>
    %7 = arith.mulf %4, %6 : vector<32x432xf32>
    %c0_4 = arith.constant 0 : index
    %c0_5 = arith.constant 0 : index
    %8 = vector.load %arg7[%c0_4, %c0_5] : memref<1x432xf32, #tpu.memory_space<vmem>>, vector<1x432xf32>
    %9 = vector.broadcast %8 : vector<1x432xf32> to vector<32x432xf32>
    %10 = arith.addf %7, %9 : vector<32x432xf32>
    %cst = arith.constant 0.000000e+00 : f32
    %11 = vector.broadcast %cst : f32 to vector<32x432xf32>
    %12 = arith.maximumf %10, %11 : vector<32x432xf32>
    %13 = arith.truncf %12 : vector<32x432xf32> to vector<32x432xbf16>
    %c0_6 = arith.constant 0 : index
    %c0_7 = arith.constant 0 : index
    %14 = vector.load %arg9[%c0_6, %c0_7] : memref<32x128xf32, #tpu.memory_space<vmem>>, vector<32x128xf32>
    %c0_8 = arith.constant 0 : index
    %c0_9 = arith.constant 0 : index
    %15 = vector.load %arg4[%c0_8, %c0_9] : memref<432x128xbf16, #tpu.memory_space<vmem>>, vector<432x128xbf16>
    %cst_10 = arith.constant dense<0.000000e+00> : vector<32x128xf32>
    %16 = tpu.matmul %13, %15, %cst_10 {dimension_numbers = #tpu.dot_dimension_numbers<[1], [0], [0], [1], [0, 0, 1, 1], [], []>} : vector<32x432xbf16>, vector<432x128xbf16>, vector<32x128xf32> -> vector<32x128xf32>
    %17 = arith.addf %14, %16 : vector<32x128xf32>
    %c0_11 = arith.constant 0 : index
    %c0_12 = arith.constant 0 : index
    %18 = vector.load %arg9[%c0_11, %c0_12] : memref<32x128xf32, #tpu.memory_space<vmem>>, vector<32x128xf32>
    tpu.vector_store %arg9[%c0_11, %c0_12], %17 {strides = array<i32>} : memref<32x128xf32, #tpu.memory_space<vmem>>, vector<32x128xf32>,
    %c0_i32_13 = arith.constant 0 : i32
    %19 = arith.cmpi eq, %arg2, %c0_i32_13 : i32
    %20 = arith.extui %19 : i1 to i32
    %c0_i32_14 = arith.constant 0 : i32
    %21 = arith.cmpi ne, %20, %c0_i32_14 : i32
    scf.if %21 {
      %c0_15 = arith.constant 0 : index
      %c0_16 = arith.constant 0 : index
      %22 = vector.load %arg9[%c0_15, %c0_16] : memref<32x128xf32, #tpu.memory_space<vmem>>, vector<32x128xf32>
      %c0_17 = arith.constant 0 : index
      %c0_18 = arith.constant 0 : index
      %23 = vector.load %arg5[%c0_17, %c0_18] : memref<1x128xf32, #tpu.memory_space<vmem>>, vector<1x128xf32>
      %24 = vector.broadcast %23 : vector<1x128xf32> to vector<32x128xf32>
      %25 = arith.addf %22, %24 : vector<32x128xf32>
      %c0_19 = arith.constant 0 : index
      %c0_20 = arith.constant 0 : index
      %26 = vector.load %arg8[%c0_19, %c0_20] : memref<32x128xf32, #tpu.memory_space<vmem>>, vector<32x128xf32>
      tpu.vector_store %arg8[%c0_19, %c0_20], %25 {strides = array<i32>} : memref<32x128xf32, #tpu.memory_space<vmem>>, vector<32x128xf32>,
    } else {
    }
    return
  }
  func.func @transform_0(%arg0: i32, %arg1: i32, %arg2: i32) -> (i32, i32) {
    %c0_i32 = arith.constant 0 : i32
    return %arg0, %arg2 : i32, i32
  }
  func.func @transform_1(%arg0: i32, %arg1: i32, %arg2: i32) -> (i32, i32) {
    %c0_i32 = arith.constant 0 : i32
    return %arg2, %arg1 : i32, i32
  }
  func.func @transform_2(%arg0: i32, %arg1: i32, %arg2: i32) -> (i32, i32) {
    %c0_i32 = arith.constant 0 : i32
    %c0_i32_0 = arith.constant 0 : i32
    return %c0_i32, %arg1 : i32, i32
  }
  func.func @transform_3(%arg0: i32, %arg1: i32, %arg2: i32) -> (i32, i32) {
    %c0_i32 = arith.constant 0 : i32
    %c0_i32_0 = arith.constant 0 : i32
    return %c0_i32, %arg2 : i32, i32
  }
  func.func @transform_4(%arg0: i32, %arg1: i32, %arg2: i32) -> (i32, i32) {
    %c0_i32 = arith.constant 0 : i32
    %c0_i32_0 = arith.constant 0 : i32
    return %c0_i32, %arg2 : i32, i32
  }
  func.func @transform_5(%arg0: i32, %arg1: i32, %arg2: i32) -> (i32, i32) {
    %c0_i32 = arith.constant 0 : i32
    return %arg0, %arg1 : i32, i32
  }
}

module attributes {stable_mosaic.version = 11 : i64} {
  func.func @_bn_relu_avgpool3_kernel(%arg0: i32, %arg1: memref<1x4x4x56xf32, #tpu.memory_space<vmem>>, %arg2: memref<1x1x1x56xf32, #tpu.memory_space<vmem>>, %arg3: memref<1x1x1x56xf32, #tpu.memory_space<vmem>>, %arg4: memref<1x1x1x56xf32, #tpu.memory_space<vmem>>) attributes {dimension_semantics = [#tpu.dimension_semantics<parallel>], iteration_bounds = array<i64: 2>, scalar_prefetch = 0 : i64, scratch_operands = 0 : i64, tpu.core_type = #tpu.core_type<tc>, window_params = [{transform_indices = @transform_0, window_bounds = array<i64: 1, 4, 4, 56>}, {pipeline_mode = #tpu.pipeline_mode<synchronous>, transform_indices = @transform_1, window_bounds = array<i64: 1, 1, 1, 56>}, {pipeline_mode = #tpu.pipeline_mode<synchronous>, transform_indices = @transform_2, window_bounds = array<i64: 1, 1, 1, 56>}, {transform_indices = @transform_3, window_bounds = array<i64: 1, 1, 1, 56>}]} {
    %c0 = arith.constant 0 : index
    %c0_0 = arith.constant 0 : index
    %c0_1 = arith.constant 0 : index
    %c0_2 = arith.constant 0 : index
    %0 = vector.load %arg2[%c0, %c0_0, %c0_1, %c0_2] : memref<1x1x1x56xf32, #tpu.memory_space<vmem>>, vector<1x1x1x56xf32>
    %c0_3 = arith.constant 0 : index
    %c0_4 = arith.constant 0 : index
    %c0_5 = arith.constant 0 : index
    %c0_6 = arith.constant 0 : index
    %1 = vector.load %arg3[%c0_3, %c0_4, %c0_5, %c0_6] : memref<1x1x1x56xf32, #tpu.memory_space<vmem>>, vector<1x1x1x56xf32>
    %c0_7 = arith.constant 0 : index
    %c0_8 = arith.constant 0 : index
    %c0_9 = arith.constant 0 : index
    %c0_10 = arith.constant 0 : index
    %2 = vector.load %arg1[%c0_7, %c0_8, %c0_9, %c0_10] : memref<1x4x4x56xf32, #tpu.memory_space<vmem>>, vector<1x3x3x56xf32>
    %3 = vector.broadcast %0 : vector<1x1x1x56xf32> to vector<1x3x3x56xf32>
    %4 = arith.mulf %2, %3 : vector<1x3x3x56xf32>
    %5 = vector.broadcast %1 : vector<1x1x1x56xf32> to vector<1x3x3x56xf32>
    %6 = arith.addf %4, %5 : vector<1x3x3x56xf32>
    %cst = arith.constant 0.000000e+00 : f32
    %7 = vector.broadcast %cst : f32 to vector<1x3x3x56xf32>
    %8 = arith.maximumf %6, %7 : vector<1x3x3x56xf32>
    %cst_11 = arith.constant dense<0.000000e+00> : vector<1x56xf32>
    %9 = vector.multi_reduction <add>, %8, %cst_11 [1, 2] : vector<1x3x3x56xf32> to vector<1x56xf32>
    %10 = vector.shape_cast %9 : vector<1x56xf32> to vector<1x1x1x56xf32>
    %cst_12 = arith.constant 0.111111112 : f32
    %11 = vector.broadcast %cst_12 : f32 to vector<1x1x1x56xf32>
    %12 = arith.mulf %10, %11 : vector<1x1x1x56xf32>
    %c0_13 = arith.constant 0 : index
    %c0_14 = arith.constant 0 : index
    %c0_15 = arith.constant 0 : index
    %c0_16 = arith.constant 0 : index
    %13 = vector.load %arg4[%c0_13, %c0_14, %c0_15, %c0_16] : memref<1x1x1x56xf32, #tpu.memory_space<vmem>>, vector<1x1x1x56xf32>
    tpu.vector_store %arg4[%c0_13, %c0_14, %c0_15, %c0_16], %12 {strides = array<i32>} : memref<1x1x1x56xf32, #tpu.memory_space<vmem>>, vector<1x1x1x56xf32>,
    return
  }
  func.func @transform_0(%arg0: i32) -> (i32, i32, i32, i32) {
    %c0_i32 = arith.constant 0 : i32
    %c0_i32_0 = arith.constant 0 : i32
    %c0_i32_1 = arith.constant 0 : i32
    %c0_i32_2 = arith.constant 0 : i32
    return %arg0, %c0_i32, %c0_i32_0, %c0_i32_1 : i32, i32, i32, i32
  }
  func.func @transform_1(%arg0: i32) -> (i32, i32, i32, i32) {
    %c0_i32 = arith.constant 0 : i32
    %c0_i32_0 = arith.constant 0 : i32
    %c0_i32_1 = arith.constant 0 : i32
    %c0_i32_2 = arith.constant 0 : i32
    %c0_i32_3 = arith.constant 0 : i32
    return %c0_i32, %c0_i32_0, %c0_i32_1, %c0_i32_2 : i32, i32, i32, i32
  }
  func.func @transform_2(%arg0: i32) -> (i32, i32, i32, i32) {
    %c0_i32 = arith.constant 0 : i32
    %c0_i32_0 = arith.constant 0 : i32
    %c0_i32_1 = arith.constant 0 : i32
    %c0_i32_2 = arith.constant 0 : i32
    %c0_i32_3 = arith.constant 0 : i32
    return %c0_i32, %c0_i32_0, %c0_i32_1, %c0_i32_2 : i32, i32, i32, i32
  }
  func.func @transform_3(%arg0: i32) -> (i32, i32, i32, i32) {
    %c0_i32 = arith.constant 0 : i32
    %c0_i32_0 = arith.constant 0 : i32
    %c0_i32_1 = arith.constant 0 : i32
    %c0_i32_2 = arith.constant 0 : i32
    return %arg0, %c0_i32, %c0_i32_0, %c0_i32_1 : i32, i32, i32, i32
  }
}

module attributes {stable_mosaic.version = 11 : i64} {
  func.func @_gemm_kernel(%arg0: i32, %arg1: i32, %arg2: i32, %arg3: memref<8x56xbf16, #tpu.memory_space<vmem>>, %arg4: memref<56x128xbf16, #tpu.memory_space<vmem>>, %arg5: memref<1x128xf32, #tpu.memory_space<vmem>>, %arg6: memref<8x128xf32, #tpu.memory_space<vmem>>, %arg7: memref<8x128xf32, #tpu.memory_space<vmem>>) attributes {dimension_semantics = [#tpu.dimension_semantics<parallel>, #tpu.dimension_semantics<parallel>, #tpu.dimension_semantics<arbitrary>], iteration_bounds = array<i64: 1, 1, 1>, scalar_prefetch = 0 : i64, scratch_operands = 1 : i64, tpu.core_type = #tpu.core_type<tc>, window_params = [{transform_indices = @transform_0, window_bounds = array<i64: 8, 56>}, {transform_indices = @transform_1, window_bounds = array<i64: 56, 128>}, {transform_indices = @transform_2, window_bounds = array<i64: 1, 128>}, {transform_indices = @transform_3, window_bounds = array<i64: 8, 128>}]} {
    %c0_i32 = arith.constant 0 : i32
    %0 = arith.cmpi eq, %arg2, %c0_i32 : i32
    %1 = arith.extui %0 : i1 to i32
    %c0_i32_0 = arith.constant 0 : i32
    %2 = arith.cmpi ne, %1, %c0_i32_0 : i32
    scf.if %2 {
      %cst_10 = arith.constant 0.000000e+00 : f32
      %12 = vector.broadcast %cst_10 : f32 to vector<8x128xf32>
      %c0_11 = arith.constant 0 : index
      %c0_12 = arith.constant 0 : index
      %13 = vector.load %arg7[%c0_11, %c0_12] : memref<8x128xf32, #tpu.memory_space<vmem>>, vector<8x128xf32>
      tpu.vector_store %arg7[%c0_11, %c0_12], %12 {strides = array<i32>} : memref<8x128xf32, #tpu.memory_space<vmem>>, vector<8x128xf32>,
    } else {
    }
    %c0 = arith.constant 0 : index
    %c0_1 = arith.constant 0 : index
    %3 = vector.load %arg3[%c0, %c0_1] : memref<8x56xbf16, #tpu.memory_space<vmem>>, vector<8x56xbf16>
    %c0_2 = arith.constant 0 : index
    %c0_3 = arith.constant 0 : index
    %4 = vector.load %arg7[%c0_2, %c0_3] : memref<8x128xf32, #tpu.memory_space<vmem>>, vector<8x128xf32>
    %c0_4 = arith.constant 0 : index
    %c0_5 = arith.constant 0 : index
    %5 = vector.load %arg4[%c0_4, %c0_5] : memref<56x128xbf16, #tpu.memory_space<vmem>>, vector<56x128xbf16>
    %cst = arith.constant dense<0.000000e+00> : vector<8x128xf32>
    %6 = tpu.matmul %3, %5, %cst {dimension_numbers = #tpu.dot_dimension_numbers<[1], [0], [0], [1], [0, 0, 1, 1], [], []>} : vector<8x56xbf16>, vector<56x128xbf16>, vector<8x128xf32> -> vector<8x128xf32>
    %7 = arith.addf %4, %6 : vector<8x128xf32>
    %c0_6 = arith.constant 0 : index
    %c0_7 = arith.constant 0 : index
    %8 = vector.load %arg7[%c0_6, %c0_7] : memref<8x128xf32, #tpu.memory_space<vmem>>, vector<8x128xf32>
    tpu.vector_store %arg7[%c0_6, %c0_7], %7 {strides = array<i32>} : memref<8x128xf32, #tpu.memory_space<vmem>>, vector<8x128xf32>,
    %c0_i32_8 = arith.constant 0 : i32
    %9 = arith.cmpi eq, %arg2, %c0_i32_8 : i32
    %10 = arith.extui %9 : i1 to i32
    %c0_i32_9 = arith.constant 0 : i32
    %11 = arith.cmpi ne, %10, %c0_i32_9 : i32
    scf.if %11 {
      %c0_10 = arith.constant 0 : index
      %c0_11 = arith.constant 0 : index
      %12 = vector.load %arg7[%c0_10, %c0_11] : memref<8x128xf32, #tpu.memory_space<vmem>>, vector<8x128xf32>
      %c0_12 = arith.constant 0 : index
      %c0_13 = arith.constant 0 : index
      %13 = vector.load %arg5[%c0_12, %c0_13] : memref<1x128xf32, #tpu.memory_space<vmem>>, vector<1x128xf32>
      %14 = vector.broadcast %13 : vector<1x128xf32> to vector<8x128xf32>
      %15 = arith.addf %12, %14 : vector<8x128xf32>
      %c0_14 = arith.constant 0 : index
      %c0_15 = arith.constant 0 : index
      %16 = vector.load %arg6[%c0_14, %c0_15] : memref<8x128xf32, #tpu.memory_space<vmem>>, vector<8x128xf32>
      tpu.vector_store %arg6[%c0_14, %c0_15], %15 {strides = array<i32>} : memref<8x128xf32, #tpu.memory_space<vmem>>, vector<8x128xf32>,
    } else {
    }
    return
  }
  func.func @transform_0(%arg0: i32, %arg1: i32, %arg2: i32) -> (i32, i32) {
    %c0_i32 = arith.constant 0 : i32
    return %arg0, %arg2 : i32, i32
  }
  func.func @transform_1(%arg0: i32, %arg1: i32, %arg2: i32) -> (i32, i32) {
    %c0_i32 = arith.constant 0 : i32
    return %arg2, %arg1 : i32, i32
  }
  func.func @transform_2(%arg0: i32, %arg1: i32, %arg2: i32) -> (i32, i32) {
    %c0_i32 = arith.constant 0 : i32
    %c0_i32_0 = arith.constant 0 : i32
    return %c0_i32, %arg1 : i32, i32
  }
  func.func @transform_3(%arg0: i32, %arg1: i32, %arg2: i32) -> (i32, i32) {
    %c0_i32 = arith.constant 0 : i32
    return %arg0, %arg1 : i32, i32
  }
}

</mosaic_0001>

<bundles_post_ra>
// kernel: densenet_forward.11
= control target key start
LH: loop header
LB: loop body
LE: loop exit
PB: predicated region body
PF: predicated region fallthrough
CT: control target
= control target key end

     0   :  { %s576_s15 = smov 0   ;;  %s689_s0 = inlined_call_operand.vmem [shape: f32[2,9,9,64], index: 0, kind: input, shape index: {}]   ;;  %s690_s1 = inlined_call_operand.vmem [shape: f32[2,9,9,64], index: 1, kind: input, shape index: {}]   ;;  %s691_s2 = inlined_call_operand.vmem [shape: f32[2,9,9,64], index: 2, kind: input, shape index: {}]   ;;  %s692_s3 = inlined_call_operand.vmem [shape: f32[2,9,9,64], index: 3, kind: input, shape index: {}]   ;;  %s693_s4 = inlined_call_operand.vmem [shape: f32[2,8,8,64], index: 4, kind: output, shape index: {}]  }
   0x1 LB: > { %s496_s16 = sadd.s32 4294967295, %s549_s15   ;;  %p500_p0 = scmp.ge.s32.totalorder %s549_s15, 1  ;;  %s549_s15 = sphi %s576_s15, %s14_s15  }
   0x2   : > { %p192_p1 = scmp.lt.s32.totalorder %s549_s15, 3 }
   0x4   : > { %p193_p2 = pnand %p500_p0, %p192_p1 }
   0x5   : > { %p233_p3 = scmp.lt.s32.totalorder (!%p193_p2), %s496_s16, 1  ;;  %vm396_vm0 = vcmask (!%p193_p2), 523264  }
   0x6   : > { %196 = sbr.rel (%p193_p2) target bundleno = 51 (0x33), region = 36 }
   0xd   : > { %s695_s16 = smov (!%p233_p3, %s496_s16), 1 }
   0xe   : > { %s587_s17 = smul.u32 144, %s695_s16  ;;  %s533_s30 = sshll.u32 %s695_s16, 6 }
   0xf   : > { %s647_s7 = scalar_lea.vmem %s693_s4, %s533_s30 }
  0x10   : > { %s593_s20 = scalar_lea.vmem %s689_s0, %s587_s17  ;;  %s602_s23 = scalar_lea.vmem %s690_s1, %s587_s17 }
  0x11   : > { %v258_v0 = vld [vmem:[%s593_s20] sm:$0xff]  ;;  %v507_v2 = vld [vmem:[%s593_s20 + $0x10] sm:$0xff]  ;;  %s612_s26 = scalar_lea.vmem %s691_s2, %s587_s17  ;;  %s626_s29 = scalar_lea.vmem %s692_s3, %s587_s17 }
  0x12   : > { %v266_v1 = vld [vmem:[%s593_s20 + $0x1] sm:$0xff]  ;;  %v515_v4 = vld [vmem:[%s593_s20 + $0x11] sm:$0xff] }
  0x13   : > { %v274_v3 = vmax.f32 %v258_v0, %v266_v1  ;;  %v275_v5 = vmax.f32 %v507_v2, %v515_v4  ;;  %v508_v7 = vld [vmem:[%s593_s20 + $0x20] sm:$0xff]  ;;  %v523_v13 = vld [vmem:[%s602_s23 + $0x10] sm:$0xff] }
  0x14   : > { %v516_v8 = vld [vmem:[%s593_s20 + $0x21] sm:$0xff]  ;;  %v509_v14 = vld [vmem:[%s593_s20 + $0x30] sm:$0xff] }
  0x15   : > { %v291_v6 = vmax.f32 %v274_v3, %v507_v2  ;;  %v315_v9 = vld [vmem:[%s602_s23] sm:$0xff]  ;;  %v292_v10 = vmax.f32 %v275_v5, %v508_v7  ;;  %v276_v11 = vmax.f32 %v508_v7, %v516_v8  ;;  %v517_v15 = vld [vmem:[%s593_s20 + $0x31] sm:$0xff] }
  0x16   : > { %v277_v18 = vmax.f32 %v509_v14, %v517_v15  ;;  %v524_v20 = vld [vmem:[%s602_s23 + $0x20] sm:$0xff]  ;;  %v349_v25 = vld [vmem:[%s612_s26 + $0x10] sm:$0xff] }
  0x17   : > { %v307_v12 = vmax.f32 %v291_v6, %v515_v4  ;;  %v308_v16 = vmax.f32 %v292_v10, %v516_v8  ;;  %v293_v17 = vmax.f32 %v276_v11, %v509_v14  ;;  %v510_v21 = vld [vmem:[%s593_s20 + $0x40] sm:$0xff]  ;;  %v525_v30 = vld [vmem:[%s602_s23 + $0x30] sm:$0xff] }
  0x18   : > { %v518_v22 = vld [vmem:[%s593_s20 + $0x41] sm:$0xff]  ;;  %v294_v27 = vmax.f32 %v277_v18, %v510_v21  ;;  %v511_v31 = vld [vmem:[%s593_s20 + $0x50] sm:$0xff] }
  0x19   : > { %v323_v19 = vmax.f32 %v307_v12, %v315_v9  ;;  %v348_v23 = vld [vmem:[%s612_s26] sm:$0xff]  ;;  %v324_v24 = vmax.f32 %v308_v16, %v523_v13  ;;  %v309_v26 = vmax.f32 %v293_v17, %v517_v15  ;;  %v278_v28 = vmax.f32 %v510_v21, %v518_v22  ;;  %v519_v32 = vld [vmem:[%s593_s20 + $0x51] sm:$0xff] }
  0x1a   : > { %v364_v33 = vld [vmem:[%s612_s26 + $0x1] sm:$0xff]  ;;  %v365_v35 = vld [vmem:[%s612_s26 + $0x11] sm:$0xff]  ;;  %v310_v38 = vmax.f32 %v294_v27, %v518_v22  ;;  %v279_v42 = vmax.f32 %v511_v31, %v519_v32 }
  0x1b   : > { %v340_v29 = vmax.f32 %v323_v19, %v523_v13  ;;  %v341_v34 = vmax.f32 %v324_v24, %v524_v20  ;;  %v325_v36 = vmax.f32 %v309_v26, %v524_v20  ;;  %v350_v37 = vld [vmem:[%s612_s26 + $0x20] sm:$0xff]  ;;  %v295_v39 = vmax.f32 %v278_v28, %v511_v31  ;;  %v381_v47 = vld [vmem:[%s626_s29 + $0x10] sm:$0xff] }
  0x1c   : > { %v526_v41 = vld [vmem:[%s602_s23 + $0x40] sm:$0xff]  ;;  %v326_v50 = vmax.f32 %v310_v38, %v525_v30  ;;  %v351_v53 = vld [vmem:[%s612_s26 + $0x30] sm:$0xff] }
  0x1d   : > { %v356_v40 = vmax.f32 %v340_v29, %v348_v23  ;;  %v512_v43 = vld [vmem:[%s593_s20 + $0x60] sm:$0xff]  ;;  %v357_v46 = vmax.f32 %v341_v34, %v349_v25  ;;  %v342_v48 = vmax.f32 %v325_v36, %v525_v30  ;;  %v311_v51 = vmax.f32 %v295_v39, %v519_v32  ;;  %v513_v56 = vld [vmem:[%s593_s20 + $0x70] sm:$0xff] }
  0x1e   : > { %v520_v44 = vld [vmem:[%s593_s20 + $0x61] sm:$0xff]  ;;  %v296_v54 = vmax.f32 %v279_v42, %v512_v43  ;;  %v521_v57 = vld [vmem:[%s593_s20 + $0x71] sm:$0xff]  ;;  %v343_v61 = vmax.f32 %v326_v50, %v526_v41 }
  0x1f   : > { %v380_v45 = vld [vmem:[%s626_s29] sm:$0xff]  ;;  %v372_v52 = vmax.f32 %v356_v40, %v364_v33  ;;  %v280_v55 = vmax.f32 %v512_v43, %v520_v44  ;;  %v373_v58 = vmax.f32 %v357_v46, %v365_v35  ;;  %v358_v59 = vmax.f32 %v342_v48, %v350_v37  ;;  %v527_v63 = vld [vmem:[%s602_s23 + $0x50] sm:$0xff] }
  0x20   : > { %v366_v49 = vld [vmem:[%s612_s26 + $0x21] sm:$0xff]  ;;  %v327_v62 = vmax.f32 %v311_v51, %v526_v41  ;;  %v367_v1 = vld [vmem:[%s612_s26 + $0x31] sm:$0xff]  ;;  %v312_v3 = vmax.f32 %v296_v54, %v520_v44  ;;  %v281_v5 = vmax.f32 %v513_v56, %v521_v57  ;;  %v359_v9 = vmax.f32 %v343_v61, %v351_v53 }
  0x21   : > { %v382_v60 = vld [vmem:[%s626_s29 + $0x20] sm:$0xff]  ;;  %v388_v0 = vmax.f32 %v372_v52, %v380_v45  ;;  %v297_v4 = vmax.f32 %v280_v55, %v513_v56  ;;  %v389_v7 = vmax.f32 %v373_v58, %v381_v47  ;;  %v374_v8 = vmax.f32 %v358_v59, %v366_v49  ;;  %v383_v13 = vld [vmem:[%s626_s29 + $0x30] sm:$0xff] }
  0x22   : > { %v352_v2 = vld [vmem:[%s612_s26 + $0x40] sm:$0xff]  ;;  %v344_v10 = vmax.f32 %v327_v62, %v527_v63  ;;  %v328_v15 = vmax.f32 %v312_v3, %v527_v63  ;;  %v375_v19 = vmax.f32 %v359_v9, %v367_v1  ;;  %v353_v21 = vld [vmem:[%s612_s26 + $0x50] sm:$0xff] }
  0x23   : > { %v514_v6 = vld [vmem:[%s593_s20 + $0x80] sm:$0xff]  ;;  %397 = vst.msk [vmem:[%s647_s7] sm:$0xff] %vm396_vm0, %v388_v0  ;;  %v313_v16 = vmax.f32 %v297_v4, %v521_v57  ;;  %398 = vst.msk [vmem:[%s647_s7 + $0x8] sm:$0xff] %vm396_vm0, %v389_v7  ;;  %v390_v18 = vmax.f32 %v374_v8, %v382_v60  ;;  %v529_v22 = vld [vmem:[%s602_s23 + $0x70] sm:$0xff] }
  0x24   : > { %v528_v11 = vld [vmem:[%s602_s23 + $0x60] sm:$0xff]  ;;  %v298_v17 = vmax.f32 %v281_v5, %v514_v6  ;;  %v360_v20 = vmax.f32 %v344_v10, %v352_v2  ;;  %v391_v27 = vmax.f32 %v375_v19, %v383_v13  ;;  %v369_v29 = vld [vmem:[%s612_s26 + $0x51] sm:$0xff] }
  0x25   : > { %v522_v12 = vld [vmem:[%s593_s20 + $0x81] sm:$0xff]  ;;  %v345_v24 = vmax.f32 %v328_v15, %v528_v11  ;;  %v329_v25 = vmax.f32 %v313_v16, %v528_v11  ;;  %399 = vst.msk [vmem:[%s647_s7 + $0x10] sm:$0xff] %vm396_vm0, %v390_v18  ;;  %v385_v36 = vld [vmem:[%s626_s29 + $0x50] sm:$0xff] }
  0x26   : > { %v368_v14 = vld [vmem:[%s612_s26 + $0x41] sm:$0xff]  ;;  %v314_v26 = vmax.f32 %v298_v17, %v522_v12  ;;  %400 = vst.msk [vmem:[%s647_s7 + $0x18] sm:$0xff] %vm396_vm0, %v391_v27  ;;  %v355_v38 = vld [vmem:[%s612_s26 + $0x70] sm:$0xff] }
  0x27   : > { %v384_v23 = vld [vmem:[%s626_s29 + $0x40] sm:$0xff]  ;;  %v376_v28 = vmax.f32 %v360_v20, %v368_v14  ;;  %v361_v32 = vmax.f32 %v345_v24, %v353_v21  ;;  %v346_v33 = vmax.f32 %v329_v25, %v529_v22  ;;  %v371_v43 = vld [vmem:[%s612_s26 + $0x71] sm:$0xff] }
  0x28   : > { %v354_v30 = vld [vmem:[%s612_s26 + $0x60] sm:$0xff]  ;;  %v330_v34 = vmax.f32 %v314_v26, %v529_v22  ;;  %v387_v47 = vld [vmem:[%s626_s29 + $0x70] sm:$0xff] }
  0x29   : > { %v530_v31 = vld [vmem:[%s602_s23 + $0x80] sm:$0xff]  ;;  %v392_v35 = vmax.f32 %v376_v28, %v384_v23  ;;  %v377_v39 = vmax.f32 %v361_v32, %v369_v29  ;;  %v362_v40 = vmax.f32 %v346_v33, %v354_v30 }
  0x2a   : > { %v370_v37 = vld [vmem:[%s612_s26 + $0x61] sm:$0xff]  ;;  %v347_v41 = vmax.f32 %v330_v34, %v530_v31 }
  0x2b   : > { %401 = vst.msk [vmem:[%s647_s7 + $0x20] sm:$0xff] %vm396_vm0, %v392_v35  ;;  %v386_v42 = vld [vmem:[%s626_s29 + $0x60] sm:$0xff]  ;;  %v393_v44 = vmax.f32 %v377_v39, %v385_v36  ;;  %v378_v45 = vmax.f32 %v362_v40, %v370_v37 }
  0x2c   : > { %v363_v46 = vmax.f32 %v347_v41, %v355_v38 }
  0x2d   : > { %402 = vst.msk [vmem:[%s647_s7 + $0x28] sm:$0xff] %vm396_vm0, %v393_v44  ;;  %v394_v48 = vmax.f32 %v378_v45, %v386_v42 }
  0x2e   : > { %v379_v49 = vmax.f32 %v363_v46, %v371_v43 }
  0x2f   : > { %403 = vst.msk [vmem:[%s647_s7 + $0x30] sm:$0xff] %vm396_vm0, %v394_v48 }
  0x30   : > { %v395_v50 = vmax.f32 %v379_v49, %v387_v47 }
  0x32   : > { %404 = vst.msk [vmem:[%s647_s7 + $0x38] sm:$0xff] %vm396_vm0, %v395_v50 }
  0x33 PF: > { %s14_s15 = sadd.s32 1, %s549_s15  }
  0x34   : > { %p11_p4 = scmp.ge.s32.totalorder %s14_s15, 4  }
  0x36   :  { %13 = sbr.rel (!%p11_p4) target bundleno = 1 (0x1), region = 77 }

// kernel: densenet_forward.10
= control target key start
LH: loop header
LB: loop body
LE: loop exit
PB: predicated region body
PF: predicated region fallthrough
CT: control target
= control target key end

     0   :  { %s1340_s12 = smov 0   ;;  %s1342_s13 = smov 0   ;;  %s1531_s0 = inlined_call_operand.vmem [shape: bf16[512,152], index: 0, kind: input, shape index: {}]   ;;  %s1532_s1 = inlined_call_operand.vmem [shape: bf16[152,128], index: 1, kind: input, shape index: {}]   ;;  %s1533_s2 = inlined_call_operand.vmem [shape: f32[1,128], index: 2, kind: input, shape index: {}]   ;;  %s1534_s3 = inlined_call_operand.vmem [shape: f32[512,128], index: 3, kind: output, shape index: {}]  }
   0x1   :  { %s1344_s14 = smov 0  }
   0x2 LB: > { %s32_s15 = sadd.s32 1, %s1313_s13  ;;  %p1124_p0 = scmp.ge.s32.totalorder %s1317_s14, 1  ;;  %s1317_s14 = sphi %s1344_s14, %s13_s14   ;;  %s1313_s13 = sphi %s1342_s13, %s1536_s13   ;;  %s1309_s12 = sphi %s1340_s12, %s1535_s12  }
   0x3   : > { %p34_p1 = scmp.ge.s32.totalorder %s32_s15, 2  ;;  %p191_p2 = scmp.lt.s32.totalorder %s1317_s14, 3 }
   0x5   : > { %s1538_s15 = smov (%p34_p1, %s32_s15), 0  ;;  %p192_p3 = pnand %p1124_p0, %p191_p2 }
   0x6   : > { %v1237_v0 = vld [vmem:[%s1532_s1] sm:$0xff] (!%p192_p3)   ;;  %v1319_v1 = vmov (!%p192_p3), 0   ;;  %v1238_v2 = vld [vmem:[%s1532_s1 + $0x8] sm:$0xff] (!%p192_p3)   ;;  %s1125_s20 = sshll.u32 (!%p192_p3), %s1309_s12, 5  ;;  %v1239_v3 = vld [vmem:[%s1532_s1 + $0x10] sm:$0xff] (!%p192_p3)   ;;  %vm588_vm0 = vcmask (!%p192_p3), 195584  }
   0x7   : > { %195 = sbr.rel (%p192_p3) target bundleno = 322 (0x142), region = 32  ;;  %641 = vmatprep.subr.bf16.mxu0 (!%p192_p3), %v1319_v1  ;;  %1192 = vmatprep.subr.bf16.mxu1 (!%p192_p3), %v1319_v1  ;;  %p236_p4 = scmp.lt.s32.totalorder (!%p192_p3), %s1125_s20, 63  ;;  %v1240_v4 = vld [vmem:[%s1532_s1 + $0x18] sm:$0xff] (!%p192_p3)   ;;  %v1241_v7 = vld [vmem:[%s1532_s1 + $0x20] sm:$0xff] (!%p192_p3)   ;;  %v1242_v8 = vld [vmem:[%s1532_s1 + $0x28] sm:$0xff] (!%p192_p3)   ;;  %vm637_vm1 = vcmask (!%p192_p3), 1043456  }
   0x8   : > { %642 = vmatpush1.bf16.msra.mxu0 (!%p192_p3), %v1237_v0  ;;  %1202 = vmatpush1.bf16.msra.mxu1 (!%p192_p3), %v1237_v0  ;;  %v1243_v9 = vld [vmem:[%s1532_s1 + $0x30] sm:$0xff] (!%p192_p3)   ;;  %v1244_v10 = vld [vmem:[%s1532_s1 + $0x38] sm:$0xff] (!%p192_p3)   ;;  %v1245_v11 = vld [vmem:[%s1532_s1 + $0x40] sm:$0xff] (!%p192_p3)  }
   0x9   : > { %643 = vmatprep.subr.bf16.mxu0 (!%p192_p3), %v1319_v1  ;;  %1193 = vmatprep.subr.bf16.mxu1 (!%p192_p3), %v1319_v1  ;;  %v1246_v12 = vld [vmem:[%s1532_s1 + $0x48] ss:$0 sps:$4 sm:$0xff] (!%p192_p3)   ;;  %v1449_v44 = vld [vmem:[%s1533_s2] ss:$0 sm:$0xff] (!%p192_p3) }
   0xa   : > { %v639_v13 = vsel (!%p192_p3), %vm637_vm1, %v1246_v12, 0 }
   0xc   : > { %644 = vmatpush1.bf16.msra.mxu0 (!%p192_p3), %v1238_v2  ;;  %1203 = vmatpush1.bf16.msra.mxu1 (!%p192_p3), %v1238_v2 }
   0xd   : > { %645 = vmatprep.subr.bf16.mxu0 (!%p192_p3), %v1319_v1  ;;  %1194 = vmatprep.subr.bf16.mxu1 (!%p192_p3), %v1319_v1 }
   0xe   : > { %s1540_s20 = smov (!%p236_p4, %s1125_s20), 63 }
   0xf   : > { %s1191_s23 = sshll.u32 %s1540_s20, 3 }
  0x10   : > { %s1375_s26 = scalar_lea.vmem %s1531_s0, %s1191_s23  ;;  %646 = vmatpush1.bf16.msra.mxu0 %v1239_v3  ;;  %1204 = vmatpush1.bf16.msra.mxu1 %v1239_v3  ;;  %s1458_s22 = scalar_lea.vmem %s1534_s3, %s1191_s23 }
  0x11   : > { %v1249_v5 = vld [vmem:[%s1375_s26 + $0x4] ss:$8 sps:$4 sm:$0xff]   ;;  %647 = vmatprep.subr.bf16.mxu0 %v1319_v1  ;;  %1195 = vmatprep.subr.bf16.mxu1 %v1319_v1  ;;  %v1247_v14 = vld [vmem:[%s1375_s26] ss:$8 sps:$4 sm:$0xff]   ;;  %v1253_v16 = vld [vmem:[%s1375_s26 + $0x14] ss:$8 sps:$4 sm:$0xff]  }
  0x12   : > { %1172 = vmatprep.mubr.msk.bf16.mxu0 %vm588_vm0, %v1249_v5  ;;  %v1252_v6 = vld [vmem:[%s1375_s26 + $0x84] ss:$8 sps:$4 sm:$0xff]   ;;  %v1250_v15 = vld [vmem:[%s1375_s26 + $0x80] ss:$8 sps:$4 sm:$0xff]   ;;  %v1255_v17 = vld [vmem:[%s1375_s26 + $0x94] ss:$8 sps:$4 sm:$0xff]  }
  0x13   : > { %1180 = vmatprep.mubr.msk.bf16.mxu1 %vm588_vm0, %v1252_v6  ;;  %v1257_v18 = vld [vmem:[%s1375_s26 + $0x10] ss:$8 sps:$4 sm:$0xff]   ;;  %v1259_v20 = vld [vmem:[%s1375_s26 + $0x24] ss:$8 sps:$4 sm:$0xff]   ;;  %v1263_v22 = vld [vmem:[%s1375_s26 + $0x20] ss:$8 sps:$4 sm:$0xff]  }
  0x14   : > { %648 = vmatpush1.bf16.msra.mxu0 %v1240_v4  ;;  %1205 = vmatpush1.bf16.msra.mxu1 %v1240_v4  ;;  %v1258_v19 = vld [vmem:[%s1375_s26 + $0x90] ss:$8 sps:$4 sm:$0xff]   ;;  %v1261_v21 = vld [vmem:[%s1375_s26 + $0xa4] ss:$8 sps:$4 sm:$0xff]   ;;  %v1264_v23 = vld [vmem:[%s1375_s26 + $0xa0] ss:$8 sps:$4 sm:$0xff]  }
  0x15   : > { %649 = vmatprep.subr.bf16.mxu0 %v1319_v1  ;;  %1196 = vmatprep.subr.bf16.mxu1 %v1319_v1  ;;  %v1265_v24 = vld [vmem:[%s1375_s26 + $0x34] ss:$8 sps:$4 sm:$0xff]   ;;  %v1269_v26 = vld [vmem:[%s1375_s26 + $0x30] ss:$8 sps:$4 sm:$0xff]   ;;  %v1271_v28 = vld [vmem:[%s1375_s26 + $0x44] ss:$8 sps:$4 sm:$0xff]  }
  0x16   : > { %v1267_v25 = vld [vmem:[%s1375_s26 + $0xb4] ss:$8 sps:$4 sm:$0xff]   ;;  %v1270_v27 = vld [vmem:[%s1375_s26 + $0xb0] ss:$8 sps:$4 sm:$0xff]   ;;  %v1273_v29 = vld [vmem:[%s1375_s26 + $0xc4] ss:$8 sps:$4 sm:$0xff]  }
  0x17   : > { %v1275_v30 = vld [vmem:[%s1375_s26 + $0x40] ss:$8 sps:$4 sm:$0xff]   ;;  %v1277_v32 = vld [vmem:[%s1375_s26 + $0x54] ss:$8 sps:$4 sm:$0xff]   ;;  %v1281_v34 = vld [vmem:[%s1375_s26 + $0x50] ss:$8 sps:$4 sm:$0xff]  }
  0x18   : > { %650 = vmatpush1.bf16.msra.mxu0 %v1241_v7  ;;  %1206 = vmatpush1.bf16.msra.mxu1 %v1241_v7  ;;  %v1276_v31 = vld [vmem:[%s1375_s26 + $0xc0] ss:$8 sps:$4 sm:$0xff]   ;;  %v1279_v33 = vld [vmem:[%s1375_s26 + $0xd4] ss:$8 sps:$4 sm:$0xff]   ;;  %v1282_v35 = vld [vmem:[%s1375_s26 + $0xd0] ss:$8 sps:$4 sm:$0xff]  }
  0x19   : > { %651 = vmatprep.subr.bf16.mxu0 %v1319_v1  ;;  %1197 = vmatprep.subr.bf16.mxu1 %v1319_v1  ;;  %v1283_v36 = vld [vmem:[%s1375_s26 + $0x64] ss:$8 sps:$4 sm:$0xff]   ;;  %v1287_v38 = vld [vmem:[%s1375_s26 + $0x60] ss:$8 sps:$4 sm:$0xff]   ;;  %v1289_v40 = vld [vmem:[%s1375_s26 + $0x74] ss:$8 sps:$4 sm:$0xff]  }
  0x1a   : > { %v1285_v37 = vld [vmem:[%s1375_s26 + $0xe4] ss:$8 sps:$4 sm:$0xff]   ;;  %v1288_v39 = vld [vmem:[%s1375_s26 + $0xe0] ss:$8 sps:$4 sm:$0xff]   ;;  %v1291_v41 = vld [vmem:[%s1375_s26 + $0xf4] ss:$8 sps:$4 sm:$0xff]  }
  0x1b   : > { %v1293_v42 = vld [vmem:[%s1375_s26 + $0x70] ss:$8 sps:$4 sm:$0xff]  }
  0x1c   : > { %652 = vmatpush1.bf16.msra.mxu0 %v1242_v8  ;;  %1207 = vmatpush1.bf16.msra.mxu1 %v1242_v8  ;;  %v1294_v43 = vld [vmem:[%s1375_s26 + $0xf0] ss:$8 sps:$4 sm:$0xff]  }
  0x1d   : > { %653 = vmatprep.subr.bf16.mxu0 %v1319_v1  ;;  %1198 = vmatprep.subr.bf16.mxu1 %v1319_v1 }
  0x20   : > { %654 = vmatpush1.bf16.msra.mxu0 %v1243_v9  ;;  %1208 = vmatpush1.bf16.msra.mxu1 %v1243_v9 }
  0x21   : > { %655 = vmatprep.subr.bf16.mxu0 %v1319_v1  ;;  %1199 = vmatprep.subr.bf16.mxu1 %v1319_v1 }
  0x24   : > { %656 = vmatpush1.bf16.msra.mxu0 %v1244_v10  ;;  %1209 = vmatpush1.bf16.msra.mxu1 %v1244_v10 }
  0x25   : > { %657 = vmatprep.subr.bf16.mxu0 %v1319_v1  ;;  %1200 = vmatprep.subr.bf16.mxu1 %v1319_v1 }
  0x28   : > { %658 = vmatpush1.bf16.msra.mxu0 %v1245_v11  ;;  %1210 = vmatpush1.bf16.msra.mxu1 %v1245_v11 }
  0x29   : > { %659 = vmatprep.subr.bf16.mxu0 %v1319_v1  ;;  %1201 = vmatprep.subr.bf16.mxu1 %v1319_v1 }
  0x2c   : > { %660 = vmatpush1.bf16.msra.mxu0 %v639_v13  ;;  %1211 = vmatpush1.bf16.msra.mxu1 %v639_v13 }
  0x2f   : > { %674 = vmatmul.mubr.bf16.vlgmr.msra.gmra.mrb[0].mxu0 %v1247_v14  ;;  %738 = vmatmul.mubr.bf16.vlgmr.msra.gmra.mrb[0].mxu1 %v1250_v15 }
  0x30   : > { %1173 = vmatprep.mubr.msk.bf16.mxu0 %vm588_vm0, %v1253_v16  ;;  %1181 = vmatprep.mubr.msk.bf16.mxu1 %vm588_vm0, %v1255_v17 }
  0x37   : > { %682 = vmatmul.mubr.bf16.gmra.mrb[4].mxu0 %v1257_v18  ;;  %746 = vmatmul.mubr.bf16.gmra.mrb[4].mxu1 %v1258_v19 }
  0x38   : > { %1174 = vmatprep.mubr.msk.bf16.mxu0 %vm588_vm0, %v1259_v20  ;;  %1182 = vmatprep.mubr.msk.bf16.mxu1 %vm588_vm0, %v1261_v21 }
  0x3f   : > { %690 = vmatmul.mubr.bf16.gmra.mrb[8].mxu0 %v1263_v22  ;;  %754 = vmatmul.mubr.bf16.gmra.mrb[8].mxu1 %v1264_v23 }
  0x40   : > { %1175 = vmatprep.mubr.msk.bf16.mxu0 %vm588_vm0, %v1265_v24  ;;  %1183 = vmatprep.mubr.msk.bf16.mxu1 %vm588_vm0, %v1267_v25 }
  0x47   : > { %698 = vmatmul.mubr.bf16.gmra.mrb[12].mxu0 %v1269_v26  ;;  %762 = vmatmul.mubr.bf16.gmra.mrb[12].mxu1 %v1270_v27 }
  0x48   : > { %1176 = vmatprep.mubr.msk.bf16.mxu0 %vm588_vm0, %v1271_v28  ;;  %1184 = vmatprep.mubr.msk.bf16.mxu1 %vm588_vm0, %v1273_v29 }
  0x4f   : > { %706 = vmatmul.mubr.bf16.gmra.mrb[16].mxu0 %v1275_v30  ;;  %770 = vmatmul.mubr.bf16.gmra.mrb[16].mxu1 %v1276_v31 }
  0x50   : > { %1177 = vmatprep.mubr.msk.bf16.mxu0 %vm588_vm0, %v1277_v32  ;;  %1185 = vmatprep.mubr.msk.bf16.mxu1 %vm588_vm0, %v1279_v33 }
  0x57   : > { %714 = vmatmul.mubr.bf16.gmra.mrb[20].mxu0 %v1281_v34  ;;  %778 = vmatmul.mubr.bf16.gmra.mrb[20].mxu1 %v1282_v35 }
  0x58   : > { %1178 = vmatprep.mubr.msk.bf16.mxu0 %vm588_vm0, %v1283_v36  ;;  %1186 = vmatprep.mubr.msk.bf16.mxu1 %vm588_vm0, %v1285_v37 }
  0x5f   : > { %722 = vmatmul.mubr.bf16.gmra.mrb[24].mxu0 %v1287_v38  ;;  %786 = vmatmul.mubr.bf16.gmra.mrb[24].mxu1 %v1288_v39 }
  0x60   : > { %1179 = vmatprep.mubr.msk.bf16.mxu0 %vm588_vm0, %v1289_v40  ;;  %1187 = vmatprep.mubr.msk.bf16.mxu1 %vm588_vm0, %v1291_v41 }
  0x67   : > { %730 = vmatmul.mubr.bf16.gmra.mrb[28].mxu0 %v1293_v42  ;;  %794 = vmatmul.mubr.bf16.gmra.mrb[28].mxu1 %v1294_v43 }
 0x102   : > { %v675_v45 = vpop.f32.mrb[0].mxu0  ;;  %v739_v46 = vpop.f32.mrb[0].mxu1 }
 0x103   : > { %v908_v47 = vadd.f32 %v1449_v44, %v675_v45  ;;  %v924_v48 = vadd.f32 %v1449_v44, %v739_v46  ;;  %v677_v49 = vpop.f32.mrb[1].mxu0  ;;  %v741_v50 = vpop.f32.mrb[1].mxu1 }
 0x104   : > { %v678_v51 = vpop.f32.mrb[2].mxu0  ;;  %v742_v52 = vpop.f32.mrb[2].mxu1 }
 0x105   : > { %v940_v53 = vmax.f32 %v908_v47, 0.0  ;;  %v956_v54 = vmax.f32 %v924_v48, 0.0  ;;  %v909_v55 = vadd.f32 %v1449_v44, %v678_v51  ;;  %v925_v56 = vadd.f32 %v1449_v44, %v742_v52  ;;  %v680_v57 = vpop.f32.mrb[3].mxu0  ;;  %v744_v58 = vpop.f32.mrb[3].mxu1 }
 0x107   : > { %972 = vst [vmem:[%s1458_s22] sm:$0xff] %v940_v53  ;;  %988 = vst [vmem:[%s1458_s22 + $0x80] sm:$0xff] %v956_v54  ;;  %v941_v59 = vmax.f32 %v909_v55, 0.0  ;;  %v957_v60 = vmax.f32 %v925_v56, 0.0 }
 0x109   : > { %973 = vst [vmem:[%s1458_s22 + $0x8] sm:$0xff] %v941_v59  ;;  %989 = vst [vmem:[%s1458_s22 + $0x88] sm:$0xff] %v957_v60 }
 0x10a   : > { %v683_v61 = vpop.f32.mrb[4].mxu0  ;;  %v747_v62 = vpop.f32.mrb[4].mxu1 }
 0x10b   : > { %v910_v63 = vadd.f32 %v1449_v44, %v683_v61  ;;  %v926_v0 = vadd.f32 %v1449_v44, %v747_v62  ;;  %v685_v1 = vpop.f32.mrb[5].mxu0  ;;  %v749_v2 = vpop.f32.mrb[5].mxu1 }
 0x10c   : > { %v686_v3 = vpop.f32.mrb[6].mxu0  ;;  %v750_v4 = vpop.f32.mrb[6].mxu1 }
 0x10d   : > { %v942_v5 = vmax.f32 %v910_v63, 0.0  ;;  %v958_v6 = vmax.f32 %v926_v0, 0.0  ;;  %v911_v7 = vadd.f32 %v1449_v44, %v686_v3  ;;  %v927_v8 = vadd.f32 %v1449_v44, %v750_v4  ;;  %v688_v9 = vpop.f32.mrb[7].mxu0  ;;  %v752_v10 = vpop.f32.mrb[7].mxu1 }
 0x10f   : > { %974 = vst [vmem:[%s1458_s22 + $0x10] sm:$0xff] %v942_v5  ;;  %990 = vst [vmem:[%s1458_s22 + $0x90] sm:$0xff] %v958_v6  ;;  %v943_v11 = vmax.f32 %v911_v7, 0.0  ;;  %v959_v12 = vmax.f32 %v927_v8, 0.0 }
 0x111   : > { %975 = vst [vmem:[%s1458_s22 + $0x18] sm:$0xff] %v943_v11  ;;  %991 = vst [vmem:[%s1458_s22 + $0x98] sm:$0xff] %v959_v12 }
 0x112   : > { %v691_v13 = vpop.f32.mrb[8].mxu0  ;;  %v755_v14 = vpop.f32.mrb[8].mxu1 }
 0x113   : > { %v912_v15 = vadd.f32 %v1449_v44, %v691_v13  ;;  %v928_v16 = vadd.f32 %v1449_v44, %v755_v14  ;;  %v693_v17 = vpop.f32.mrb[9].mxu0  ;;  %v757_v18 = vpop.f32.mrb[9].mxu1 }
 0x114   : > { %v694_v19 = vpop.f32.mrb[10].mxu0  ;;  %v758_v20 = vpop.f32.mrb[10].mxu1 }
 0x115   : > { %v944_v21 = vmax.f32 %v912_v15, 0.0  ;;  %v960_v22 = vmax.f32 %v928_v16, 0.0  ;;  %v913_v23 = vadd.f32 %v1449_v44, %v694_v19  ;;  %v929_v24 = vadd.f32 %v1449_v44, %v758_v20  ;;  %v696_v25 = vpop.f32.mrb[11].mxu0  ;;  %v760_v26 = vpop.f32.mrb[11].mxu1 }
 0x117   : > { %976 = vst [vmem:[%s1458_s22 + $0x20] sm:$0xff] %v944_v21  ;;  %992 = vst [vmem:[%s1458_s22 + $0xa0] sm:$0xff] %v960_v22  ;;  %v945_v27 = vmax.f32 %v913_v23, 0.0  ;;  %v961_v28 = vmax.f32 %v929_v24, 0.0 }
 0x119   : > { %977 = vst [vmem:[%s1458_s22 + $0x28] sm:$0xff] %v945_v27  ;;  %993 = vst [vmem:[%s1458_s22 + $0xa8] sm:$0xff] %v961_v28 }
 0x11a   : > { %v699_v29 = vpop.f32.mrb[12].mxu0  ;;  %v763_v30 = vpop.f32.mrb[12].mxu1 }
 0x11b   : > { %v914_v31 = vadd.f32 %v1449_v44, %v699_v29  ;;  %v930_v32 = vadd.f32 %v1449_v44, %v763_v30  ;;  %v701_v33 = vpop.f32.mrb[13].mxu0  ;;  %v765_v34 = vpop.f32.mrb[13].mxu1 }
 0x11c   : > { %v702_v35 = vpop.f32.mrb[14].mxu0  ;;  %v766_v36 = vpop.f32.mrb[14].mxu1 }
 0x11d   : > { %v946_v37 = vmax.f32 %v914_v31, 0.0  ;;  %v962_v38 = vmax.f32 %v930_v32, 0.0  ;;  %v915_v39 = vadd.f32 %v1449_v44, %v702_v35  ;;  %v931_v40 = vadd.f32 %v1449_v44, %v766_v36  ;;  %v704_v41 = vpop.f32.mrb[15].mxu0  ;;  %v768_v42 = vpop.f32.mrb[15].mxu1 }
 0x11f   : > { %978 = vst [vmem:[%s1458_s22 + $0x30] sm:$0xff] %v946_v37  ;;  %994 = vst [vmem:[%s1458_s22 + $0xb0] sm:$0xff] %v962_v38  ;;  %v947_v43 = vmax.f32 %v915_v39, 0.0  ;;  %v963_v45 = vmax.f32 %v931_v40, 0.0 }
 0x121   : > { %979 = vst [vmem:[%s1458_s22 + $0x38] sm:$0xff] %v947_v43  ;;  %995 = vst [vmem:[%s1458_s22 + $0xb8] sm:$0xff] %v963_v45 }
 0x122   : > { %v707_v46 = vpop.f32.mrb[16].mxu0  ;;  %v771_v47 = vpop.f32.mrb[16].mxu1 }
 0x123   : > { %v916_v48 = vadd.f32 %v1449_v44, %v707_v46  ;;  %v932_v49 = vadd.f32 %v1449_v44, %v771_v47  ;;  %v709_v50 = vpop.f32.mrb[17].mxu0  ;;  %v773_v51 = vpop.f32.mrb[17].mxu1 }
 0x124   : > { %v710_v52 = vpop.f32.mrb[18].mxu0  ;;  %v774_v53 = vpop.f32.mrb[18].mxu1 }
 0x125   : > { %v948_v54 = vmax.f32 %v916_v48, 0.0  ;;  %v964_v55 = vmax.f32 %v932_v49, 0.0  ;;  %v917_v56 = vadd.f32 %v1449_v44, %v710_v52  ;;  %v933_v57 = vadd.f32 %v1449_v44, %v774_v53  ;;  %v712_v58 = vpop.f32.mrb[19].mxu0  ;;  %v776_v59 = vpop.f32.mrb[19].mxu1 }
 0x127   : > { %980 = vst [vmem:[%s1458_s22 + $0x40] sm:$0xff] %v948_v54  ;;  %996 = vst [vmem:[%s1458_s22 + $0xc0] sm:$0xff] %v964_v55  ;;  %v949_v60 = vmax.f32 %v917_v56, 0.0  ;;  %v965_v61 = vmax.f32 %v933_v57, 0.0 }
 0x129   : > { %981 = vst [vmem:[%s1458_s22 + $0x48] sm:$0xff] %v949_v60  ;;  %997 = vst [vmem:[%s1458_s22 + $0xc8] sm:$0xff] %v965_v61 }
 0x12a   : > { %v715_v62 = vpop.f32.mrb[20].mxu0  ;;  %v779_v63 = vpop.f32.mrb[20].mxu1 }
 0x12b   : > { %v918_v0 = vadd.f32 %v1449_v44, %v715_v62  ;;  %v934_v1 = vadd.f32 %v1449_v44, %v779_v63  ;;  %v717_v2 = vpop.f32.mrb[21].mxu0  ;;  %v781_v3 = vpop.f32.mrb[21].mxu1 }
 0x12c   : > { %v718_v4 = vpop.f32.mrb[22].mxu0  ;;  %v782_v5 = vpop.f32.mrb[22].mxu1 }
 0x12d   : > { %v950_v6 = vmax.f32 %v918_v0, 0.0  ;;  %v966_v7 = vmax.f32 %v934_v1, 0.0  ;;  %v919_v8 = vadd.f32 %v1449_v44, %v718_v4  ;;  %v935_v9 = vadd.f32 %v1449_v44, %v782_v5  ;;  %v720_v10 = vpop.f32.mrb[23].mxu0  ;;  %v784_v11 = vpop.f32.mrb[23].mxu1 }
 0x12f   : > { %982 = vst [vmem:[%s1458_s22 + $0x50] sm:$0xff] %v950_v6  ;;  %998 = vst [vmem:[%s1458_s22 + $0xd0] sm:$0xff] %v966_v7  ;;  %v951_v12 = vmax.f32 %v919_v8, 0.0  ;;  %v967_v13 = vmax.f32 %v935_v9, 0.0 }
 0x131   : > { %983 = vst [vmem:[%s1458_s22 + $0x58] sm:$0xff] %v951_v12  ;;  %999 = vst [vmem:[%s1458_s22 + $0xd8] sm:$0xff] %v967_v13 }
 0x132   : > { %v723_v14 = vpop.f32.mrb[24].mxu0  ;;  %v787_v15 = vpop.f32.mrb[24].mxu1 }
 0x133   : > { %v920_v16 = vadd.f32 %v1449_v44, %v723_v14  ;;  %v936_v17 = vadd.f32 %v1449_v44, %v787_v15  ;;  %v725_v18 = vpop.f32.mrb[25].mxu0  ;;  %v789_v19 = vpop.f32.mrb[25].mxu1 }
 0x134   : > { %v726_v20 = vpop.f32.mrb[26].mxu0  ;;  %v790_v21 = vpop.f32.mrb[26].mxu1 }
 0x135   : > { %v952_v22 = vmax.f32 %v920_v16, 0.0  ;;  %v968_v23 = vmax.f32 %v936_v17, 0.0  ;;  %v921_v24 = vadd.f32 %v1449_v44, %v726_v20  ;;  %v937_v25 = vadd.f32 %v1449_v44, %v790_v21  ;;  %v728_v26 = vpop.f32.mrb[27].mxu0  ;;  %v792_v27 = vpop.f32.mrb[27].mxu1 }
 0x137   : > { %984 = vst [vmem:[%s1458_s22 + $0x60] sm:$0xff] %v952_v22  ;;  %1000 = vst [vmem:[%s1458_s22 + $0xe0] sm:$0xff] %v968_v23  ;;  %v953_v28 = vmax.f32 %v921_v24, 0.0  ;;  %v969_v29 = vmax.f32 %v937_v25, 0.0 }
 0x139   : > { %985 = vst [vmem:[%s1458_s22 + $0x68] sm:$0xff] %v953_v28  ;;  %1001 = vst [vmem:[%s1458_s22 + $0xe8] sm:$0xff] %v969_v29 }
 0x13a   : > { %v731_v30 = vpop.f32.mrb[28].mxu0  ;;  %v795_v31 = vpop.f32.mrb[28].mxu1 }
 0x13b   : > { %v922_v32 = vadd.f32 %v1449_v44, %v731_v30  ;;  %v938_v33 = vadd.f32 %v1449_v44, %v795_v31  ;;  %v733_v34 = vpop.f32.mrb[29].mxu0  ;;  %v797_v35 = vpop.f32.mrb[29].mxu1 }
 0x13c   : > { %v734_v36 = vpop.f32.mrb[30].mxu0  ;;  %v798_v37 = vpop.f32.mrb[30].mxu1 }
 0x13d   : > { %v954_v38 = vmax.f32 %v922_v32, 0.0  ;;  %v970_v39 = vmax.f32 %v938_v33, 0.0  ;;  %v923_v40 = vadd.f32 %v1449_v44, %v734_v36  ;;  %v939_v41 = vadd.f32 %v1449_v44, %v798_v37  ;;  %v736_v42 = vpop.f32.mrb[31].mxu0  ;;  %v800_v43 = vpop.f32.mrb[31].mxu1 }
 0x13f   : > { %986 = vst [vmem:[%s1458_s22 + $0x70] sm:$0xff] %v954_v38  ;;  %1002 = vst [vmem:[%s1458_s22 + $0xf0] sm:$0xff] %v970_v39  ;;  %v955_v45 = vmax.f32 %v923_v40, 0.0  ;;  %v971_v46 = vmax.f32 %v939_v41, 0.0 }
 0x141   : > { %987 = vst [vmem:[%s1458_s22 + $0x78] sm:$0xff] %v955_v45  ;;  %1003 = vst [vmem:[%s1458_s22 + $0xf8] sm:$0xff] %v971_v46 }
 0x142 PF: > { %s13_s14 = sadd.s32 1, %s1317_s14   ;;  %s1535_s12 = smov %s1313_s13 }
 0x143   : > { %p10_p5 = scmp.ge.s32.totalorder %s13_s14, 4   ;;  %s1536_s13 = smov %s1538_s15 }
 0x145   :  { %12 = sbr.rel (!%p10_p5) target bundleno = 2 (0x2), region = 76 }

// kernel: densenet_forward.12
= control target key start
LH: loop header
LB: loop body
LE: loop exit
PB: predicated region body
PF: predicated region fallthrough
CT: control target
= control target key end

     0   :  { %v171_v22 = vlaneseq  ;;  %vm807_vm0 = vcmask 523264   ;;  %s2037_s1 = inlined_call_operand.vmem [shape: bf16[576,128], index: 1, kind: input, shape index: {}]   ;;  %s2038_s0 = inlined_call_operand.vmem [shape: bf16[128,576], index: 0, kind: input, shape index: {}]   ;;  %s2039_s3 = inlined_call_operand.vmem [shape: f32[1,576], index: 3, kind: input, shape index: {}]   ;;  %s2040_s4 = inlined_call_operand.vmem [shape: f32[1,576], index: 4, kind: input, shape index: {}]   ;;  %s2041_s2 = inlined_call_operand.vmem [shape: f32[1,128], index: 2, kind: input, shape index: {}]   ;;  %s2042_s5 = inlined_call_operand.vmem [shape: f32[128,128], index: 5, kind: output, shape index: {}]  }
   0x1   :  { %v1434_v0 = vld [vmem:[%s2037_s1 + $0x40] sm:$0xff]   ;;  %v1438_v4 = vld [vmem:[%s2037_s1 + $0x48] sm:$0xff]   ;;  %v1442_v8 = vld [vmem:[%s2037_s1 + $0x50] sm:$0xff]  }
   0x2   :  { %v1435_v1 = vld [vmem:[%s2037_s1 + $0xc0] sm:$0xff]   ;;  %1262 = vmatprep.subr.bf16.mxu0 %v1434_v0  ;;  %v1439_v5 = vld [vmem:[%s2037_s1 + $0xc8] sm:$0xff]   ;;  %v1443_v9 = vld [vmem:[%s2037_s1 + $0xd0] sm:$0xff]   ;;  %v1578_v27 = vshrl.u32 %v171_v22, 7 }
   0x3   :  { %v1436_v2 = vld [vmem:[%s2037_s1] sm:$0xff]   ;;  %1326 = vmatprep.subr.bf16.mxu1 %v1435_v1  ;;  %v1440_v6 = vld [vmem:[%s2037_s1 + $0x8] sm:$0xff]   ;;  %v1444_v10 = vld [vmem:[%s2037_s1 + $0x10] sm:$0xff]  }
   0x4   :  { %v1437_v3 = vld [vmem:[%s2037_s1 + $0x80] sm:$0xff]   ;;  %1263 = vmatpush3.bf16.msra.mxu0 %v1436_v2  ;;  %v1441_v7 = vld [vmem:[%s2037_s1 + $0x88] sm:$0xff]   ;;  %v1445_v11 = vld [vmem:[%s2037_s1 + $0x90] sm:$0xff]   ;;  %v177_v32 = vsub.s32 1, %v1578_v27  ;;  %v185_v34 = vsub.s32 3, %v1578_v27  ;;  %v173_v36 = vsub.s32 0, %v1578_v27 }
   0x5   :  { %1327 = vmatpush3.bf16.msra.mxu1 %v1437_v3  ;;  %1264 = vmatprep.subr.bf16.mxu0 %v1438_v4  ;;  %v1446_v12 = vld [vmem:[%s2037_s1 + $0x58] sm:$0xff]   ;;  %v1450_v16 = vld [vmem:[%s2037_s1 + $0x60] sm:$0xff]   ;;  %v1454_v20 = vld [vmem:[%s2037_s1 + $0x68] sm:$0xff]   ;;  %v181_v40 = vsub.s32 2, %v1578_v27  ;;  %v189_v41 = vsub.s32 4, %v1578_v27 }
   0x6   :  { %1328 = vmatprep.subr.bf16.mxu1 %v1439_v5  ;;  %v1447_v13 = vld [vmem:[%s2037_s1 + $0xd8] sm:$0xff]   ;;  %v1451_v17 = vld [vmem:[%s2037_s1 + $0xe0] sm:$0xff]   ;;  %v1455_v21 = vld [vmem:[%s2037_s1 + $0xe8] sm:$0xff]  }
   0x7   :  { %v1448_v14 = vld [vmem:[%s2037_s1 + $0x18] sm:$0xff]   ;;  %v1452_v18 = vld [vmem:[%s2037_s1 + $0x20] sm:$0xff]   ;;  %v1456_v23 = vld [vmem:[%s2037_s1 + $0x28] sm:$0xff]  }
   0x8   :  { %1265 = vmatpush3.bf16.msra.mxu0 %v1440_v6  ;;  %v1449_v15 = vld [vmem:[%s2037_s1 + $0x98] sm:$0xff]   ;;  %v1453_v19 = vld [vmem:[%s2037_s1 + $0xa0] sm:$0xff]   ;;  %v1457_v24 = vld [vmem:[%s2037_s1 + $0xa8] sm:$0xff]  }
   0x9   :  { %1329 = vmatpush3.bf16.msra.mxu1 %v1441_v7  ;;  %1266 = vmatprep.subr.bf16.mxu0 %v1442_v8  ;;  %v1458_v25 = vld [vmem:[%s2037_s1 + $0x70] sm:$0xff]   ;;  %v1462_v30 = vld [vmem:[%s2037_s1 + $0x78] sm:$0xff]   ;;  %v41_v37 = vld [vmem:[%s2038_s0] sm:$0xff] }
   0xa   :  { %1330 = vmatprep.subr.bf16.mxu1 %v1443_v9  ;;  %v1459_v26 = vld [vmem:[%s2037_s1 + $0xf0] sm:$0xff]   ;;  %v1463_v31 = vld [vmem:[%s2037_s1 + $0xf8] sm:$0xff]   ;;  %v1610_v39 = vld [vmem:[%s2039_s3] sm:$0x1f]  ;;  %v89_v42 = vunpack.c.l.bf16 %v41_v37  ;;  %v90_v43 = vunpack.c.h.bf16 %v41_v37 }
   0xb   :  { %v1460_v28 = vld [vmem:[%s2037_s1 + $0x30] sm:$0xff]   ;;  %v1464_v33 = vld [vmem:[%s2037_s1 + $0x38] sm:$0xff]   ;;  %v1617_v46 = vld [vmem:[%s2040_s4] sm:$0x1f]  ;;  %v1626_v49 = vrot.slane %v1610_v39, %v177_v32  ;;  %v1637_v56 = vrot.slane %v1610_v39, %v185_v34  ;;  %v1645_v60 = vrot.slane %v1610_v39, %v173_v36  ;;  %v1654_v0 = vrot.slane %v1610_v39, %v181_v40 }
   0xc   :  { %1267 = vmatpush3.bf16.msra.mxu0 %v1444_v10  ;;  %v1461_v29 = vld [vmem:[%s2037_s1 + $0xb0] sm:$0xff]   ;;  %v1465_v35 = vld [vmem:[%s2037_s1 + $0xb8] sm:$0xff]   ;;  %v42_v47 = vld [vmem:[%s2038_s0 + $0x8] sm:$0xff]  ;;  %v1629_v50 = vrot.slane %v1617_v46, %v177_v32  ;;  %v1640_v57 = vrot.slane %v1617_v46, %v185_v34  ;;  %v1648_v61 = vrot.slane %v1617_v46, %v173_v36  ;;  %v1657_v1 = vrot.slane %v1617_v46, %v181_v40 }
   0xd   :  { %1331 = vmatpush3.bf16.msra.mxu1 %v1445_v11  ;;  %1268 = vmatprep.subr.bf16.mxu0 %v1446_v12  ;;  %v44_v38 = vld [vmem:[%s2038_s0 + $0x14] sm:$0xff]  ;;  %v45_v48 = vld [vmem:[%s2038_s0 + $0x1c] sm:$0xff]  ;;  %v91_v51 = vunpack.c.l.bf16 %v42_v47  ;;  %v92_v52 = vunpack.c.h.bf16 %v42_v47  ;;  %v197_v58 = vmul.f32 %v1626_v49, %v90_v43  ;;  %v196_v4 = vmul.f32 %v1645_v60, %v89_v42  ;;  %v47_v10 = vld [vmem:[%s2038_s0 + $0x28] sm:$0xff] }
   0xe   :  { %1332 = vmatprep.subr.bf16.mxu1 %v1447_v13  ;;  %v94_v44 = vunpack.c.l.bf16 %v44_v38  ;;  %v95_v45 = vunpack.c.h.bf16 %v44_v38  ;;  %v1634_v53 = vld [vmem:[%s2037_s1 + $0x100] sm:$0xff]   ;;  %v96_v54 = vunpack.c.l.bf16 %v45_v48  ;;  %v97_v55 = vunpack.c.h.bf16 %v45_v48 }
   0xf   :  { %v199_v62 = vmul.f32 %v1637_v56, %v92_v52  ;;  %v304_v2 = vadd.f32 %v1629_v50, %v197_v58  ;;  %v198_v8 = vmul.f32 %v1654_v0, %v91_v51  ;;  %v303_v13 = vadd.f32 %v1648_v61, %v196_v4 }
  0x10   :  { %1269 = vmatpush3.bf16.msra.mxu0 %v1448_v14  ;;  %v202_v59 = vmul.f32 %v1626_v49, %v95_v45  ;;  %v204_v63 = vmul.f32 %v1637_v56, %v97_v55  ;;  %v201_v5 = vmul.f32 %v1645_v60, %v94_v44  ;;  %v203_v9 = vmul.f32 %v1654_v0, %v96_v54  ;;  %v53_v54 = vld [vmem:[%s2038_s0 + $0x50] sm:$0xff] }
  0x11   :  { %1333 = vmatpush3.bf16.msra.mxu1 %v1449_v15  ;;  %1270 = vmatprep.subr.bf16.mxu0 %v1450_v16  ;;  %v306_v6 = vadd.f32 %v1640_v57, %v199_v62  ;;  %v384_v11 = vmax.f32 %v304_v2, 0.0  ;;  %v50_v15 = vld [vmem:[%s2038_s0 + $0x3c] sm:$0xff]  ;;  %v99_v38 = vunpack.c.l.bf16 %v47_v10 }
  0x12   :  { %1334 = vmatprep.subr.bf16.mxu1 %v1451_v17  ;;  %v309_v3 = vadd.f32 %v1629_v50, %v202_v59  ;;  %v311_v7 = vadd.f32 %v1640_v57, %v204_v63  ;;  %v308_v14 = vadd.f32 %v1648_v61, %v201_v5  ;;  %v104_v40 = vunpack.c.l.bf16 %v50_v15  ;;  %v1468_v63 = vld [vmem:[%s2037_s1 + $0x110] sm:$0xff]  }
  0x13   :  { %v386_v16 = vmax.f32 %v306_v6, 0.0  ;;  %v206_v48 = vmul.f32 %v1645_v60, %v99_v38 }
  0x14   :  { %1271 = vmatpush3.bf16.msra.mxu0 %v1452_v18  ;;  %v389_v12 = vmax.f32 %v309_v3, 0.0  ;;  %v391_v17 = vmax.f32 %v311_v7, 0.0  ;;  %v305_v18 = vadd.f32 %v1657_v1, %v198_v8  ;;  %v211_v51 = vmul.f32 %v1645_v60, %v104_v40 }
  0x15   :  { %1335 = vmatpush3.bf16.msra.mxu1 %v1453_v19  ;;  %1272 = vmatprep.subr.bf16.mxu0 %v1454_v20  ;;  %v310_v19 = vadd.f32 %v1657_v1, %v203_v9  ;;  %v48_v20 = vld [vmem:[%s2038_s0 + $0x30] sm:$0xff]  ;;  %v313_v3 = vadd.f32 %v1648_v61, %v206_v48  ;;  %v110_v9 = vunpack.c.h.bf16 %v53_v54 }
  0x16   :  { %1336 = vmatprep.subr.bf16.mxu1 %v1455_v21  ;;  %v51_v21 = vld [vmem:[%s2038_s0 + $0x44] sm:$0xff]  ;;  %v464_v22 = vpack.c.bf16 %v389_v12, %v384_v11  ;;  %v101_v45 = vunpack.c.l.bf16 %v48_v20  ;;  %v318_v4 = vadd.f32 %v1648_v61, %v211_v51  ;;  %v57_v11 = vld [vmem:[%s2038_s0 + $0x6c] sm:$0xff] }
  0x17   :  { %v107_v34 = vunpack.c.h.bf16 %v51_v21  ;;  %v106_v52 = vunpack.c.l.bf16 %v51_v21 }
  0x18   :  { %1273 = vmatpush3.bf16.msra.mxu0 %v1456_v23  ;;  %v383_v23 = vmax.f32 %v303_v13, 0.0  ;;  %864 = vmatprep.mubr.bf16.mxu0 %v464_v22  ;;  %v208_v62 = vmul.f32 %v1654_v0, %v101_v45  ;;  %v393_v13 = vmax.f32 %v313_v3, 0.0  ;;  %v62_v45 = vld [vmem:[%s2038_s0 + $0x8c] sm:$0xff] }
  0x19   :  { %1337 = vmatpush3.bf16.msra.mxu1 %v1457_v24  ;;  %1274 = vmatprep.subr.bf16.mxu0 %v1458_v25  ;;  %v388_v24 = vmax.f32 %v308_v14, 0.0  ;;  %v100_v25 = vunpack.c.h.bf16 %v47_v10  ;;  %v214_v44 = vmul.f32 %v1637_v56, %v107_v34  ;;  %v213_v5 = vmul.f32 %v1654_v0, %v106_v52  ;;  %v54_v10 = vld [vmem:[%s2038_s0 + $0x58] sm:$0xff] }
  0x1a   :  { %1338 = vmatprep.subr.bf16.mxu1 %v1459_v26  ;;  %v466_v26 = vpack.c.bf16 %v391_v17, %v386_v16  ;;  %v315_v8 = vadd.f32 %v1657_v1, %v208_v62  ;;  %v398_v14 = vmax.f32 %v318_v4, 0.0  ;;  %v112_v22 = vunpack.c.h.bf16 %v54_v10  ;;  %v59_v34 = vld [vmem:[%s2038_s0 + $0x78] sm:$0xff]  ;;  %v60_v62 = vld [vmem:[%s2038_s0 + $0x80] sm:$0xff] }
  0x1b   :  { %v207_v32 = vmul.f32 %v1626_v49, %v100_v25  ;;  %v321_v59 = vadd.f32 %v1640_v57, %v214_v44  ;;  %v120_v52 = vunpack.c.h.bf16 %v59_v34 }
  0x1c   :  { %1275 = vmatpush3.bf16.msra.mxu0 %v1460_v28  ;;  %v385_v28 = vmax.f32 %v305_v18, 0.0  ;;  %961 = vmatprep.mubr.bf16.mxu1 %v466_v26  ;;  %v395_v17 = vmax.f32 %v315_v8, 0.0 }
  0x1d   :  { %1339 = vmatpush3.bf16.msra.mxu1 %v1461_v29  ;;  %1276 = vmatprep.subr.bf16.mxu0 %v1462_v30  ;;  %v390_v29 = vmax.f32 %v310_v19, 0.0  ;;  %v105_v30 = vunpack.c.h.bf16 %v50_v15  ;;  %v314_v42 = vadd.f32 %v1629_v50, %v207_v32  ;;  %v401_v7 = vmax.f32 %v321_v59, 0.0 }
  0x1e   :  { %1340 = vmatprep.subr.bf16.mxu1 %v1463_v31  ;;  %v463_v31 = vpack.c.bf16 %v388_v24, %v383_v23  ;;  %v320_v15 = vadd.f32 %v1657_v1, %v213_v5  ;;  %v217_v19 = vmul.f32 %v1626_v49, %v110_v9  ;;  %v117_v23 = vunpack.c.h.bf16 %v57_v11  ;;  %v1469_v24 = vld [vmem:[%s2037_s1 + $0x118] sm:$0xff]  }
  0x1f   :  { %v465_v36 = vpack.c.bf16 %v390_v29, %v385_v28  ;;  %v212_v37 = vmul.f32 %v1626_v49, %v105_v30  ;;  %v394_v55 = vmax.f32 %v314_v42, 0.0  ;;  %v109_v28 = vunpack.c.l.bf16 %v53_v54 }
  0x20   :  { %1277 = vmatpush3.bf16.msra.mxu0 %v1464_v33  ;;  %v102_v33 = vunpack.c.h.bf16 %v48_v20  ;;  %v468_v20 = vpack.c.bf16 %v398_v14, %v393_v13  ;;  %v400_v21 = vmax.f32 %v320_v15, 0.0  ;;  %v324_v26 = vadd.f32 %v1629_v50, %v217_v19 }
  0x21   :  { %1341 = vmatpush3.bf16.msra.mxu1 %v1465_v35  ;;  %1402 = vmatprep.subr.bf16.mxu0 %v1634_v53  ;;  %v1467_v35 = vld [vmem:[%s2037_s1 + $0x108] sm:$0xff]   ;;  %v319_v47 = vadd.f32 %v1629_v50, %v212_v37  ;;  %v224_v32 = vmul.f32 %v1637_v56, %v117_v23  ;;  %v216_v37 = vmul.f32 %v1645_v60, %v109_v28  ;;  %v125_v5 = vunpack.c.h.bf16 %v62_v45 }
  0x22   :  { %1426 = vmatprep.subr.bf16.mxu1 %v1634_v53  ;;  %v209_v43 = vmul.f32 %v1637_v56, %v102_v33  ;;  %v470_v30 = vpack.c.bf16 %v400_v21, %v395_v17  ;;  %v111_v33 = vunpack.c.l.bf16 %v54_v10  ;;  %v227_v8 = vmul.f32 %v1626_v49, %v120_v52  ;;  %v65_v21 = vld [vmem:[%s2038_s0 + $0xa0] sm:$0xff] }
  0x23   :  { %865 = vmatmul.mubr.bf16.vlgmr.msra.gmra.mrb[0].mxu0 %v463_v31  ;;  %v399_v2 = vmax.f32 %v319_v47, 0.0  ;;  %v219_v31 = vmul.f32 %v1637_v56, %v112_v22  ;;  %v331_v42 = vadd.f32 %v1640_v57, %v224_v32  ;;  %v323_v48 = vadd.f32 %v1648_v61, %v216_v37 }
  0x24   :  { %962 = vmatmul.mubr.bf16.vlgmr.msra.gmra.mrb[0].mxu1 %v465_v36  ;;  %1403 = vmatpush3.bf16.msra.mxu0 %v1634_v53  ;;  %v316_v58 = vadd.f32 %v1640_v57, %v209_v43  ;;  %v404_v36 = vmax.f32 %v324_v26, 0.0  ;;  %v116_v43 = vunpack.c.l.bf16 %v57_v11  ;;  %v218_v44 = vmul.f32 %v1654_v0, %v111_v33 }
  0x25   :  { %1430 = vmatpush3.bf16.msra.mxu1 %v1634_v53  ;;  %1404 = vmatprep.subr.bf16.mxu0 %v1467_v35  ;;  %v56_v53 = vld [vmem:[%s2038_s0 + $0x64] sm:$0xff]  ;;  %v469_v12 = vpack.c.bf16 %v399_v2, %v394_v55  ;;  %v326_v40 = vadd.f32 %v1640_v57, %v219_v31  ;;  %v411_v55 = vmax.f32 %v331_v42, 0.0  ;;  %v403_v3 = vmax.f32 %v323_v48, 0.0  ;;  %v68_v31 = vld [vmem:[%s2038_s0 + $0xb4] sm:$0xff] }
  0x26   :  { %1427 = vmatprep.subr.bf16.mxu1 %v1467_v35  ;;  %v396_v6 = vmax.f32 %v316_v58, 0.0  ;;  %v115_v18 = vunpack.c.h.bf16 %v56_v53  ;;  %v114_v29 = vunpack.c.l.bf16 %v56_v53  ;;  %v223_v58 = vmul.f32 %v1654_v0, %v116_v43  ;;  %v69_v43 = vld [vmem:[%s2038_s0 + $0xbc] sm:$0xff] }
  0x27   :  { %872 = vmatprep.mubr.bf16.mxu0 %v469_v12  ;;  %v406_v54 = vmax.f32 %v326_v40, 0.0  ;;  %v325_v59 = vadd.f32 %v1657_v1, %v218_v44  ;;  %v232_v10 = vmul.f32 %v1626_v49, %v125_v5  ;;  %v122_v11 = vunpack.c.h.bf16 %v60_v62 }
  0x28   :  { %1405 = vmatpush3.bf16.msra.mxu0 %v1467_v35  ;;  %v471_v16 = vpack.c.bf16 %v401_v7, %v396_v6  ;;  %v222_v25 = vmul.f32 %v1626_v49, %v115_v18  ;;  %v221_v38 = vmul.f32 %v1645_v60, %v114_v29  ;;  %v330_v6 = vadd.f32 %v1657_v1, %v223_v58 }
  0x29   :  { %1431 = vmatpush3.bf16.msra.mxu1 %v1467_v35  ;;  %1406 = vmatprep.subr.bf16.mxu0 %v1468_v63  ;;  %v476_v53 = vpack.c.bf16 %v411_v55, %v406_v54  ;;  %v405_v7 = vmax.f32 %v325_v59, 0.0  ;;  %v334_v14 = vadd.f32 %v1629_v50, %v227_v8  ;;  %v119_v15 = vunpack.c.l.bf16 %v59_v34 }
  0x2a   :  { %1428 = vmatprep.subr.bf16.mxu1 %v1468_v63  ;;  %969 = vmatprep.mubr.bf16.mxu1 %v471_v16  ;;  %v329_v35 = vadd.f32 %v1629_v50, %v222_v25  ;;  %v328_v51 = vadd.f32 %v1648_v61, %v221_v38  ;;  %v410_v13 = vmax.f32 %v330_v6, 0.0  ;;  %v124_v16 = vunpack.c.l.bf16 %v62_v45 }
  0x2b   :  { %873 = vmatmul.mubr.bf16.gmra.mrb[4].mxu0 %v468_v20  ;;  %v339_v17 = vadd.f32 %v1629_v50, %v232_v10  ;;  %v229_v18 = vmul.f32 %v1637_v56, %v122_v11  ;;  %v121_v20 = vunpack.c.l.bf16 %v60_v62  ;;  %v414_v23 = vmax.f32 %v334_v14, 0.0 }
  0x2c   :  { %1407 = vmatpush3.bf16.msra.mxu0 %v1468_v63  ;;  %970 = vmatmul.mubr.bf16.gmra.mrb[4].mxu1 %v470_v30  ;;  %v409_v47 = vmax.f32 %v329_v35, 0.0  ;;  %v408_v4 = vmax.f32 %v328_v51, 0.0  ;;  %v475_v22 = vpack.c.bf16 %v410_v13, %v405_v7  ;;  %v231_v25 = vmul.f32 %v1645_v60, %v124_v16 }
  0x2d   :  { %1432 = vmatpush3.bf16.msra.mxu1 %v1468_v63  ;;  %1408 = vmatprep.subr.bf16.mxu0 %v1469_v24  ;;  %v63_v63 = vld [vmem:[%s2038_s0 + $0x94] sm:$0xff]  ;;  %v419_v26 = vmax.f32 %v339_v17, 0.0  ;;  %v336_v28 = vadd.f32 %v1640_v57, %v229_v18  ;;  %v228_v34 = vmul.f32 %v1654_v0, %v121_v20  ;;  %v130_v35 = vunpack.c.h.bf16 %v65_v21  ;;  %v74_v18 = vld [vmem:[%s2038_s0 + $0xdc] sm:$0xff] }
  0x2e   :  { %1429 = vmatprep.subr.bf16.mxu1 %v1469_v24  ;;  %v474_v2 = vpack.c.bf16 %v409_v47, %v404_v36  ;;  %v473_v9 = vpack.c.bf16 %v408_v4, %v403_v3  ;;  %v127_v12 = vunpack.c.h.bf16 %v63_v63  ;;  %977 = vmatprep.mubr.bf16.mxu1 %v476_v53  ;;  %v126_v30 = vunpack.c.l.bf16 %v63_v63  ;;  %v66_v36 = vld [vmem:[%s2038_s0 + $0xa8] sm:$0xff] }
  0x2f   :  { %v338_v33 = vadd.f32 %v1648_v61, %v231_v25  ;;  %v479_v37 = vpack.c.bf16 %v419_v26, %v414_v23  ;;  %v416_v38 = vmax.f32 %v336_v28, 0.0  ;;  %v335_v47 = vadd.f32 %v1657_v1, %v228_v34  ;;  %v72_v23 = vld [vmem:[%s2038_s0 + $0xd0] sm:$0xff] }
  0x30   :  { %1409 = vmatpush3.bf16.msra.mxu0 %v1469_v24  ;;  %880 = vmatprep.mubr.bf16.mxu0 %v474_v2  ;;  %v234_v19 = vmul.f32 %v1637_v56, %v127_v12  ;;  %v233_v42 = vmul.f32 %v1654_v0, %v126_v30  ;;  %v135_v48 = vunpack.c.h.bf16 %v68_v31  ;;  %v237_v54 = vmul.f32 %v1626_v49, %v130_v35 }
  0x31   :  { %1433 = vmatpush3.bf16.msra.mxu1 %v1469_v24  ;;  %v226_v24 = vmul.f32 %v1645_v60, %v119_v15  ;;  %v418_v45 = vmax.f32 %v338_v33, 0.0  ;;  %v132_v55 = vunpack.c.h.bf16 %v66_v36  ;;  %v415_v59 = vmax.f32 %v335_v47, 0.0 }
  0x32   :  { %v341_v29 = vadd.f32 %v1640_v57, %v234_v19  ;;  %v340_v52 = vadd.f32 %v1657_v1, %v233_v42  ;;  %v242_v62 = vmul.f32 %v1626_v49, %v135_v48  ;;  %v137_v63 = vunpack.c.h.bf16 %v69_v43 }
  0x33   :  { %881 = vmatmul.mubr.bf16.gmra.mrb[8].mxu0 %v473_v9  ;;  %v333_v32 = vadd.f32 %v1648_v61, %v226_v24  ;;  %v344_v3 = vadd.f32 %v1629_v50, %v237_v54  ;;  %v239_v4 = vmul.f32 %v1637_v56, %v132_v55  ;;  %v129_v5 = vunpack.c.l.bf16 %v65_v21  ;;  %v71_v9 = vld [vmem:[%s2038_s0 + $0xc8] sm:$0xff] }
  0x34   :  { %978 = vmatmul.mubr.bf16.gmra.mrb[8].mxu1 %v475_v22  ;;  %v421_v40 = vmax.f32 %v341_v29, 0.0  ;;  %888 = vmatprep.mubr.bf16.mxu0 %v479_v37  ;;  %v420_v2 = vmax.f32 %v340_v52, 0.0  ;;  %v349_v53 = vadd.f32 %v1629_v50, %v242_v62  ;;  %v244_v6 = vmul.f32 %v1637_v56, %v137_v63  ;;  %v75_v29 = vld [vmem:[%s2038_s0 + $0xe4] sm:$0xff] }
  0x35   :  { %v413_v44 = vmax.f32 %v333_v32, 0.0  ;;  %v134_v7 = vunpack.c.l.bf16 %v68_v31  ;;  %v131_v8 = vunpack.c.l.bf16 %v66_v36  ;;  %v424_v11 = vmax.f32 %v344_v3, 0.0 }
  0x36   :  { %v481_v51 = vpack.c.bf16 %v421_v40, %v416_v38  ;;  %v480_v10 = vpack.c.bf16 %v420_v2, %v415_v59  ;;  %v346_v12 = vadd.f32 %v1640_v57, %v239_v4  ;;  %v236_v13 = vmul.f32 %v1645_v60, %v129_v5 }
  0x37   :  { %v478_v58 = vpack.c.bf16 %v418_v45, %v413_v44  ;;  %v429_v14 = vmax.f32 %v349_v53, 0.0  ;;  %v351_v15 = vadd.f32 %v1640_v57, %v244_v6  ;;  %v241_v16 = vmul.f32 %v1645_v60, %v134_v7  ;;  %v80_v6 = vld [vmem:[%s2038_s0 + $0x104] sm:$0xff] }
  0x38   :  { %985 = vmatprep.mubr.bf16.mxu1 %v481_v51  ;;  %v136_v17 = vunpack.c.l.bf16 %v69_v43  ;;  %v426_v19 = vmax.f32 %v346_v12, 0.0  ;;  %v343_v20 = vadd.f32 %v1648_v61, %v236_v13  ;;  %v238_v21 = vmul.f32 %v1654_v0, %v131_v8 }
  0x39   :  { %v140_v22 = vunpack.c.h.bf16 %v71_v9  ;;  %v484_v24 = vpack.c.bf16 %v429_v14, %v424_v11  ;;  %v431_v25 = vmax.f32 %v351_v15, 0.0  ;;  %v348_v26 = vadd.f32 %v1648_v61, %v241_v16  ;;  %v78_v11 = vld [vmem:[%s2038_s0 + $0xf8] sm:$0xff]  ;;  %v81_v16 = vld [vmem:[%s2038_s0 + $0x10c] sm:$0xff] }
  0x3a   :  { %v243_v28 = vmul.f32 %v1654_v0, %v136_v17  ;;  %v423_v30 = vmax.f32 %v343_v20, 0.0  ;;  %v345_v31 = vadd.f32 %v1657_v1, %v238_v21  ;;  %v145_v32 = vunpack.c.h.bf16 %v74_v18 }
  0x3b   :  { %889 = vmatmul.mubr.bf16.gmra.mrb[12].mxu0 %v478_v58  ;;  %v247_v33 = vmul.f32 %v1626_v49, %v140_v22  ;;  %v486_v34 = vpack.c.bf16 %v431_v25, %v426_v19  ;;  %v428_v35 = vmax.f32 %v348_v26, 0.0  ;;  %v142_v37 = vunpack.c.h.bf16 %v72_v23  ;;  %v77_v58 = vld [vmem:[%s2038_s0 + $0xf0] sm:$0xff] }
  0x3c   :  { %986 = vmatmul.mubr.bf16.gmra.mrb[12].mxu1 %v480_v10  ;;  %896 = vmatprep.mubr.bf16.mxu0 %v484_v24  ;;  %v350_v36 = vadd.f32 %v1657_v1, %v243_v28  ;;  %v425_v38 = vmax.f32 %v345_v31, 0.0  ;;  %v252_v40 = vmul.f32 %v1626_v49, %v145_v32  ;;  %v147_v43 = vunpack.c.h.bf16 %v75_v29 }
  0x3d   :  { %v354_v42 = vadd.f32 %v1629_v50, %v247_v33  ;;  %993 = vmatprep.mubr.bf16.mxu1 %v486_v34  ;;  %v483_v44 = vpack.c.bf16 %v428_v35, %v423_v30  ;;  %v249_v47 = vmul.f32 %v1637_v56, %v142_v37  ;;  %v139_v48 = vunpack.c.l.bf16 %v71_v9 }
  0x3e   :  { %v430_v45 = vmax.f32 %v350_v36, 0.0  ;;  %v359_v51 = vadd.f32 %v1629_v50, %v252_v40  ;;  %v254_v54 = vmul.f32 %v1637_v56, %v147_v43  ;;  %v144_v55 = vunpack.c.l.bf16 %v74_v18 }
  0x3f   :  { %v434_v52 = vmax.f32 %v354_v42, 0.0  ;;  %v356_v62 = vadd.f32 %v1640_v57, %v249_v47  ;;  %v246_v63 = vmul.f32 %v1645_v60, %v139_v48  ;;  %v141_v2 = vunpack.c.l.bf16 %v72_v23 }
  0x40   :  { %v485_v59 = vpack.c.bf16 %v430_v45, %v425_v38  ;;  %v439_v3 = vmax.f32 %v359_v51, 0.0  ;;  %v361_v4 = vadd.f32 %v1640_v57, %v254_v54  ;;  %v251_v5 = vmul.f32 %v1645_v60, %v144_v55  ;;  %v83_v38 = vld [vmem:[%s2038_s0 + $0x118] sm:$0xff] }
  0x41   :  { %v146_v53 = vunpack.c.l.bf16 %v75_v29  ;;  %v436_v7 = vmax.f32 %v356_v62, 0.0  ;;  %v353_v8 = vadd.f32 %v1648_v61, %v246_v63  ;;  %v248_v9 = vmul.f32 %v1654_v0, %v141_v2  ;;  %v84_v62 = vld [vmem:[%s2038_s0 + $0x120] sm:$0xff] }
  0x42   :  { %v150_v10 = vunpack.c.h.bf16 %v77_v58  ;;  %v489_v12 = vpack.c.bf16 %v439_v3, %v434_v52  ;;  %v441_v13 = vmax.f32 %v361_v4, 0.0  ;;  %v358_v14 = vadd.f32 %v1648_v61, %v251_v5  ;;  %v86_v52 = vld [vmem:[%s2038_s0 + $0x12c] sm:$0xff]  ;;  %v87_v5 = vld [vmem:[%s2038_s0 + $0x134] sm:$0xff] }
  0x43   :  { %897 = vmatmul.mubr.bf16.gmra.mrb[16].mxu0 %v483_v44  ;;  %v253_v15 = vmul.f32 %v1654_v0, %v146_v53  ;;  %v433_v17 = vmax.f32 %v353_v8, 0.0  ;;  %v355_v18 = vadd.f32 %v1657_v1, %v248_v9  ;;  %v155_v19 = vunpack.c.h.bf16 %v80_v6 }
  0x44   :  { %994 = vmatmul.mubr.bf16.gmra.mrb[16].mxu1 %v485_v59  ;;  %v257_v20 = vmul.f32 %v1626_v49, %v150_v10  ;;  %904 = vmatprep.mubr.bf16.mxu0 %v489_v12  ;;  %v491_v21 = vpack.c.bf16 %v441_v13, %v436_v7  ;;  %v438_v22 = vmax.f32 %v358_v14, 0.0  ;;  %v152_v24 = vunpack.c.h.bf16 %v78_v11 }
  0x45   :  { %v360_v23 = vadd.f32 %v1657_v1, %v253_v15  ;;  %v435_v25 = vmax.f32 %v355_v18, 0.0  ;;  %v262_v26 = vmul.f32 %v1626_v49, %v155_v19  ;;  %v157_v29 = vunpack.c.h.bf16 %v81_v16 }
  0x46   :  { %v364_v28 = vadd.f32 %v1629_v50, %v257_v20  ;;  %1001 = vmatprep.mubr.bf16.mxu1 %v491_v21  ;;  %v488_v30 = vpack.c.bf16 %v438_v22, %v433_v17  ;;  %v259_v32 = vmul.f32 %v1637_v56, %v152_v24  ;;  %v149_v33 = vunpack.c.l.bf16 %v77_v58 }
  0x47   :  { %v440_v31 = vmax.f32 %v360_v23, 0.0  ;;  %v369_v34 = vadd.f32 %v1629_v50, %v262_v26  ;;  %v264_v36 = vmul.f32 %v1637_v56, %v157_v29  ;;  %v154_v37 = vunpack.c.l.bf16 %v80_v6 }
  0x48   :  { %v444_v35 = vmax.f32 %v364_v28, 0.0  ;;  %v366_v42 = vadd.f32 %v1640_v57, %v259_v32  ;;  %v256_v43 = vmul.f32 %v1645_v60, %v149_v33  ;;  %v151_v44 = vunpack.c.l.bf16 %v78_v11 }
  0x49   :  { %v490_v40 = vpack.c.bf16 %v440_v31, %v435_v25  ;;  %v449_v45 = vmax.f32 %v369_v34, 0.0  ;;  %v371_v47 = vadd.f32 %v1640_v57, %v264_v36  ;;  %v261_v48 = vmul.f32 %v1645_v60, %v154_v37  ;;  %v43_v25 = vld [vmem:[%s2038_s0 + $0x10] ss:$20 sps:$4 sm:$0xff]  }
  0x4a   :  { %v156_v51 = vunpack.c.l.bf16 %v81_v16  ;;  %v446_v54 = vmax.f32 %v366_v42, 0.0  ;;  %v363_v55 = vadd.f32 %v1648_v61, %v256_v43  ;;  %v258_v58 = vmul.f32 %v1654_v0, %v151_v44 }
  0x4b   :  { %905 = vmatmul.mubr.bf16.gmra.mrb[20].mxu0 %v488_v30  ;;  %v160_v59 = vunpack.c.h.bf16 %v83_v38  ;;  %v494_v63 = vpack.c.bf16 %v449_v45, %v444_v35  ;;  %v451_v2 = vmax.f32 %v371_v47, 0.0  ;;  %v368_v3 = vadd.f32 %v1648_v61, %v261_v48 }
  0x4c   :  { %1002 = vmatmul.mubr.bf16.gmra.mrb[20].mxu1 %v490_v40  ;;  %v263_v4 = vmul.f32 %v1654_v0, %v156_v51  ;;  %v443_v53 = vmax.f32 %v363_v55, 0.0  ;;  %v365_v6 = vadd.f32 %v1657_v1, %v258_v58  ;;  %v165_v7 = vunpack.c.h.bf16 %v86_v52  ;;  %v73_v55 = vld [vmem:[%s2038_s0 + $0xd8] ss:$20 sps:$4 sm:$0xff]  }
  0x4d   :  { %v267_v8 = vmul.f32 %v1626_v49, %v160_v59  ;;  %912 = vmatprep.mubr.bf16.mxu0 %v494_v63  ;;  %v496_v9 = vpack.c.bf16 %v451_v2, %v446_v54  ;;  %v448_v10 = vmax.f32 %v368_v3, 0.0  ;;  %v162_v12 = vunpack.c.h.bf16 %v84_v62 }
  0x4e   :  { %v370_v11 = vadd.f32 %v1657_v1, %v263_v4  ;;  %v445_v13 = vmax.f32 %v365_v6, 0.0  ;;  %v272_v14 = vmul.f32 %v1626_v49, %v165_v7  ;;  %v167_v16 = vunpack.c.h.bf16 %v87_v5 }
  0x4f   :  { %v374_v15 = vadd.f32 %v1629_v50, %v267_v8  ;;  %1009 = vmatprep.mubr.bf16.mxu1 %v496_v9  ;;  %v493_v17 = vpack.c.bf16 %v448_v10, %v443_v53  ;;  %v269_v19 = vmul.f32 %v1637_v56, %v162_v12  ;;  %v159_v20 = vunpack.c.l.bf16 %v83_v38  ;;  %v55_v53 = vld [vmem:[%s2038_s0 + $0x60] ss:$20 sps:$4 sm:$0xff]  }
  0x50   :  { %v450_v18 = vmax.f32 %v370_v11, 0.0  ;;  %v379_v21 = vadd.f32 %v1629_v50, %v272_v14  ;;  %v274_v23 = vmul.f32 %v1637_v56, %v167_v16  ;;  %v164_v24 = vunpack.c.l.bf16 %v86_v52  ;;  %v79_v14 = vld [vmem:[%s2038_s0 + $0x100] ss:$20 sps:$4 sm:$0xff]  }
  0x51   :  { %v454_v22 = vmax.f32 %v374_v15, 0.0  ;;  %v376_v26 = vadd.f32 %v1640_v57, %v269_v19  ;;  %v266_v28 = vmul.f32 %v1645_v60, %v159_v20  ;;  %v161_v29 = vunpack.c.l.bf16 %v84_v62 }
  0x52   :  { %v495_v49 = vpack.c.bf16 %v450_v18, %v445_v13  ;;  %v459_v30 = vmax.f32 %v379_v21, 0.0  ;;  %v381_v31 = vadd.f32 %v1640_v57, %v274_v23  ;;  %v271_v50 = vmul.f32 %v1645_v60, %v164_v24  ;;  %v67_v57 = vld [vmem:[%s2038_s0 + $0xb0] ss:$20 sps:$4 sm:$0xff]  }
  0x53   :  { %913 = vmatmul.mubr.bf16.gmra.mrb[24].mxu0 %v493_v17  ;;  %v166_v32 = vunpack.c.l.bf16 %v87_v5  ;;  %v456_v56 = vmax.f32 %v376_v26, 0.0  ;;  %v373_v33 = vadd.f32 %v1648_v61, %v266_v28  ;;  %v268_v34 = vmul.f32 %v1654_v0, %v161_v29  ;;  %v61_v26 = vld [vmem:[%s2038_s0 + $0x88] ss:$20 sps:$4 sm:$0xff]  }
  0x54   :  { %1010 = vmatmul.mubr.bf16.gmra.mrb[24].mxu1 %v495_v49  ;;  %v93_v35 = vunpack.c.l.bf16 %v43_v25  ;;  %v499_v36 = vpack.c.bf16 %v459_v30, %v454_v22  ;;  %v461_v37 = vmax.f32 %v381_v31, 0.0  ;;  %v378_v38 = vadd.f32 %v1648_v61, %v271_v50  ;;  %v49_v61 = vld [vmem:[%s2038_s0 + $0x38] ss:$20 sps:$4 sm:$0xff]   ;;  %v85_v50 = vld [vmem:[%s2038_s0 + $0x128] ss:$20 sps:$4 sm:$0xff]  }
  0x55   :  { %v273_v40 = vmul.f32 %v1654_v0, %v166_v32  ;;  %v453_v60 = vmax.f32 %v373_v33, 0.0  ;;  %v375_v42 = vadd.f32 %v1657_v1, %v268_v34  ;;  %v98_v43 = vunpack.c.h.bf16 %v43_v25 }
  0x56   :  { %v1887_v44 = vrot.slane %v1610_v39, %v189_v41  ;;  %920 = vmatprep.mubr.bf16.mxu0 %v499_v36  ;;  %v501_v0 = vpack.c.bf16 %v461_v37, %v456_v56  ;;  %v458_v45 = vmax.f32 %v378_v38, 0.0  ;;  %v1896_v48 = vrot.slane %v1617_v46, %v189_v41 }
  0x57   :  { %v380_v47 = vadd.f32 %v1657_v1, %v273_v40  ;;  %v455_v51 = vmax.f32 %v375_v42, 0.0  ;;  %v133_v54 = vunpack.c.l.bf16 %v67_v57  ;;  %v138_v62 = vunpack.c.h.bf16 %v67_v57 }
  0x58   :  { %v200_v52 = vmul.f32 %v1887_v44, %v93_v35  ;;  %v205_v39 = vmul.f32 %v1887_v44, %v98_v43  ;;  %1017 = vmatprep.mubr.bf16.mxu1 %v501_v0  ;;  %v498_v58 = vpack.c.bf16 %v458_v45, %v453_v60  ;;  %v103_v1 = vunpack.c.l.bf16 %v49_v61 }
  0x59   :  { %v460_v59 = vmax.f32 %v380_v47, 0.0  ;;  %v240_v46 = vmul.f32 %v1887_v44, %v133_v54  ;;  %v108_v63 = vunpack.c.h.bf16 %v49_v61  ;;  %v245_v3 = vmul.f32 %v1887_v44, %v138_v62 }
  0x5a   :  { %v307_v27 = vadd.f32 %v1896_v48, %v200_v52  ;;  %v312_v41 = vadd.f32 %v1896_v48, %v205_v39  ;;  %v210_v4 = vmul.f32 %v1887_v44, %v103_v1  ;;  %v143_v5 = vunpack.c.l.bf16 %v73_v55 }
  0x5b   :  { %921 = vmatmul.mubr.bf16.gmra.mrb[28].mxu0 %v498_v58  ;;  %v500_v2 = vpack.c.bf16 %v460_v59, %v455_v51  ;;  %v347_v8 = vadd.f32 %v1896_v48, %v240_v46  ;;  %v215_v9 = vmul.f32 %v1887_v44, %v108_v63  ;;  %v352_v10 = vadd.f32 %v1896_v48, %v245_v3 }
  0x5c   :  { %v387_v6 = vmax.f32 %v307_v27, 0.0  ;;  %v392_v7 = vmax.f32 %v312_v41, 0.0  ;;  %v317_v11 = vadd.f32 %v1896_v48, %v210_v4  ;;  %v148_v12 = vunpack.c.h.bf16 %v73_v55 }
  0x5d   :  { %1018 = vmatmul.mubr.bf16.gmra.mrb[28].mxu1 %v500_v2  ;;  %v250_v13 = vmul.f32 %v1887_v44, %v143_v5  ;;  %v427_v16 = vmax.f32 %v347_v8, 0.0  ;;  %v322_v17 = vadd.f32 %v1896_v48, %v215_v9  ;;  %v113_v18 = vunpack.c.l.bf16 %v55_v53 }
  0x5e   :  { %v467_v15 = vpack.c.bf16 %v392_v7, %v387_v6  ;;  %v432_v19 = vmax.f32 %v352_v10, 0.0  ;;  %v397_v20 = vmax.f32 %v317_v11, 0.0  ;;  %v255_v21 = vmul.f32 %v1887_v44, %v148_v12 }
  0x5f   :  { %v357_v22 = vadd.f32 %v1896_v48, %v250_v13  ;;  %v402_v23 = vmax.f32 %v322_v17, 0.0  ;;  %v118_v24 = vunpack.c.h.bf16 %v55_v53  ;;  %v220_v25 = vmul.f32 %v1887_v44, %v113_v18 }
  0x60   :  { %1410 = vmatprep.mubr.msk.bf16.mxu0 %vm807_vm0, %v467_v15  ;;  %v153_v49 = vunpack.c.l.bf16 %v79_v14  ;;  %v487_v28 = vpack.c.bf16 %v432_v19, %v427_v16  ;;  %v362_v29 = vadd.f32 %v1896_v48, %v255_v21  ;;  %v158_v31 = vunpack.c.h.bf16 %v79_v14 }
  0x61   :  { %v437_v30 = vmax.f32 %v357_v22, 0.0  ;;  %v472_v32 = vpack.c.bf16 %v402_v23, %v397_v20  ;;  %v225_v56 = vmul.f32 %v1887_v44, %v118_v24  ;;  %v327_v33 = vadd.f32 %v1896_v48, %v220_v25 }
  0x62   :  { %v260_v34 = vmul.f32 %v1887_v44, %v153_v49  ;;  %1418 = vmatprep.mubr.msk.bf16.mxu1 %vm807_vm0, %v487_v28  ;;  %v442_v35 = vmax.f32 %v362_v29, 0.0  ;;  %v265_v36 = vmul.f32 %v1887_v44, %v158_v31  ;;  %v123_v37 = vunpack.c.l.bf16 %v61_v26 }
  0x63   :  { %v128_v38 = vunpack.c.h.bf16 %v61_v26  ;;  %1411 = vmatmul.mubr.msk.bf16.vlgmr.msra.gmra.mrb[32].mxu0 %vm807_vm0, %v472_v32  ;;  %v332_v40 = vadd.f32 %v1896_v48, %v225_v56  ;;  %v407_v57 = vmax.f32 %v327_v33, 0.0  ;;  %v163_v42 = vunpack.c.l.bf16 %v85_v50 }
  0x64   :  { %v367_v60 = vadd.f32 %v1896_v48, %v260_v34  ;;  %v492_v43 = vpack.c.bf16 %v442_v35, %v437_v30  ;;  %v372_v61 = vadd.f32 %v1896_v48, %v265_v36  ;;  %v230_v0 = vmul.f32 %v1887_v44, %v123_v37 }
  0x65   :  { %v235_v45 = vmul.f32 %v1887_v44, %v128_v38  ;;  %v412_v47 = vmax.f32 %v332_v40, 0.0  ;;  %v168_v52 = vunpack.c.h.bf16 %v85_v50  ;;  %v270_v39 = vmul.f32 %v1887_v44, %v163_v42 }
  0x66   :  { %v447_v51 = vmax.f32 %v367_v60, 0.0  ;;  %1419 = vmatmul.mubr.msk.bf16.vlgmr.msra.gmra.mrb[32].mxu1 %vm807_vm0, %v492_v43  ;;  %v452_v54 = vmax.f32 %v372_v61, 0.0  ;;  %v337_v55 = vadd.f32 %v1896_v48, %v230_v0 }
  0x67   :  { %v342_v58 = vadd.f32 %v1896_v48, %v235_v45  ;;  %v477_v59 = vpack.c.bf16 %v412_v47, %v407_v57  ;;  %v275_v62 = vmul.f32 %v1887_v44, %v168_v52  ;;  %v377_v1 = vadd.f32 %v1896_v48, %v270_v39 }
  0x68   :  { %v497_v27 = vpack.c.bf16 %v452_v54, %v447_v51  ;;  %v417_v41 = vmax.f32 %v337_v55, 0.0 }
  0x69   :  { %v422_v46 = vmax.f32 %v342_v58, 0.0  ;;  %1414 = vmatprep.mubr.msk.bf16.mxu0 %vm807_vm0, %v477_v59  ;;  %v382_v63 = vadd.f32 %v1896_v48, %v275_v62  ;;  %v457_v2 = vmax.f32 %v377_v1, 0.0 }
  0x6a   :  { %1422 = vmatprep.mubr.msk.bf16.mxu1 %vm807_vm0, %v497_v27 }
  0x6b   :  { %v482_v3 = vpack.c.bf16 %v422_v46, %v417_v41  ;;  %v462_v4 = vmax.f32 %v382_v63, 0.0 }
  0x6d   :  { %1415 = vmatmul.mubr.msk.bf16.gmra.mrb[36].mxu0 %vm807_vm0, %v482_v3  ;;  %v502_v5 = vpack.c.bf16 %v462_v4, %v457_v2 }
  0x6f   :  { %1423 = vmatmul.mubr.msk.bf16.gmra.mrb[36].mxu1 %vm807_vm0, %v502_v5 }
  0xf6   :  { %v1278_v44 = vpop.f32.mrb[0].mxu0 }
  0xf7   :  { %v1342_v53 = vpop.f32.mrb[0].mxu1  ;;  %v1279_v6 = vpop.f32.mrb[1].mxu0 }
  0xf8   :  { %v1280_v7 = vadd.f32 %v1279_v6, %v1278_v44  ;;  %v1343_v8 = vpop.f32.mrb[1].mxu1  ;;  %v1281_v9 = vpop.f32.mrb[2].mxu0 }
  0xf9   :  { %v1344_v10 = vadd.f32 %v1343_v8, %v1342_v53  ;;  %v1345_v11 = vpop.f32.mrb[2].mxu1  ;;  %v1282_v12 = vpop.f32.mrb[3].mxu0 }
  0xfa   :  { %v1283_v48 = vadd.f32 %v1282_v12, %v1281_v9  ;;  %v1346_v13 = vpop.f32.mrb[3].mxu1 }
  0xfb   :  { %v1347_v14 = vadd.f32 %v1346_v13, %v1345_v11  ;;  %v1953_v15 = vadd.f32 %v1344_v10, %v1280_v7 }
  0xfd   :  { %v1955_v16 = vadd.f32 %v1347_v14, %v1283_v48 }
  0xfe   :  { %v1284_v17 = vpop.f32.mrb[4].mxu0 }
  0xff   :  { %v1285_v18 = vpop.f32.mrb[5].mxu0  ;;  %v1348_v19 = vpop.f32.mrb[4].mxu1 }
 0x100   :  { %v1286_v20 = vadd.f32 %v1285_v18, %v1284_v17  ;;  %v1287_v21 = vpop.f32.mrb[6].mxu0  ;;  %v1349_v22 = vpop.f32.mrb[5].mxu1 }
 0x101   :  { %v1288_v23 = vpop.f32.mrb[7].mxu0  ;;  %v1350_v24 = vadd.f32 %v1349_v22, %v1348_v19  ;;  %v1351_v25 = vpop.f32.mrb[6].mxu1 }
 0x102   :  { %v1289_v49 = vadd.f32 %v1288_v23, %v1287_v21  ;;  %v1352_v26 = vpop.f32.mrb[7].mxu1 }
 0x103   :  { %v1353_v28 = vadd.f32 %v1352_v26, %v1351_v25  ;;  %v1957_v29 = vadd.f32 %v1350_v24, %v1286_v20 }
 0x105   :  { %v1959_v30 = vadd.f32 %v1353_v28, %v1289_v49 }
 0x106   :  { %v1290_v31 = vpop.f32.mrb[8].mxu0 }
 0x107   :  { %v1291_v50 = vpop.f32.mrb[9].mxu0  ;;  %v1354_v33 = vpop.f32.mrb[8].mxu1 }
 0x108   :  { %v1292_v32 = vadd.f32 %v1291_v50, %v1290_v31  ;;  %v1293_v56 = vpop.f32.mrb[10].mxu0  ;;  %v1355_v35 = vpop.f32.mrb[9].mxu1 }
 0x109   :  { %v1294_v34 = vpop.f32.mrb[11].mxu0  ;;  %v1356_v37 = vadd.f32 %v1355_v35, %v1354_v33  ;;  %v1357_v38 = vpop.f32.mrb[10].mxu1 }
 0x10a   :  { %v1295_v36 = vadd.f32 %v1294_v34, %v1293_v56  ;;  %v1358_v40 = vpop.f32.mrb[11].mxu1 }
 0x10b   :  { %v1359_v57 = vadd.f32 %v1358_v40, %v1357_v38  ;;  %v1961_v60 = vadd.f32 %v1356_v37, %v1292_v32 }
 0x10d   :  { %v1963_v43 = vadd.f32 %v1359_v57, %v1295_v36 }
 0x10e   :  { %v1296_v42 = vpop.f32.mrb[12].mxu0 }
 0x10f   :  { %v1297_v61 = vpop.f32.mrb[13].mxu0  ;;  %v1360_v47 = vpop.f32.mrb[12].mxu1 }
 0x110   :  { %v1298_v0 = vadd.f32 %v1297_v61, %v1296_v42  ;;  %v1299_v45 = vpop.f32.mrb[14].mxu0  ;;  %v1361_v52 = vpop.f32.mrb[13].mxu1 }
 0x111   :  { %v1300_v51 = vpop.f32.mrb[15].mxu0  ;;  %v1362_v54 = vadd.f32 %v1361_v52, %v1360_v47  ;;  %v1363_v55 = vpop.f32.mrb[14].mxu1 }
 0x112   :  { %v1301_v39 = vadd.f32 %v1300_v51, %v1299_v45  ;;  %v1364_v58 = vpop.f32.mrb[15].mxu1 }
 0x113   :  { %v1365_v59 = vadd.f32 %v1364_v58, %v1363_v55  ;;  %v1965_v62 = vadd.f32 %v1362_v54, %v1298_v0 }
 0x115   :  { %v1967_v1 = vadd.f32 %v1365_v59, %v1301_v39 }
 0x116   :  { %v1302_v27 = vpop.f32.mrb[16].mxu0 }
 0x117   :  { %v1303_v41 = vpop.f32.mrb[17].mxu0  ;;  %v1366_v46 = vpop.f32.mrb[16].mxu1 }
 0x118   :  { %v1304_v63 = vadd.f32 %v1303_v41, %v1302_v27  ;;  %v1305_v2 = vpop.f32.mrb[18].mxu0  ;;  %v1367_v3 = vpop.f32.mrb[17].mxu1  ;;  %v1261_v41 = vld [vmem:[%s2041_s2] ss:$0 sm:$0xff] }
 0x119   :  { %v1306_v4 = vpop.f32.mrb[19].mxu0  ;;  %v1368_v5 = vadd.f32 %v1367_v3, %v1366_v46  ;;  %v1369_v44 = vpop.f32.mrb[18].mxu1 }
 0x11a   :  { %v1307_v53 = vadd.f32 %v1306_v4, %v1305_v2  ;;  %v1370_v6 = vpop.f32.mrb[19].mxu1 }
 0x11b   :  { %v1371_v7 = vadd.f32 %v1370_v6, %v1369_v44  ;;  %v996_v8 = vadd.f32 %v1368_v5, %v1304_v63 }
 0x11d   :  { %v1969_v9 = vadd.f32 %v1371_v7, %v1307_v53 }
 0x11e   :  { %v1308_v10 = vpop.f32.mrb[20].mxu0 }
 0x11f   :  { %v1309_v11 = vpop.f32.mrb[21].mxu0  ;;  %v1372_v12 = vpop.f32.mrb[20].mxu1 }
 0x120   :  { %v1310_v48 = vadd.f32 %v1309_v11, %v1308_v10  ;;  %v1311_v13 = vpop.f32.mrb[22].mxu0  ;;  %v1373_v14 = vpop.f32.mrb[21].mxu1 }
 0x121   :  { %v1312_v17 = vpop.f32.mrb[23].mxu0  ;;  %v1374_v18 = vadd.f32 %v1373_v14, %v1372_v12  ;;  %v1375_v19 = vpop.f32.mrb[22].mxu1 }
 0x122   :  { %v1313_v20 = vadd.f32 %v1312_v17, %v1311_v13  ;;  %v1376_v21 = vpop.f32.mrb[23].mxu1 }
 0x123   :  { %v1377_v22 = vadd.f32 %v1376_v21, %v1375_v19  ;;  %v1004_v23 = vadd.f32 %v1374_v18, %v1310_v48 }
 0x125   :  { %v1007_v24 = vadd.f32 %v1377_v22, %v1313_v20 }
 0x126   :  { %v1314_v25 = vpop.f32.mrb[24].mxu0 }
 0x127   :  { %v1315_v49 = vpop.f32.mrb[25].mxu0  ;;  %v1378_v26 = vpop.f32.mrb[24].mxu1 }
 0x128   :  { %v1316_v28 = vadd.f32 %v1315_v49, %v1314_v25  ;;  %v1317_v31 = vpop.f32.mrb[26].mxu0  ;;  %v1379_v50 = vpop.f32.mrb[25].mxu1 }
 0x129   :  { %v1318_v32 = vpop.f32.mrb[27].mxu0  ;;  %v1380_v56 = vadd.f32 %v1379_v50, %v1378_v26  ;;  %v1381_v33 = vpop.f32.mrb[26].mxu1 }
 0x12a   :  { %v1319_v34 = vadd.f32 %v1318_v32, %v1317_v31  ;;  %v1382_v35 = vpop.f32.mrb[27].mxu1 }
 0x12b   :  { %v1383_v36 = vadd.f32 %v1382_v35, %v1381_v33  ;;  %v1971_v37 = vadd.f32 %v1380_v56, %v1316_v28 }
 0x12d   :  { %v1973_v38 = vadd.f32 %v1383_v36, %v1319_v34 }
 0x12e   :  { %v1320_v40 = vpop.f32.mrb[28].mxu0 }
 0x12f   :  { %v1321_v57 = vpop.f32.mrb[29].mxu0 }
 0x130   :  { %v1384_v42 = vpop.f32.mrb[28].mxu1  ;;  %v1322_v61 = vadd.f32 %v1321_v57, %v1320_v40  ;;  %v1323_v0 = vpop.f32.mrb[30].mxu0 }
 0x131   :  { %v1385_v45 = vpop.f32.mrb[29].mxu1  ;;  %v1324_v47 = vpop.f32.mrb[31].mxu0 }
 0x132   :  { %v1386_v51 = vadd.f32 %v1385_v45, %v1384_v42  ;;  %v1387_v52 = vpop.f32.mrb[30].mxu1  ;;  %v1325_v39 = vadd.f32 %v1324_v47, %v1323_v0 }
 0x133   :  { %v1388_v54 = vpop.f32.mrb[31].mxu1 }
 0x134   :  { %v1389_v55 = vadd.f32 %v1388_v54, %v1387_v52  ;;  %v1020_v58 = vadd.f32 %v1386_v51, %v1322_v61 }
 0x136   :  { %v1023_v59 = vadd.f32 %v1389_v55, %v1325_v39  ;;  %v1412_v27 = vpop.f32.mrb[32].mxu0 }
 0x137   :  { %v1069_v46 = vadd.f32 %v1412_v27, %v1957_v29  ;;  %v1060_v63 = vpop.f32.mrb[33].mxu0 }
 0x138   :  { %v1061_v2 = vadd.f32 %v1060_v63, %v1953_v15  ;;  %v1413_v3 = vpop.f32.mrb[34].mxu0 }
 0x139   :  { %v1183_v4 = vadd.f32 %v1261_v41, %v1069_v46  ;;  %v1420_v5 = vpop.f32.mrb[32].mxu1  ;;  %v1072_v44 = vadd.f32 %v1413_v3, %v1959_v30  ;;  %v1063_v53 = vpop.f32.mrb[35].mxu0 }
 0x13a   :  { %v1101_v6 = vadd.f32 %v1420_v5, %v1004_v23  ;;  %v1181_v7 = vadd.f32 %v1261_v41, %v1061_v2  ;;  %v1092_v10 = vpop.f32.mrb[33].mxu1  ;;  %v1064_v11 = vadd.f32 %v1063_v53, %v1955_v16 }
 0x13b   :  { %1199 = vst [vmem:[%s2042_s5 + $0x10] sm:$0xff] %v1183_v4  ;;  %v1093_v12 = vadd.f32 %v1092_v10, %v996_v8  ;;  %v1184_v29 = vadd.f32 %v1261_v41, %v1072_v44  ;;  %v1421_v48 = vpop.f32.mrb[34].mxu1 }
 0x13c   :  { %v1191_v13 = vadd.f32 %v1261_v41, %v1101_v6  ;;  %1197 = vst [vmem:[%s2042_s5] sm:$0xff] %v1181_v7  ;;  %v1104_v15 = vadd.f32 %v1421_v48, %v1007_v24  ;;  %v1182_v30 = vadd.f32 %v1261_v41, %v1064_v11  ;;  %v1095_v14 = vpop.f32.mrb[35].mxu1 }
 0x13d   :  { %v1189_v17 = vadd.f32 %v1261_v41, %v1093_v12  ;;  %1200 = vst [vmem:[%s2042_s5 + $0x18] sm:$0xff] %v1184_v29  ;;  %v1096_v16 = vadd.f32 %v1095_v14, %v1969_v9 }
 0x13e   :  { %1207 = vst [vmem:[%s2042_s5 + $0x50] sm:$0xff] %v1191_v13  ;;  %v1192_v8 = vadd.f32 %v1261_v41, %v1104_v15  ;;  %1198 = vst [vmem:[%s2042_s5 + $0x8] sm:$0xff] %v1182_v30 }
 0x13f   :  { %1205 = vst [vmem:[%s2042_s5 + $0x40] sm:$0xff] %v1189_v17  ;;  %v1190_v18 = vadd.f32 %v1261_v41, %v1096_v16 }
 0x140   :  { %v1416_v19 = vpop.f32.mrb[36].mxu0  ;;  %1208 = vst [vmem:[%s2042_s5 + $0x58] sm:$0xff] %v1192_v8 }
 0x141   :  { %v1085_v9 = vadd.f32 %v1416_v19, %v1965_v62  ;;  %v1076_v20 = vpop.f32.mrb[37].mxu0  ;;  %1206 = vst [vmem:[%s2042_s5 + $0x48] sm:$0xff] %v1190_v18 }
 0x142   :  { %v1077_v21 = vadd.f32 %v1076_v20, %v1961_v60  ;;  %v1417_v22 = vpop.f32.mrb[38].mxu0  ;;  %v1424_v24 = vpop.f32.mrb[36].mxu1 }
 0x143   :  { %v1187_v23 = vadd.f32 %v1261_v41, %v1085_v9  ;;  %v1088_v25 = vadd.f32 %v1417_v22, %v1967_v1  ;;  %v1079_v49 = vpop.f32.mrb[39].mxu0  ;;  %v1117_v26 = vadd.f32 %v1424_v24, %v1020_v58  ;;  %v1108_v31 = vpop.f32.mrb[37].mxu1 }
 0x144   :  { %v1185_v28 = vadd.f32 %v1261_v41, %v1077_v21  ;;  %v1080_v50 = vadd.f32 %v1079_v49, %v1963_v43  ;;  %v1109_v62 = vadd.f32 %v1108_v31, %v1971_v37  ;;  %v1425_v56 = vpop.f32.mrb[38].mxu1 }
 0x145   :  { %1203 = vst [vmem:[%s2042_s5 + $0x30] sm:$0xff] %v1187_v23  ;;  %v1188_v32 = vadd.f32 %v1261_v41, %v1088_v25  ;;  %v1195_v60 = vadd.f32 %v1261_v41, %v1117_v26  ;;  %v1120_v1 = vadd.f32 %v1425_v56, %v1023_v59  ;;  %v1111_v34 = vpop.f32.mrb[39].mxu1 }
 0x146   :  { %1201 = vst [vmem:[%s2042_s5 + $0x20] sm:$0xff] %v1185_v28  ;;  %v1186_v33 = vadd.f32 %v1261_v41, %v1080_v50  ;;  %v1193_v35 = vadd.f32 %v1261_v41, %v1109_v62  ;;  %v1112_v43 = vadd.f32 %v1111_v34, %v1973_v38 }
 0x147   :  { %1204 = vst [vmem:[%s2042_s5 + $0x38] sm:$0xff] %v1188_v32  ;;  %1211 = vst [vmem:[%s2042_s5 + $0x70] sm:$0xff] %v1195_v60  ;;  %v1196_v36 = vadd.f32 %v1261_v41, %v1120_v1 }
 0x148   :  { %1202 = vst [vmem:[%s2042_s5 + $0x28] sm:$0xff] %v1186_v33  ;;  %1209 = vst [vmem:[%s2042_s5 + $0x60] sm:$0xff] %v1193_v35  ;;  %v1194_v37 = vadd.f32 %v1261_v41, %v1112_v43 }
 0x149   :  { %1212 = vst [vmem:[%s2042_s5 + $0x78] sm:$0xff] %v1196_v36 }
 0x14a   :  { %1210 = vst [vmem:[%s2042_s5 + $0x68] sm:$0xff] %v1194_v37 }

// kernel: densenet_forward.13
= control target key start
LH: loop header
LB: loop body
LE: loop exit
PB: predicated region body
PF: predicated region fallthrough
CT: control target
= control target key end

     0   :  { %v187_v21 = vlaneseq  ;;  %v1577_v50 = vmov 0   ;;  %vm950_vm0 = vcmask 1043456   ;;  %vm925_vm1 = vcmask 64512   ;;  %s2264_s1 = inlined_call_operand.vmem [shape: bf16[648,128], index: 1, kind: input, shape index: {}]   ;;  %s2265_s0 = inlined_call_operand.vmem [shape: bf16[128,648], index: 0, kind: input, shape index: {}]   ;;  %s2266_s3 = inlined_call_operand.vmem [shape: f32[1,648], index: 3, kind: input, shape index: {}]   ;;  %s2267_s4 = inlined_call_operand.vmem [shape: f32[1,648], index: 4, kind: input, shape index: {}]   ;;  %s2268_s2 = inlined_call_operand.vmem [shape: f32[1,128], index: 2, kind: input, shape index: {}]   ;;  %s2269_s5 = inlined_call_operand.vmem [shape: f32[128,128], index: 5, kind: output, shape index: {}]  }
   0x1   :  { %v1536_v0 = vld [vmem:[%s2264_s1 + $0x40] sm:$0xff]   ;;  %v1540_v4 = vld [vmem:[%s2264_s1 + $0x48] sm:$0xff]   ;;  %v1544_v8 = vld [vmem:[%s2264_s1 + $0x50] sm:$0xff]  }
   0x2   :  { %v1537_v1 = vld [vmem:[%s2264_s1 + $0xc0] sm:$0xff]   ;;  %1389 = vmatprep.subr.bf16.mxu0 %v1536_v0  ;;  %v1541_v5 = vld [vmem:[%s2264_s1 + $0xc8] sm:$0xff]   ;;  %v1545_v9 = vld [vmem:[%s2264_s1 + $0xd0] sm:$0xff]   ;;  %v1683_v26 = vshrl.u32 %v187_v21, 7 }
   0x3   :  { %v1538_v2 = vld [vmem:[%s2264_s1] sm:$0xff]   ;;  %1453 = vmatprep.subr.bf16.mxu1 %v1537_v1  ;;  %v1542_v6 = vld [vmem:[%s2264_s1 + $0x8] sm:$0xff]   ;;  %v1546_v10 = vld [vmem:[%s2264_s1 + $0x10] sm:$0xff]  }
   0x4   :  { %v1539_v3 = vld [vmem:[%s2264_s1 + $0x80] sm:$0xff]   ;;  %1390 = vmatpush3.bf16.msra.mxu0 %v1538_v2  ;;  %v1543_v7 = vld [vmem:[%s2264_s1 + $0x88] sm:$0xff]   ;;  %v1547_v11 = vld [vmem:[%s2264_s1 + $0x90] sm:$0xff]   ;;  %v193_v31 = vsub.s32 1, %v1683_v26  ;;  %v201_v33 = vsub.s32 3, %v1683_v26  ;;  %v189_v35 = vsub.s32 0, %v1683_v26 }
   0x5   :  { %1454 = vmatpush3.bf16.msra.mxu1 %v1539_v3  ;;  %1391 = vmatprep.subr.bf16.mxu0 %v1540_v4  ;;  %v1548_v12 = vld [vmem:[%s2264_s1 + $0x58] sm:$0xff]   ;;  %v1552_v16 = vld [vmem:[%s2264_s1 + $0x60] sm:$0xff]   ;;  %v1556_v20 = vld [vmem:[%s2264_s1 + $0x68] sm:$0xff]   ;;  %v197_v37 = vsub.s32 2, %v1683_v26  ;;  %v209_v41 = vsub.s32 5, %v1683_v26  ;;  %v205_v42 = vsub.s32 4, %v1683_v26 }
   0x6   :  { %1455 = vmatprep.subr.bf16.mxu1 %v1541_v5  ;;  %v1549_v13 = vld [vmem:[%s2264_s1 + $0xd8] sm:$0xff]   ;;  %v1553_v17 = vld [vmem:[%s2264_s1 + $0xe0] sm:$0xff]   ;;  %v1557_v22 = vld [vmem:[%s2264_s1 + $0xe8] sm:$0xff]  }
   0x7   :  { %v1550_v14 = vld [vmem:[%s2264_s1 + $0x18] sm:$0xff]   ;;  %v1554_v18 = vld [vmem:[%s2264_s1 + $0x20] sm:$0xff]   ;;  %v1558_v23 = vld [vmem:[%s2264_s1 + $0x28] sm:$0xff]  }
   0x8   :  { %1392 = vmatpush3.bf16.msra.mxu0 %v1542_v6  ;;  %v1551_v15 = vld [vmem:[%s2264_s1 + $0x98] sm:$0xff]   ;;  %v1555_v19 = vld [vmem:[%s2264_s1 + $0xa0] sm:$0xff]   ;;  %v1559_v24 = vld [vmem:[%s2264_s1 + $0xa8] sm:$0xff]  }
   0x9   :  { %1456 = vmatpush3.bf16.msra.mxu1 %v1543_v7  ;;  %1393 = vmatprep.subr.bf16.mxu0 %v1544_v8  ;;  %v1560_v25 = vld [vmem:[%s2264_s1 + $0x70] sm:$0xff]   ;;  %v1564_v30 = vld [vmem:[%s2264_s1 + $0x78] sm:$0xff]   ;;  %v41_v38 = vld [vmem:[%s2265_s0] sm:$0xff] }
   0xa   :  { %1457 = vmatprep.subr.bf16.mxu1 %v1545_v9  ;;  %v1561_v27 = vld [vmem:[%s2264_s1 + $0xf0] sm:$0xff]   ;;  %v1565_v32 = vld [vmem:[%s2264_s1 + $0xf8] sm:$0xff]   ;;  %v1719_v40 = vld [vmem:[%s2266_s3] sm:$0x3f]  ;;  %v89_v43 = vunpack.c.l.bf16 %v41_v38  ;;  %v90_v44 = vunpack.c.h.bf16 %v41_v38 }
   0xb   :  { %v1562_v28 = vld [vmem:[%s2264_s1 + $0x30] sm:$0xff]   ;;  %v1566_v34 = vld [vmem:[%s2264_s1 + $0x38] sm:$0xff]   ;;  %v1726_v47 = vld [vmem:[%s2267_s4] sm:$0x3f]  ;;  %v1736_v51 = vrot.slane %v1719_v40, %v193_v31  ;;  %v1743_v57 = vrot.slane %v1719_v40, %v201_v33  ;;  %v1751_v61 = vrot.slane %v1719_v40, %v189_v35  ;;  %v1759_v1 = vrot.slane %v1719_v40, %v197_v37 }
   0xc   :  { %1394 = vmatpush3.bf16.msra.mxu0 %v1546_v10  ;;  %v1563_v29 = vld [vmem:[%s2264_s1 + $0xb0] sm:$0xff]   ;;  %v1567_v36 = vld [vmem:[%s2264_s1 + $0xb8] sm:$0xff]   ;;  %v42_v48 = vld [vmem:[%s2265_s0 + $0x8] sm:$0xff]  ;;  %v1739_v52 = vrot.slane %v1726_v47, %v193_v31  ;;  %v1746_v58 = vrot.slane %v1726_v47, %v201_v33  ;;  %v1754_v62 = vrot.slane %v1726_v47, %v189_v35  ;;  %v1762_v2 = vrot.slane %v1726_v47, %v197_v37 }
   0xd   :  { %1458 = vmatpush3.bf16.msra.mxu1 %v1547_v11  ;;  %1395 = vmatprep.subr.bf16.mxu0 %v1548_v12  ;;  %v44_v39 = vld [vmem:[%s2265_s0 + $0x18] sm:$0xff]  ;;  %v45_v49 = vld [vmem:[%s2265_s0 + $0x20] sm:$0xff]  ;;  %v91_v53 = vunpack.c.l.bf16 %v42_v48  ;;  %v92_v54 = vunpack.c.h.bf16 %v42_v48  ;;  %v218_v59 = vmul.f32 %v1736_v51, %v90_v44  ;;  %v217_v5 = vmul.f32 %v1751_v61, %v89_v43  ;;  %v47_v11 = vld [vmem:[%s2265_s0 + $0x30] sm:$0xff] }
   0xe   :  { %1459 = vmatprep.subr.bf16.mxu1 %v1549_v13  ;;  %v95_v45 = vunpack.c.l.bf16 %v44_v39  ;;  %v96_v46 = vunpack.c.h.bf16 %v44_v39  ;;  %v97_v55 = vunpack.c.l.bf16 %v45_v49  ;;  %v98_v56 = vunpack.c.h.bf16 %v45_v49  ;;  %v1568_v31 = vld [vmem:[%s2264_s1 + $0x100] sm:$0xff]   ;;  %v1569_v49 = vld [vmem:[%s2264_s1 + $0x108] sm:$0xff]   ;;  %v52_v26 = vld [vmem:[%s2265_s0 + $0x58] sm:$0xff] }
   0xf   :  { %v220_v63 = vmul.f32 %v1743_v57, %v92_v54  ;;  %v346_v3 = vadd.f32 %v1739_v52, %v218_v59  ;;  %v219_v9 = vmul.f32 %v1759_v1, %v91_v53  ;;  %v101_v39 = vunpack.c.l.bf16 %v47_v11  ;;  %v53_v59 = vld [vmem:[%s2265_s0 + $0x60] sm:$0xff] }
  0x10   :  { %1396 = vmatpush3.bf16.msra.mxu0 %v1550_v14  ;;  %v224_v60 = vmul.f32 %v1736_v51, %v96_v46  ;;  %v226_v0 = vmul.f32 %v1743_v57, %v98_v56  ;;  %v223_v6 = vmul.f32 %v1751_v61, %v95_v45  ;;  %v225_v10 = vmul.f32 %v1759_v1, %v97_v55 }
  0x11   :  { %1460 = vmatpush3.bf16.msra.mxu1 %v1551_v15  ;;  %1397 = vmatprep.subr.bf16.mxu0 %v1552_v16  ;;  %v348_v7 = vadd.f32 %v1746_v58, %v220_v63  ;;  %v442_v12 = vmax.f32 %v346_v3, 0.0  ;;  %v345_v14 = vadd.f32 %v1754_v62, %v217_v5  ;;  %v50_v16 = vld [vmem:[%s2265_s0 + $0x48] sm:$0xff]  ;;  %v347_v21 = vadd.f32 %v1762_v2, %v219_v9 }
  0x12   :  { %1461 = vmatprep.subr.bf16.mxu1 %v1553_v17  ;;  %v352_v4 = vadd.f32 %v1739_v52, %v224_v60  ;;  %v354_v8 = vadd.f32 %v1746_v58, %v226_v0  ;;  %v351_v15 = vadd.f32 %v1754_v62, %v223_v6  ;;  %v48_v17 = vld [vmem:[%s2265_s0 + $0x38] sm:$0xff]  ;;  %v107_v43 = vunpack.c.l.bf16 %v50_v16 }
  0x13   :  { %v104_v35 = vunpack.c.h.bf16 %v48_v17  ;;  %v103_v48 = vunpack.c.l.bf16 %v48_v17  ;;  %v229_v54 = vmul.f32 %v1751_v61, %v101_v39 }
  0x14   :  { %1398 = vmatpush3.bf16.msra.mxu0 %v1554_v18  ;;  %v448_v13 = vmax.f32 %v352_v4, 0.0  ;;  %v51_v18 = vld [vmem:[%s2265_s0 + $0x50] sm:$0xff]  ;;  %v235_v55 = vmul.f32 %v1751_v61, %v107_v43 }
  0x15   :  { %1462 = vmatpush3.bf16.msra.mxu1 %v1555_v19  ;;  %1399 = vmatprep.subr.bf16.mxu0 %v1556_v20  ;;  %v444_v19 = vmax.f32 %v348_v7, 0.0  ;;  %v450_v20 = vmax.f32 %v354_v8, 0.0  ;;  %v232_v45 = vmul.f32 %v1743_v57, %v104_v35  ;;  %v109_v56 = vunpack.c.l.bf16 %v51_v18  ;;  %v56_v8 = vld [vmem:[%s2265_s0 + $0x78] sm:$0xff] }
  0x16   :  { %1463 = vmatprep.subr.bf16.mxu1 %v1557_v22  ;;  %v353_v22 = vadd.f32 %v1762_v2, %v225_v10  ;;  %v231_v3 = vmul.f32 %v1759_v1, %v103_v48  ;;  %v357_v5 = vadd.f32 %v1754_v62, %v229_v54  ;;  %v363_v6 = vadd.f32 %v1754_v62, %v235_v55  ;;  %v62_v54 = vld [vmem:[%s2265_s0 + $0xa8] sm:$0xff] }
  0x17   :  { %v360_v63 = vadd.f32 %v1746_v58, %v232_v45  ;;  %v237_v7 = vmul.f32 %v1759_v1, %v109_v56  ;;  %v1571_v45 = vld [vmem:[%s2264_s1 + $0x118] sm:$0xff]  }
  0x18   :  { %1400 = vmatpush3.bf16.msra.mxu0 %v1558_v23  ;;  %v538_v23 = vpack.c.bf16 %v448_v13, %v442_v12  ;;  %v114_v12 = vunpack.c.h.bf16 %v53_v59  ;;  %v54_v13 = vld [vmem:[%s2265_s0 + $0x68] sm:$0xff]  ;;  %v459_v17 = vmax.f32 %v363_v6, 0.0  ;;  %v63_v6 = vld [vmem:[%s2265_s0 + $0xb0] sm:$0xff] }
  0x19   :  { %1464 = vmatpush3.bf16.msra.mxu1 %v1559_v24  ;;  %1401 = vmatprep.subr.bf16.mxu0 %v1560_v25  ;;  %v441_v24 = vmax.f32 %v345_v14, 0.0  ;;  %v447_v25 = vmax.f32 %v351_v15, 0.0  ;;  %v456_v9 = vmax.f32 %v360_v63, 0.0  ;;  %v57_v14 = vld [vmem:[%s2265_s0 + $0x80] sm:$0xff] }
  0x1a   :  { %1465 = vmatprep.subr.bf16.mxu1 %v1561_v27  ;;  %v102_v27 = vunpack.c.h.bf16 %v47_v11  ;;  %986 = vmatprep.mubr.bf16.mxu0 %v538_v23  ;;  %v359_v11 = vadd.f32 %v1762_v2, %v231_v3  ;;  %v1570_v23 = vld [vmem:[%s2264_s1 + $0x110] sm:$0xff]  }
  0x1b   :  { %v537_v33 = vpack.c.bf16 %v447_v25, %v441_v24 }
  0x1c   :  { %1402 = vmatpush3.bf16.msra.mxu0 %v1562_v28  ;;  %v540_v28 = vpack.c.bf16 %v450_v20, %v444_v19  ;;  %v455_v20 = vmax.f32 %v359_v11, 0.0  ;;  %v1572_v11 = vld [vmem:[%s2264_s1 + $0x120] sm:$0xff]  }
  0x1d   :  { %1466 = vmatpush3.bf16.msra.mxu1 %v1563_v29  ;;  %1403 = vmatprep.subr.bf16.mxu0 %v1564_v30  ;;  %v443_v29 = vmax.f32 %v347_v21, 0.0  ;;  %v449_v30 = vmax.f32 %v353_v22, 0.0  ;;  %v120_v21 = vunpack.c.h.bf16 %v56_v8  ;;  %v242_v22 = vmul.f32 %v1736_v51, %v114_v12 }
  0x1e   :  { %1467 = vmatprep.subr.bf16.mxu1 %v1565_v32  ;;  %v108_v32 = vunpack.c.h.bf16 %v50_v16  ;;  %1083 = vmatprep.mubr.bf16.mxu1 %v540_v28  ;;  %v453_v16 = vmax.f32 %v357_v5, 0.0  ;;  %v122_v28 = vunpack.c.h.bf16 %v57_v14  ;;  %v60_v5 = vld [vmem:[%s2265_s0 + $0x98] sm:$0xff] }
  0x1f   :  { %v539_v37 = vpack.c.bf16 %v449_v30, %v443_v29  ;;  %v248_v29 = vmul.f32 %v1736_v51, %v120_v21  ;;  %v370_v30 = vadd.f32 %v1739_v52, %v242_v22 }
  0x20   :  { %1404 = vmatpush3.bf16.msra.mxu0 %v1566_v34  ;;  %v230_v34 = vmul.f32 %v1736_v51, %v102_v27  ;;  %v236_v38 = vmul.f32 %v1736_v51, %v108_v32  ;;  %v543_v24 = vpack.c.bf16 %v459_v17, %v453_v16  ;;  %v116_v27 = vunpack.c.h.bf16 %v54_v13 }
  0x21   :  { %1468 = vmatpush3.bf16.msra.mxu1 %v1567_v36  ;;  %1148 = vmatprep.subr.bf16.mxu0 %v1577_v50  ;;  %v110_v36 = vunpack.c.h.bf16 %v51_v18  ;;  %v365_v18 = vadd.f32 %v1762_v2, %v237_v7  ;;  %v119_v32 = vunpack.c.l.bf16 %v56_v8  ;;  %v250_v35 = vmul.f32 %v1743_v57, %v122_v28 }
  0x22   :  { %1517 = vmatprep.subr.bf16.mxu1 %v1577_v50  ;;  %v358_v44 = vadd.f32 %v1739_v52, %v230_v34  ;;  %v364_v53 = vadd.f32 %v1739_v52, %v236_v38  ;;  %v244_v34 = vmul.f32 %v1743_v57, %v116_v27  ;;  %v376_v38 = vadd.f32 %v1739_v52, %v248_v29  ;;  %v65_v29 = vld [vmem:[%s2265_s0 + $0xc0] sm:$0xff] }
  0x23   :  { %987 = vmatmul.mubr.bf16.vlgmr.msra.gmra.mrb[0].mxu0 %v537_v33  ;;  %v238_v46 = vmul.f32 %v1743_v57, %v110_v36  ;;  %v461_v25 = vmax.f32 %v365_v18, 0.0  ;;  %v115_v36 = vunpack.c.l.bf16 %v54_v13  ;;  %v466_v39 = vmax.f32 %v370_v30, 0.0  ;;  %v1573_v30 = vld [vmem:[%s2264_s1 + $0x128] sm:$0xff]  }
  0x24   :  { %1084 = vmatmul.mubr.bf16.vlgmr.msra.gmra.mrb[0].mxu1 %v539_v37  ;;  %1149 = vmatpush1.bf16.msra.mxu0 %v1568_v31  ;;  %v454_v60 = vmax.f32 %v358_v44, 0.0  ;;  %v460_v4 = vmax.f32 %v364_v53, 0.0  ;;  %v59_v37 = vld [vmem:[%s2265_s0 + $0x90] sm:$0xff]  ;;  %v247_v44 = vmul.f32 %v1751_v61, %v119_v32  ;;  %v378_v48 = vadd.f32 %v1746_v58, %v250_v35 }
  0x25   :  { %1526 = vmatpush1.bf16.msra.mxu1 %v1568_v31  ;;  %v366_v0 = vadd.f32 %v1746_v58, %v238_v46  ;;  %1150 = vmatprep.subr.bf16.mxu0 %v1577_v50  ;;  %v113_v31 = vunpack.c.l.bf16 %v53_v59  ;;  %v545_v33 = vpack.c.bf16 %v461_v25, %v455_v20  ;;  %v372_v46 = vadd.f32 %v1746_v58, %v244_v34 }
  0x26   :  { %1518 = vmatprep.subr.bf16.mxu1 %v1577_v50  ;;  %v544_v15 = vpack.c.bf16 %v460_v4, %v454_v60  ;;  %v243_v53 = vmul.f32 %v1759_v1, %v115_v36  ;;  %v472_v55 = vmax.f32 %v376_v38, 0.0  ;;  %v375_v59 = vadd.f32 %v1754_v62, %v247_v44 }
  0x27   :  { %v462_v10 = vmax.f32 %v366_v0, 0.0  ;;  %v241_v43 = vmul.f32 %v1751_v61, %v113_v31  ;;  %v126_v60 = vunpack.c.h.bf16 %v59_v37  ;;  %v468_v63 = vmax.f32 %v372_v46, 0.0 }
  0x28   :  { %1151 = vmatpush1.bf16.msra.mxu0 %v1569_v49  ;;  %994 = vmatprep.mubr.bf16.mxu0 %v544_v15  ;;  %v474_v0 = vmax.f32 %v378_v48, 0.0  ;;  %v371_v4 = vadd.f32 %v1762_v2, %v243_v53  ;;  %v550_v7 = vpack.c.bf16 %v472_v55, %v466_v39  ;;  %v128_v18 = vunpack.c.h.bf16 %v60_v5  ;;  %v68_v39 = vld [vmem:[%s2265_s0 + $0xd8] sm:$0xff]  ;;  %v66_v48 = vld [vmem:[%s2265_s0 + $0xc8] sm:$0xff] }
  0x29   :  { %v546_v19 = vpack.c.bf16 %v462_v10, %v456_v9  ;;  %1527 = vmatpush1.bf16.msra.mxu1 %v1569_v49  ;;  %1152 = vmatprep.subr.bf16.mxu0 %v1577_v50  ;;  %v121_v49 = vunpack.c.l.bf16 %v57_v14  ;;  %v369_v56 = vadd.f32 %v1754_v62, %v241_v43  ;;  %v471_v9 = vmax.f32 %v375_v59, 0.0  ;;  %v1574_v59 = vld [vmem:[%s2264_s1 + $0x130] sm:$0xff]  }
  0x2a   :  { %1519 = vmatprep.subr.bf16.mxu1 %v1577_v50  ;;  %v132_v10 = vunpack.c.h.bf16 %v62_v54  ;;  %v552_v12 = vpack.c.bf16 %v474_v0, %v468_v63  ;;  %v467_v14 = vmax.f32 %v371_v4, 0.0  ;;  %v254_v15 = vmul.f32 %v1736_v51, %v126_v60 }
  0x2b   :  { %1091 = vmatprep.mubr.bf16.mxu1 %v546_v19  ;;  %995 = vmatmul.mubr.bf16.gmra.mrb[4].mxu0 %v543_v24  ;;  %v249_v3 = vmul.f32 %v1759_v1, %v121_v49  ;;  %v465_v8 = vmax.f32 %v369_v56, 0.0  ;;  %v134_v19 = vunpack.c.h.bf16 %v63_v6  ;;  %v125_v22 = vunpack.c.l.bf16 %v59_v37  ;;  %v69_v56 = vld [vmem:[%s2265_s0 + $0xe0] sm:$0xff] }
  0x2c   :  { %1153 = vmatpush1.bf16.msra.mxu0 %v1570_v23  ;;  %1092 = vmatmul.mubr.bf16.gmra.mrb[4].mxu1 %v545_v33  ;;  %v260_v17 = vmul.f32 %v1736_v51, %v132_v10  ;;  %v382_v21 = vadd.f32 %v1739_v52, %v254_v15  ;;  %v256_v25 = vmul.f32 %v1743_v57, %v128_v18  ;;  %v127_v28 = vunpack.c.l.bf16 %v60_v5 }
  0x2d   :  { %1528 = vmatpush1.bf16.msra.mxu1 %v1570_v23  ;;  %1154 = vmatprep.subr.bf16.mxu0 %v1577_v50  ;;  %v377_v13 = vadd.f32 %v1762_v2, %v249_v3  ;;  %v549_v16 = vpack.c.bf16 %v471_v9, %v465_v8  ;;  %v131_v23 = vunpack.c.l.bf16 %v62_v54  ;;  %v262_v27 = vmul.f32 %v1743_v57, %v134_v19 }
  0x2e   :  { %1520 = vmatprep.subr.bf16.mxu1 %v1577_v50  ;;  %1002 = vmatprep.mubr.bf16.mxu0 %v550_v7  ;;  %v388_v24 = vadd.f32 %v1739_v52, %v260_v17  ;;  %v478_v32 = vmax.f32 %v382_v21, 0.0  ;;  %v253_v33 = vmul.f32 %v1751_v61, %v125_v22  ;;  %v384_v36 = vadd.f32 %v1746_v58, %v256_v25  ;;  %v1575_v21 = vld [vmem:[%s2264_s1 + $0x138] sm:$0xff]  }
  0x2f   :  { %1099 = vmatprep.mubr.bf16.mxu1 %v552_v12  ;;  %v473_v20 = vmax.f32 %v377_v13, 0.0  ;;  %v259_v34 = vmul.f32 %v1751_v61, %v131_v23  ;;  %v390_v37 = vadd.f32 %v1746_v58, %v262_v27  ;;  %v133_v38 = vunpack.c.l.bf16 %v63_v6 }
  0x30   :  { %1155 = vmatpush1.bf16.msra.mxu0 %v1571_v45  ;;  %v484_v35 = vmax.f32 %v388_v24, 0.0  ;;  %v381_v43 = vadd.f32 %v1754_v62, %v253_v33  ;;  %v138_v46 = vunpack.c.h.bf16 %v65_v29  ;;  %v480_v53 = vmax.f32 %v384_v36, 0.0  ;;  %v72_v36 = vld [vmem:[%s2265_s0 + $0xf8] sm:$0xff] }
  0x31   :  { %1529 = vmatpush1.bf16.msra.mxu1 %v1571_v45  ;;  %1156 = vmatprep.subr.bf16.mxu0 %v1577_v50  ;;  %v551_v31 = vpack.c.bf16 %v473_v20, %v467_v14  ;;  %v387_v44 = vadd.f32 %v1754_v62, %v259_v34  ;;  %v255_v45 = vmul.f32 %v1759_v1, %v127_v28  ;;  %v486_v54 = vmax.f32 %v390_v37, 0.0  ;;  %v71_v20 = vld [vmem:[%s2265_s0 + $0xf0] sm:$0xff] }
  0x32   :  { %1521 = vmatprep.subr.bf16.mxu1 %v1577_v50  ;;  %v556_v49 = vpack.c.bf16 %v484_v35, %v478_v32  ;;  %v261_v55 = vmul.f32 %v1759_v1, %v133_v38  ;;  %v477_v60 = vmax.f32 %v381_v43, 0.0  ;;  %v144_v3 = vunpack.c.h.bf16 %v68_v39 }
  0x33   :  { %1003 = vmatmul.mubr.bf16.gmra.mrb[8].mxu0 %v549_v16  ;;  %v483_v63 = vmax.f32 %v387_v44, 0.0  ;;  %v383_v0 = vadd.f32 %v1762_v2, %v255_v45  ;;  %v558_v4 = vpack.c.bf16 %v486_v54, %v480_v53  ;;  %v266_v6 = vmul.f32 %v1736_v51, %v138_v46  ;;  %v75_v44 = vld [vmem:[%s2265_s0 + $0x110] sm:$0xff] }
  0x34   :  { %1157 = vmatpush1.bf16.msra.mxu0 %v1572_v11  ;;  %1100 = vmatmul.mubr.bf16.gmra.mrb[8].mxu1 %v551_v31  ;;  %v389_v5 = vadd.f32 %v1762_v2, %v261_v55  ;;  %v140_v7 = vunpack.c.h.bf16 %v66_v48  ;;  %v272_v10 = vmul.f32 %v1736_v51, %v144_v3  ;;  %v137_v15 = vunpack.c.l.bf16 %v65_v29  ;;  %v74_v31 = vld [vmem:[%s2265_s0 + $0x108] sm:$0xff] }
  0x35   :  { %1530 = vmatpush1.bf16.msra.mxu1 %v1572_v11  ;;  %1158 = vmatprep.subr.bf16.mxu0 %v1577_v50  ;;  %v555_v8 = vpack.c.bf16 %v483_v63, %v477_v60  ;;  %v479_v9 = vmax.f32 %v383_v0, 0.0  ;;  %v146_v11 = vunpack.c.h.bf16 %v69_v56  ;;  %v394_v13 = vadd.f32 %v1739_v52, %v266_v6 }
  0x36   :  { %1522 = vmatprep.subr.bf16.mxu1 %v1577_v50  ;;  %1010 = vmatprep.mubr.bf16.mxu0 %v556_v49  ;;  %v485_v12 = vmax.f32 %v389_v5, 0.0  ;;  %v268_v14 = vmul.f32 %v1743_v57, %v140_v7  ;;  %v400_v16 = vadd.f32 %v1739_v52, %v272_v10  ;;  %v143_v18 = vunpack.c.l.bf16 %v68_v39 }
  0x37   :  { %1107 = vmatprep.mubr.bf16.mxu1 %v558_v4  ;;  %v274_v17 = vmul.f32 %v1743_v57, %v146_v11  ;;  %v139_v19 = vunpack.c.l.bf16 %v66_v48  ;;  %v490_v23 = vmax.f32 %v394_v13, 0.0  ;;  %v265_v25 = vmul.f32 %v1751_v61, %v137_v15 }
  0x38   :  { %1159 = vmatpush1.bf16.msra.mxu0 %v1573_v30  ;;  %v557_v22 = vpack.c.bf16 %v485_v12, %v479_v9  ;;  %v396_v24 = vadd.f32 %v1746_v58, %v268_v14  ;;  %v496_v27 = vmax.f32 %v400_v16, 0.0  ;;  %v271_v29 = vmul.f32 %v1751_v61, %v143_v18 }
  0x39   :  { %1531 = vmatpush1.bf16.msra.mxu1 %v1573_v30  ;;  %1160 = vmatprep.subr.bf16.mxu0 %v1577_v50  ;;  %v402_v28 = vadd.f32 %v1746_v58, %v274_v17  ;;  %v145_v30 = vunpack.c.l.bf16 %v69_v56  ;;  %v393_v33 = vadd.f32 %v1754_v62, %v265_v25  ;;  %v267_v34 = vmul.f32 %v1759_v1, %v139_v19  ;;  %v80_v19 = vld [vmem:[%s2265_s0 + $0x138] sm:$0xff] }
  0x3a   :  { %1523 = vmatprep.subr.bf16.mxu1 %v1577_v50  ;;  %v492_v32 = vmax.f32 %v396_v24, 0.0  ;;  %v150_v35 = vunpack.c.h.bf16 %v71_v20  ;;  %v562_v37 = vpack.c.bf16 %v496_v27, %v490_v23  ;;  %v399_v39 = vadd.f32 %v1754_v62, %v271_v29  ;;  %v78_v24 = vld [vmem:[%s2265_s0 + $0x128] sm:$0xff] }
  0x3b   :  { %1011 = vmatmul.mubr.bf16.gmra.mrb[12].mxu0 %v555_v8  ;;  %v498_v38 = vmax.f32 %v402_v28, 0.0  ;;  %v273_v43 = vmul.f32 %v1759_v1, %v145_v30  ;;  %v489_v45 = vmax.f32 %v393_v33, 0.0  ;;  %v395_v46 = vadd.f32 %v1762_v2, %v267_v34  ;;  %v81_v30 = vld [vmem:[%s2265_s0 + $0x140] sm:$0xff] }
  0x3c   :  { %1161 = vmatpush1.bf16.msra.mxu0 %v1574_v59  ;;  %1108 = vmatmul.mubr.bf16.gmra.mrb[12].mxu1 %v557_v22  ;;  %v156_v48 = vunpack.c.h.bf16 %v74_v31  ;;  %v278_v49 = vmul.f32 %v1736_v51, %v150_v35  ;;  %v495_v54 = vmax.f32 %v399_v39, 0.0  ;;  %v152_v56 = vunpack.c.h.bf16 %v72_v36 }
  0x3d   :  { %1532 = vmatpush1.bf16.msra.mxu1 %v1574_v59  ;;  %1162 = vmatprep.subr.bf16.mxu0 %v1577_v50  ;;  %v564_v53 = vpack.c.bf16 %v498_v38, %v492_v32  ;;  %v401_v55 = vadd.f32 %v1762_v2, %v273_v43  ;;  %v491_v59 = vmax.f32 %v395_v46, 0.0  ;;  %v158_v0 = vunpack.c.h.bf16 %v75_v44 }
  0x3e   :  { %1524 = vmatprep.subr.bf16.mxu1 %v1577_v50  ;;  %1018 = vmatprep.mubr.bf16.mxu0 %v562_v37  ;;  %v284_v60 = vmul.f32 %v1736_v51, %v156_v48  ;;  %v406_v63 = vadd.f32 %v1739_v52, %v278_v49  ;;  %v561_v3 = vpack.c.bf16 %v495_v54, %v489_v45  ;;  %v149_v6 = vunpack.c.l.bf16 %v71_v20 }
  0x3f   :  { %1115 = vmatprep.mubr.bf16.mxu1 %v564_v53  ;;  %v497_v4 = vmax.f32 %v401_v55, 0.0  ;;  %v280_v5 = vmul.f32 %v1743_v57, %v152_v56  ;;  %v286_v9 = vmul.f32 %v1743_v57, %v158_v0  ;;  %v155_v10 = vunpack.c.l.bf16 %v74_v31 }
  0x40   :  { %1163 = vmatpush1.bf16.msra.mxu0 %v1575_v21  ;;  %v412_v7 = vadd.f32 %v1739_v52, %v284_v60  ;;  %v502_v8 = vmax.f32 %v406_v63, 0.0  ;;  %v277_v13 = vmul.f32 %v1751_v61, %v149_v6  ;;  %v151_v14 = vunpack.c.l.bf16 %v72_v36  ;;  %v83_v60 = vld [vmem:[%s2265_s0 + $0x150] sm:$0xff] }
  0x41   :  { %1533 = vmatpush1.bf16.msra.mxu1 %v1575_v21  ;;  %1164 = vmatprep.subr.bf16.mxu0 %v1577_v50  ;;  %v563_v11 = vpack.c.bf16 %v497_v4, %v491_v59  ;;  %v408_v12 = vadd.f32 %v1746_v58, %v280_v5  ;;  %v414_v16 = vadd.f32 %v1746_v58, %v286_v9  ;;  %v157_v18 = vunpack.c.l.bf16 %v75_v44  ;;  %v86_v9 = vld [vmem:[%s2265_s0 + $0x168] sm:$0xff] }
  0x42   :  { %1525 = vmatprep.subr.bf16.mxu1 %v1577_v50  ;;  %v77_v50 = vld [vmem:[%s2265_s0 + $0x120] sm:$0xff]  ;;  %v508_v15 = vmax.f32 %v412_v7, 0.0  ;;  %v283_v17 = vmul.f32 %v1751_v61, %v155_v10  ;;  %v405_v21 = vadd.f32 %v1754_v62, %v277_v13  ;;  %v279_v22 = vmul.f32 %v1759_v1, %v151_v14  ;;  %v84_v13 = vld [vmem:[%s2265_s0 + $0x158] sm:$0xff] }
  0x43   :  { %1019 = vmatmul.mubr.bf16.gmra.mrb[16].mxu0 %v561_v3  ;;  %v504_v20 = vmax.f32 %v408_v12, 0.0  ;;  %v162_v23 = vunpack.c.h.bf16 %v77_v50  ;;  %v510_v27 = vmax.f32 %v414_v16, 0.0  ;;  %v285_v29 = vmul.f32 %v1759_v1, %v157_v18  ;;  %v87_v18 = vld [vmem:[%s2265_s0 + $0x170] sm:$0xff] }
  0x44   :  { %1116 = vmatmul.mubr.bf16.gmra.mrb[16].mxu1 %v563_v11  ;;  %v568_v25 = vpack.c.bf16 %v508_v15, %v502_v8  ;;  %v411_v28 = vadd.f32 %v1754_v62, %v283_v17  ;;  %v501_v31 = vmax.f32 %v405_v21, 0.0  ;;  %v407_v32 = vadd.f32 %v1762_v2, %v279_v22 }
  0x45   :  { %v168_v33 = vunpack.c.h.bf16 %v80_v19  ;;  %v290_v34 = vmul.f32 %v1736_v51, %v162_v23  ;;  %v570_v35 = vpack.c.bf16 %v510_v27, %v504_v20  ;;  %v413_v37 = vadd.f32 %v1762_v2, %v285_v29 }
  0x46   :  { %1026 = vmatprep.mubr.bf16.mxu0 %v568_v25  ;;  %v507_v36 = vmax.f32 %v411_v28, 0.0  ;;  %v164_v38 = vunpack.c.h.bf16 %v78_v24  ;;  %v503_v39 = vmax.f32 %v407_v32, 0.0  ;;  %v170_v45 = vunpack.c.h.bf16 %v81_v30 }
  0x47   :  { %v296_v43 = vmul.f32 %v1736_v51, %v168_v33  ;;  %v418_v44 = vadd.f32 %v1739_v52, %v290_v34  ;;  %1123 = vmatprep.mubr.bf16.mxu1 %v570_v35  ;;  %v509_v48 = vmax.f32 %v413_v37, 0.0  ;;  %v161_v53 = vunpack.c.l.bf16 %v77_v50 }
  0x48   :  { %v567_v46 = vpack.c.bf16 %v507_v36, %v501_v31  ;;  %v292_v49 = vmul.f32 %v1743_v57, %v164_v38  ;;  %v298_v56 = vmul.f32 %v1743_v57, %v170_v45  ;;  %v167_v59 = vunpack.c.l.bf16 %v80_v19  ;;  %v1576_v36 = vld [vmem:[%s2264_s1 + $0x140] ss:$0 sps:$4 sm:$0xff]  }
  0x49   :  { %v424_v54 = vadd.f32 %v1739_v52, %v296_v43  ;;  %v514_v55 = vmax.f32 %v418_v44, 0.0  ;;  %v569_v63 = vpack.c.bf16 %v509_v48, %v503_v39  ;;  %v289_v3 = vmul.f32 %v1751_v61, %v161_v53 }
  0x4a   :  { %v420_v0 = vadd.f32 %v1746_v58, %v292_v49  ;;  %v163_v4 = vunpack.c.l.bf16 %v78_v24  ;;  %v426_v6 = vadd.f32 %v1746_v58, %v298_v56  ;;  %v295_v7 = vmul.f32 %v1751_v61, %v167_v59 }
  0x4b   :  { %1027 = vmatmul.mubr.bf16.gmra.mrb[20].mxu0 %v567_v46  ;;  %v520_v5 = vmax.f32 %v424_v54, 0.0  ;;  %v169_v8 = vunpack.c.l.bf16 %v81_v30  ;;  %v417_v50 = vadd.f32 %v1754_v62, %v289_v3  ;;  %v174_v12 = vunpack.c.h.bf16 %v83_v60 }
  0x4c   :  { %1124 = vmatmul.mubr.bf16.gmra.mrb[20].mxu1 %v569_v63  ;;  %v516_v10 = vmax.f32 %v420_v0, 0.0  ;;  %v291_v11 = vmul.f32 %v1759_v1, %v163_v4  ;;  %v522_v15 = vmax.f32 %v426_v6, 0.0  ;;  %v423_v16 = vadd.f32 %v1754_v62, %v295_v7  ;;  %v67_v7 = vld [vmem:[%s2265_s0 + $0xd0] sm:$0xff] }
  0x4d   :  { %v574_v14 = vpack.c.bf16 %v520_v5, %v514_v55  ;;  %v297_v17 = vmul.f32 %v1759_v1, %v169_v8  ;;  %v513_v19 = vmax.f32 %v417_v50, 0.0  ;;  %v180_v21 = vunpack.c.h.bf16 %v86_v9 }
  0x4e   :  { %v419_v20 = vadd.f32 %v1762_v2, %v291_v11  ;;  %v302_v22 = vmul.f32 %v1736_v51, %v174_v12  ;;  %v576_v23 = vpack.c.bf16 %v522_v15, %v516_v10  ;;  %v519_v24 = vmax.f32 %v423_v16, 0.0 }
  0x4f   :  { %1034 = vmatprep.mubr.bf16.mxu0 %v574_v14  ;;  %v425_v25 = vadd.f32 %v1762_v2, %v297_v17  ;;  %v176_v27 = vunpack.c.h.bf16 %v84_v13  ;;  %v308_v29 = vmul.f32 %v1736_v51, %v180_v21  ;;  %v182_v31 = vunpack.c.h.bf16 %v87_v18  ;;  %v49_v17 = vld [vmem:[%s2265_s0 + $0x40] sm:$0xff] }
  0x50   :  { %v515_v28 = vmax.f32 %v419_v20, 0.0  ;;  %v430_v30 = vadd.f32 %v1739_v52, %v302_v22  ;;  %1131 = vmatprep.mubr.bf16.mxu1 %v576_v23  ;;  %v573_v32 = vpack.c.bf16 %v519_v24, %v513_v19  ;;  %v173_v35 = vunpack.c.l.bf16 %v83_v60  ;;  %v46_v60 = vld [vmem:[%s2265_s0 + $0x28] sm:$0xff] }
  0x51   :  { %v521_v33 = vmax.f32 %v425_v25, 0.0  ;;  %v304_v34 = vmul.f32 %v1743_v57, %v176_v27  ;;  %v436_v37 = vadd.f32 %v1739_v52, %v308_v29  ;;  %v310_v39 = vmul.f32 %v1743_v57, %v182_v31  ;;  %v43_v52 = vld [vmem:[%s2265_s0 + $0x10] sm:$0xff] }
  0x52   :  { %v526_v38 = vmax.f32 %v430_v30, 0.0  ;;  %v179_v43 = vunpack.c.l.bf16 %v86_v9  ;;  %v301_v45 = vmul.f32 %v1751_v61, %v173_v35  ;;  %v175_v46 = vunpack.c.l.bf16 %v84_v13 }
  0x53   :  { %1035 = vmatmul.mubr.bf16.gmra.mrb[24].mxu0 %v573_v32  ;;  %v575_v51 = vpack.c.bf16 %v521_v33, %v515_v28  ;;  %v432_v44 = vadd.f32 %v1746_v58, %v304_v34  ;;  %v532_v48 = vmax.f32 %v436_v37, 0.0  ;;  %v438_v49 = vadd.f32 %v1746_v58, %v310_v39  ;;  %v73_v39 = vld [vmem:[%s2265_s0 + $0x100] sm:$0xff] }
  0x54   :  { %v307_v53 = vmul.f32 %v1751_v61, %v179_v43  ;;  %v181_v54 = vunpack.c.l.bf16 %v87_v18  ;;  %v429_v55 = vadd.f32 %v1754_v62, %v301_v45  ;;  %v303_v56 = vmul.f32 %v1759_v1, %v175_v46  ;;  %v76_v46 = vld [vmem:[%s2265_s0 + $0x118] sm:$0xff] }
  0x55   :  { %1132 = vmatmul.mubr.bf16.gmra.mrb[24].mxu1 %v575_v51  ;;  %v528_v57 = vmax.f32 %v432_v44, 0.0  ;;  %v952_v59 = vsel %vm950_vm0, %v1576_v36, 0  ;;  %v580_v58 = vpack.c.bf16 %v532_v48, %v526_v38  ;;  %v534_v63 = vmax.f32 %v438_v49, 0.0 }
  0x56   :  { %v435_v61 = vadd.f32 %v1754_v62, %v307_v53  ;;  %v309_v0 = vmul.f32 %v1759_v1, %v181_v54  ;;  %1165 = vmatpush1.bf16.msra.mxu0 %v952_v59  ;;  %1534 = vmatpush1.bf16.msra.mxu1 %v952_v59  ;;  %v525_v3 = vmax.f32 %v429_v55, 0.0  ;;  %v431_v4 = vadd.f32 %v1762_v2, %v303_v56  ;;  %v70_v62 = vld [vmem:[%s2265_s0 + $0xe8] sm:$0xff] }
  0x57   :  { %v93_v5 = vunpack.c.l.bf16 %v43_v52  ;;  %v94_v6 = vunpack.c.h.bf16 %v43_v52  ;;  %1042 = vmatprep.mubr.bf16.mxu0 %v580_v58  ;;  %v582_v8 = vpack.c.bf16 %v534_v63, %v528_v57  ;;  %v99_v50 = vunpack.c.l.bf16 %v46_v60 }
  0x58   :  { %v531_v9 = vmax.f32 %v435_v61, 0.0  ;;  %v437_v10 = vadd.f32 %v1762_v2, %v309_v0  ;;  %v527_v1 = vmax.f32 %v431_v4, 0.0  ;;  %v100_v11 = vunpack.c.h.bf16 %v46_v60 }
  0x59   :  { %v2031_v12 = vrot.slane %v1719_v40, %v209_v41  ;;  %v2036_v13 = vrot.slane %v1726_v47, %v209_v41  ;;  %1139 = vmatprep.mubr.bf16.mxu1 %v582_v8  ;;  %v141_v15 = vunpack.c.l.bf16 %v67_v7  ;;  %v142_v16 = vunpack.c.h.bf16 %v67_v7 }
  0x5a   :  { %v579_v2 = vpack.c.bf16 %v531_v9, %v525_v3  ;;  %v533_v14 = vmax.f32 %v437_v10, 0.0  ;;  %v147_v20 = vunpack.c.l.bf16 %v70_v62  ;;  %v148_v21 = vunpack.c.h.bf16 %v70_v62 }
  0x5b   :  { %v222_v18 = vmul.f32 %v2031_v12, %v94_v6  ;;  %v228_v19 = vmul.f32 %v2031_v12, %v100_v11  ;;  %v270_v41 = vmul.f32 %v2031_v12, %v142_v16  ;;  %v2047_v23 = vrot.slane %v1719_v40, %v205_v42  ;;  %v58_v11 = vld [vmem:[%s2265_s0 + $0x88] sm:$0xff] }
  0x5c   :  { %1043 = vmatmul.mubr.bf16.gmra.mrb[28].mxu0 %v579_v2  ;;  %v581_v22 = vpack.c.bf16 %v533_v14, %v527_v1  ;;  %v2052_v24 = vrot.slane %v1726_v47, %v205_v42  ;;  %v276_v28 = vmul.f32 %v2031_v12, %v148_v21  ;;  %v106_v29 = vunpack.c.h.bf16 %v49_v17 }
  0x5d   :  { %v350_v25 = vadd.f32 %v2036_v13, %v222_v18  ;;  %v356_v27 = vadd.f32 %v2036_v13, %v228_v19  ;;  %v398_v30 = vadd.f32 %v2036_v13, %v270_v41  ;;  %v221_v31 = vmul.f32 %v2047_v23, %v93_v5  ;;  %v55_v5 = vld [vmem:[%s2265_s0 + $0x70] sm:$0xff] }
  0x5e   :  { %1140 = vmatmul.mubr.bf16.gmra.mrb[28].mxu1 %v581_v22  ;;  %v227_v40 = vmul.f32 %v2047_v23, %v99_v50  ;;  %v269_v32 = vmul.f32 %v2047_v23, %v141_v15  ;;  %v404_v33 = vadd.f32 %v2036_v13, %v276_v28  ;;  %v275_v34 = vmul.f32 %v2047_v23, %v147_v20  ;;  %v82_v22 = vld [vmem:[%s2265_s0 + $0x148] sm:$0xff] }
  0x5f   :  { %v446_v42 = vmax.f32 %v350_v25, 0.0  ;;  %v452_v47 = vmax.f32 %v356_v27, 0.0  ;;  %v494_v35 = vmax.f32 %v398_v30, 0.0  ;;  %v349_v36 = vadd.f32 %v2052_v24, %v221_v31 }
  0x60   :  { %v355_v37 = vadd.f32 %v2052_v24, %v227_v40  ;;  %v397_v38 = vadd.f32 %v2052_v24, %v269_v32  ;;  %v500_v51 = vmax.f32 %v404_v33, 0.0  ;;  %v403_v44 = vadd.f32 %v2052_v24, %v275_v34 }
  0x61   :  { %v542_v43 = vpack.c.bf16 %v452_v47, %v446_v42  ;;  %v112_v45 = vunpack.c.h.bf16 %v52_v26  ;;  %v445_v48 = vmax.f32 %v349_v36, 0.0  ;;  %v234_v54 = vmul.f32 %v2031_v12, %v106_v29 }
  0x62   :  { %v451_v49 = vmax.f32 %v355_v37, 0.0  ;;  %v493_v53 = vmax.f32 %v397_v38, 0.0  ;;  %v566_v52 = vpack.c.bf16 %v500_v51, %v494_v35  ;;  %v499_v57 = vmax.f32 %v403_v44, 0.0  ;;  %v61_v51 = vld [vmem:[%s2265_s0 + $0xa0] sm:$0xff] }
  0x63   :  { %1380 = vmatprep.mubr.msk.bf16.mxu0 %vm925_vm1, %v542_v43  ;;  %v240_v55 = vmul.f32 %v2031_v12, %v112_v45  ;;  %v154_v56 = vunpack.c.h.bf16 %v73_v39  ;;  %v362_v60 = vadd.f32 %v2036_v13, %v234_v54  ;;  %v160_v58 = vunpack.c.h.bf16 %v76_v46 }
  0x64   :  { %v541_v59 = vpack.c.bf16 %v451_v49, %v445_v48  ;;  %v105_v63 = vunpack.c.l.bf16 %v49_v17  ;;  %1384 = vmatprep.mubr.msk.bf16.mxu1 %vm925_vm1, %v566_v52  ;;  %v565_v61 = vpack.c.bf16 %v499_v57, %v493_v53  ;;  %v111_v4 = vunpack.c.l.bf16 %v52_v26  ;;  %v79_v17 = vld [vmem:[%s2265_s0 + $0x130] sm:$0xff]  ;;  %v64_v57 = vld [vmem:[%s2265_s0 + $0xb8] sm:$0xff] }
  0x65   :  { %v368_v0 = vadd.f32 %v2036_v13, %v240_v55  ;;  %v282_v3 = vmul.f32 %v2031_v12, %v154_v56  ;;  %v458_v6 = vmax.f32 %v362_v60, 0.0  ;;  %v288_v7 = vmul.f32 %v2031_v12, %v160_v58  ;;  %v85_v58 = vld [vmem:[%s2265_s0 + $0x160] sm:$0xff] }
  0x66   :  { %1181 = vmatmul.mubr.bf16.vlgmr.msra.gmra.mrb[32].mxu0 %v541_v59  ;;  %v233_v8 = vmul.f32 %v2047_v23, %v105_v63  ;;  %v153_v9 = vunpack.c.l.bf16 %v73_v39  ;;  %1213 = vmatmul.mubr.bf16.vlgmr.msra.gmra.mrb[32].mxu1 %v565_v61  ;;  %v239_v62 = vmul.f32 %v2047_v23, %v111_v4  ;;  %v159_v1 = vunpack.c.l.bf16 %v76_v46 }
  0x67   :  { %v464_v10 = vmax.f32 %v368_v0, 0.0  ;;  %v410_v50 = vadd.f32 %v2036_v13, %v282_v3  ;;  %v416_v2 = vadd.f32 %v2036_v13, %v288_v7  ;;  %v118_v16 = vunpack.c.h.bf16 %v55_v5 }
  0x68   :  { %v361_v14 = vadd.f32 %v2052_v24, %v233_v8  ;;  %v281_v15 = vmul.f32 %v2047_v23, %v153_v9  ;;  %v367_v20 = vadd.f32 %v2052_v24, %v239_v62  ;;  %v287_v21 = vmul.f32 %v2047_v23, %v159_v1  ;;  %v88_v8 = vld [vmem:[%s2265_s0 + $0x178] sm:$0xff] }
  0x69   :  { %v548_v18 = vpack.c.bf16 %v464_v10, %v458_v6  ;;  %v506_v19 = vmax.f32 %v410_v50, 0.0  ;;  %v512_v41 = vmax.f32 %v416_v2, 0.0  ;;  %v124_v28 = vunpack.c.h.bf16 %v58_v11 }
  0x6a   :  { %v457_v25 = vmax.f32 %v361_v14, 0.0  ;;  %v409_v27 = vadd.f32 %v2052_v24, %v281_v15  ;;  %v463_v29 = vmax.f32 %v367_v20, 0.0  ;;  %v415_v30 = vadd.f32 %v2052_v24, %v287_v21 }
  0x6b   :  { %1381 = vmatprep.mubr.msk.bf16.mxu0 %vm925_vm1, %v548_v18  ;;  %v246_v31 = vmul.f32 %v2031_v12, %v118_v16  ;;  %v166_v40 = vunpack.c.h.bf16 %v79_v17  ;;  %v572_v32 = vpack.c.bf16 %v512_v41, %v506_v19  ;;  %v252_v42 = vmul.f32 %v2031_v12, %v124_v28 }
  0x6c   :  { %v505_v26 = vmax.f32 %v409_v27, 0.0  ;;  %v172_v47 = vunpack.c.h.bf16 %v82_v22  ;;  %v547_v33 = vpack.c.bf16 %v463_v29, %v457_v25  ;;  %v511_v34 = vmax.f32 %v415_v30, 0.0 }
  0x6d   :  { %v374_v35 = vadd.f32 %v2036_v13, %v246_v31  ;;  %v294_v36 = vmul.f32 %v2031_v12, %v166_v40  ;;  %1385 = vmatprep.mubr.msk.bf16.mxu1 %vm925_vm1, %v572_v32  ;;  %v380_v37 = vadd.f32 %v2036_v13, %v252_v42  ;;  %v117_v39 = vunpack.c.l.bf16 %v55_v5 }
  0x6e   :  { %v300_v38 = vmul.f32 %v2031_v12, %v172_v47  ;;  %v123_v43 = vunpack.c.l.bf16 %v58_v11  ;;  %1189 = vmatmul.mubr.bf16.gmra.mrb[36].mxu0 %v547_v33  ;;  %v571_v44 = vpack.c.bf16 %v511_v34, %v505_v26  ;;  %v165_v48 = vunpack.c.l.bf16 %v79_v17 }
  0x6f   :  { %v470_v45 = vmax.f32 %v374_v35, 0.0  ;;  %v422_v46 = vadd.f32 %v2036_v13, %v294_v36  ;;  %v476_v49 = vmax.f32 %v380_v37, 0.0  ;;  %v245_v54 = vmul.f32 %v2047_v23, %v117_v39 }
  0x70   :  { %v428_v53 = vadd.f32 %v2036_v13, %v300_v38  ;;  %v251_v52 = vmul.f32 %v2047_v23, %v123_v43  ;;  %1221 = vmatmul.mubr.bf16.gmra.mrb[36].mxu1 %v571_v44  ;;  %v171_v56 = vunpack.c.l.bf16 %v82_v22  ;;  %v293_v59 = vmul.f32 %v2047_v23, %v165_v48 }
  0x71   :  { %v518_v55 = vmax.f32 %v422_v46, 0.0  ;;  %v130_v60 = vunpack.c.h.bf16 %v61_v51  ;;  %v554_v63 = vpack.c.bf16 %v476_v49, %v470_v45  ;;  %v373_v0 = vadd.f32 %v2052_v24, %v245_v54 }
  0x72   :  { %v524_v61 = vmax.f32 %v428_v53, 0.0  ;;  %v379_v3 = vadd.f32 %v2052_v24, %v251_v52  ;;  %v299_v4 = vmul.f32 %v2047_v23, %v171_v56  ;;  %v421_v5 = vadd.f32 %v2052_v24, %v293_v59 }
  0x73   :  { %v136_v6 = vunpack.c.h.bf16 %v64_v57  ;;  %v258_v7 = vmul.f32 %v2031_v12, %v130_v60  ;;  %1382 = vmatprep.mubr.msk.bf16.mxu0 %vm925_vm1, %v554_v63  ;;  %v469_v10 = vmax.f32 %v373_v0, 0.0  ;;  %v178_v62 = vunpack.c.h.bf16 %v85_v58 }
  0x74   :  { %v578_v9 = vpack.c.bf16 %v524_v61, %v518_v55  ;;  %v475_v50 = vmax.f32 %v379_v3, 0.0  ;;  %v427_v1 = vadd.f32 %v2052_v24, %v299_v4  ;;  %v517_v11 = vmax.f32 %v421_v5, 0.0 }
  0x75   :  { %v264_v2 = vmul.f32 %v2031_v12, %v136_v6  ;;  %v386_v14 = vadd.f32 %v2036_v13, %v258_v7  ;;  %v184_v16 = vunpack.c.h.bf16 %v88_v8  ;;  %v306_v17 = vmul.f32 %v2031_v12, %v178_v62 }
  0x76   :  { %1386 = vmatprep.mubr.msk.bf16.mxu1 %vm925_vm1, %v578_v9  ;;  %v553_v15 = vpack.c.bf16 %v475_v50, %v469_v10  ;;  %v129_v18 = vunpack.c.l.bf16 %v61_v51  ;;  %v523_v19 = vmax.f32 %v427_v1, 0.0  ;;  %v135_v22 = vunpack.c.l.bf16 %v64_v57 }
  0x77   :  { %v392_v20 = vadd.f32 %v2036_v13, %v264_v2  ;;  %v482_v21 = vmax.f32 %v386_v14, 0.0  ;;  %v312_v41 = vmul.f32 %v2031_v12, %v184_v16  ;;  %v434_v25 = vadd.f32 %v2036_v13, %v306_v17 }
  0x78   :  { %1197 = vmatmul.mubr.bf16.gmra.mrb[40].mxu0 %v553_v15  ;;  %v257_v27 = vmul.f32 %v2047_v23, %v129_v18  ;;  %v177_v28 = vunpack.c.l.bf16 %v85_v58  ;;  %v577_v29 = vpack.c.bf16 %v523_v19, %v517_v11  ;;  %v263_v31 = vmul.f32 %v2047_v23, %v135_v22 }
  0x79   :  { %v488_v30 = vmax.f32 %v392_v20, 0.0  ;;  %v183_v40 = vunpack.c.l.bf16 %v88_v8  ;;  %v440_v32 = vadd.f32 %v2036_v13, %v312_v41  ;;  %v530_v26 = vmax.f32 %v434_v25, 0.0 }
  0x7a   :  { %v385_v42 = vadd.f32 %v2052_v24, %v257_v27  ;;  %v305_v47 = vmul.f32 %v2047_v23, %v177_v28  ;;  %1229 = vmatmul.mubr.bf16.gmra.mrb[40].mxu1 %v577_v29  ;;  %v391_v12 = vadd.f32 %v2052_v24, %v263_v31 }
  0x7b   :  { %v560_v33 = vpack.c.bf16 %v488_v30, %v482_v21  ;;  %v311_v34 = vmul.f32 %v2047_v23, %v183_v40  ;;  %v536_v35 = vmax.f32 %v440_v32, 0.0 }
  0x7c   :  { %v481_v36 = vmax.f32 %v385_v42, 0.0  ;;  %v433_v37 = vadd.f32 %v2052_v24, %v305_v47  ;;  %v487_v38 = vmax.f32 %v391_v12, 0.0 }
  0x7d   :  { %1383 = vmatprep.mubr.msk.bf16.mxu0 %vm925_vm1, %v560_v33  ;;  %v439_v13 = vadd.f32 %v2052_v24, %v311_v34  ;;  %v584_v39 = vpack.c.bf16 %v536_v35, %v530_v26 }
  0x7e   :  { %v529_v43 = vmax.f32 %v433_v37, 0.0  ;;  %v559_v51 = vpack.c.bf16 %v487_v38, %v481_v36 }
  0x7f   :  { %v535_v44 = vmax.f32 %v439_v13, 0.0  ;;  %1387 = vmatprep.mubr.msk.bf16.mxu1 %vm925_vm1, %v584_v39 }
  0x80   :  { %1205 = vmatmul.mubr.bf16.gmra.mrb[44].mxu0 %v559_v51 }
  0x81   :  { %v583_v45 = vpack.c.bf16 %v535_v44, %v529_v43 }
  0x83   :  { %1237 = vmatmul.mubr.bf16.gmra.mrb[44].mxu1 %v583_v45 }
  0xf6   :  { %v1405_v46 = vpop.f32.mrb[0].mxu0 }
  0xf7   :  { %v1469_v23 = vpop.f32.mrb[0].mxu1  ;;  %v1406_v48 = vpop.f32.mrb[1].mxu0 }
  0xf8   :  { %v1407_v49 = vadd.f32 %v1406_v48, %v1405_v46  ;;  %v1470_v53 = vpop.f32.mrb[1].mxu1  ;;  %v1408_v54 = vpop.f32.mrb[2].mxu0 }
  0xf9   :  { %v1471_v52 = vadd.f32 %v1470_v53, %v1469_v23  ;;  %v1472_v57 = vpop.f32.mrb[2].mxu1  ;;  %v1409_v55 = vpop.f32.mrb[3].mxu0 }
  0xfa   :  { %v1410_v56 = vadd.f32 %v1409_v55, %v1408_v54  ;;  %v1473_v24 = vpop.f32.mrb[3].mxu1 }
  0xfb   :  { %v1474_v59 = vadd.f32 %v1473_v24, %v1472_v57  ;;  %v2156_v60 = vadd.f32 %v1471_v52, %v1407_v49 }
  0xfd   :  { %v2158_v58 = vadd.f32 %v1474_v59, %v1410_v56 }
  0xfe   :  { %v1411_v63 = vpop.f32.mrb[4].mxu0 }
  0xff   :  { %v1412_v61 = vpop.f32.mrb[5].mxu0  ;;  %v1475_v0 = vpop.f32.mrb[4].mxu1 }
 0x100   :  { %v1413_v3 = vadd.f32 %v1412_v61, %v1411_v63  ;;  %v1414_v4 = vpop.f32.mrb[6].mxu0  ;;  %v1476_v5 = vpop.f32.mrb[5].mxu1 }
 0x101   :  { %v1415_v6 = vpop.f32.mrb[7].mxu0  ;;  %v1477_v7 = vadd.f32 %v1476_v5, %v1475_v0  ;;  %v1478_v8 = vpop.f32.mrb[6].mxu1 }
 0x102   :  { %v1416_v9 = vadd.f32 %v1415_v6, %v1414_v4  ;;  %v1479_v10 = vpop.f32.mrb[7].mxu1 }
 0x103   :  { %v1480_v50 = vadd.f32 %v1479_v10, %v1478_v8  ;;  %v2160_v62 = vadd.f32 %v1477_v7, %v1413_v3 }
 0x105   :  { %v2162_v1 = vadd.f32 %v1480_v50, %v1416_v9 }
 0x106   :  { %v1417_v11 = vpop.f32.mrb[8].mxu0 }
 0x107   :  { %v1418_v2 = vpop.f32.mrb[9].mxu0  ;;  %v1481_v16 = vpop.f32.mrb[8].mxu1 }
 0x108   :  { %v1419_v14 = vadd.f32 %v1418_v2, %v1417_v11  ;;  %v1420_v15 = vpop.f32.mrb[10].mxu0  ;;  %v1482_v18 = vpop.f32.mrb[9].mxu1 }
 0x109   :  { %v1421_v17 = vpop.f32.mrb[11].mxu0  ;;  %v1483_v20 = vadd.f32 %v1482_v18, %v1481_v16  ;;  %v1484_v21 = vpop.f32.mrb[10].mxu1 }
 0x10a   :  { %v1422_v19 = vadd.f32 %v1421_v17, %v1420_v15  ;;  %v1485_v22 = vpop.f32.mrb[11].mxu1 }
 0x10b   :  { %v1486_v41 = vadd.f32 %v1485_v22, %v1484_v21  ;;  %v2164_v25 = vadd.f32 %v1483_v20, %v1419_v14 }
 0x10d   :  { %v2166_v28 = vadd.f32 %v1486_v41, %v1422_v19 }
 0x10e   :  { %v1423_v27 = vpop.f32.mrb[12].mxu0 }
 0x10f   :  { %v1424_v29 = vpop.f32.mrb[13].mxu0  ;;  %v1487_v40 = vpop.f32.mrb[12].mxu1 }
 0x110   :  { %v1425_v30 = vadd.f32 %v1424_v29, %v1423_v27  ;;  %v1426_v31 = vpop.f32.mrb[14].mxu0  ;;  %v1488_v26 = vpop.f32.mrb[13].mxu1 }
 0x111   :  { %v1427_v32 = vpop.f32.mrb[15].mxu0  ;;  %v1489_v47 = vadd.f32 %v1488_v26, %v1487_v40  ;;  %v1490_v33 = vpop.f32.mrb[14].mxu1 }
 0x112   :  { %v1428_v42 = vadd.f32 %v1427_v32, %v1426_v31  ;;  %v1491_v12 = vpop.f32.mrb[15].mxu1 }
 0x113   :  { %v1492_v34 = vadd.f32 %v1491_v12, %v1490_v33  ;;  %v2168_v35 = vadd.f32 %v1489_v47, %v1425_v30 }
 0x115   :  { %v2170_v36 = vadd.f32 %v1492_v34, %v1428_v42 }
 0x116   :  { %v1429_v37 = vpop.f32.mrb[16].mxu0 }
 0x117   :  { %v1430_v38 = vpop.f32.mrb[17].mxu0  ;;  %v1493_v13 = vpop.f32.mrb[16].mxu1 }
 0x118   :  { %v1431_v39 = vadd.f32 %v1430_v38, %v1429_v37  ;;  %v1432_v43 = vpop.f32.mrb[18].mxu0  ;;  %v1494_v51 = vpop.f32.mrb[17].mxu1  ;;  %v2185_v38 = vld [vmem:[%s2268_s2] ss:$0 sm:$0xff] }
 0x119   :  { %v1433_v44 = vpop.f32.mrb[19].mxu0  ;;  %v1495_v45 = vadd.f32 %v1494_v51, %v1493_v13  ;;  %v1496_v46 = vpop.f32.mrb[18].mxu1 }
 0x11a   :  { %v1434_v23 = vadd.f32 %v1433_v44, %v1432_v43  ;;  %v1497_v48 = vpop.f32.mrb[19].mxu1 }
 0x11b   :  { %v1498_v49 = vadd.f32 %v1497_v48, %v1496_v46  ;;  %v1118_v53 = vadd.f32 %v1495_v45, %v1431_v39 }
 0x11d   :  { %v1121_v54 = vadd.f32 %v1498_v49, %v1434_v23 }
 0x11e   :  { %v1435_v52 = vpop.f32.mrb[20].mxu0 }
 0x11f   :  { %v1436_v57 = vpop.f32.mrb[21].mxu0  ;;  %v1499_v55 = vpop.f32.mrb[20].mxu1 }
 0x120   :  { %v1437_v56 = vadd.f32 %v1436_v57, %v1435_v52  ;;  %v1438_v24 = vpop.f32.mrb[22].mxu0  ;;  %v1500_v59 = vpop.f32.mrb[21].mxu1 }
 0x121   :  { %v1439_v63 = vpop.f32.mrb[23].mxu0  ;;  %v1501_v61 = vadd.f32 %v1500_v59, %v1499_v55  ;;  %v1502_v0 = vpop.f32.mrb[22].mxu1 }
 0x122   :  { %v1440_v3 = vadd.f32 %v1439_v63, %v1438_v24  ;;  %v1503_v4 = vpop.f32.mrb[23].mxu1 }
 0x123   :  { %v1504_v5 = vadd.f32 %v1503_v4, %v1502_v0  ;;  %v1126_v6 = vadd.f32 %v1501_v61, %v1437_v56 }
 0x125   :  { %v2172_v7 = vadd.f32 %v1504_v5, %v1440_v3 }
 0x126   :  { %v1441_v8 = vpop.f32.mrb[24].mxu0 }
 0x127   :  { %v1442_v9 = vpop.f32.mrb[25].mxu0 }
 0x128   :  { %v1505_v10 = vpop.f32.mrb[24].mxu1  ;;  %v1443_v50 = vadd.f32 %v1442_v9, %v1441_v8  ;;  %v1444_v11 = vpop.f32.mrb[26].mxu0 }
 0x129   :  { %v1506_v2 = vpop.f32.mrb[25].mxu1  ;;  %v1445_v14 = vpop.f32.mrb[27].mxu0 }
 0x12a   :  { %v1507_v15 = vadd.f32 %v1506_v2, %v1505_v10  ;;  %v1508_v16 = vpop.f32.mrb[26].mxu1  ;;  %v1446_v17 = vadd.f32 %v1445_v14, %v1444_v11 }
 0x12b   :  { %v1509_v18 = vpop.f32.mrb[27].mxu1 }
 0x12c   :  { %v1510_v19 = vadd.f32 %v1509_v18, %v1508_v16  ;;  %v2174_v20 = vadd.f32 %v1507_v15, %v1443_v50 }
 0x12e   :  { %v2176_v21 = vadd.f32 %v1510_v19, %v1446_v17 }
 0x12f   :  { %v1447_v22 = vpop.f32.mrb[28].mxu0 }
 0x130   :  { %v1448_v41 = vpop.f32.mrb[29].mxu0 }
 0x131   :  { %v1511_v27 = vpop.f32.mrb[28].mxu1  ;;  %v1449_v29 = vadd.f32 %v1448_v41, %v1447_v22  ;;  %v1450_v30 = vpop.f32.mrb[30].mxu0 }
 0x132   :  { %v1512_v31 = vpop.f32.mrb[29].mxu1  ;;  %v1451_v40 = vpop.f32.mrb[31].mxu0 }
 0x133   :  { %v1513_v32 = vadd.f32 %v1512_v31, %v1511_v27  ;;  %v1514_v26 = vpop.f32.mrb[30].mxu1  ;;  %v1452_v42 = vadd.f32 %v1451_v40, %v1450_v30 }
 0x134   :  { %v1515_v47 = vpop.f32.mrb[31].mxu1 }
 0x135   :  { %v1516_v33 = vadd.f32 %v1515_v47, %v1514_v26  ;;  %v2178_v12 = vadd.f32 %v1513_v32, %v1449_v29 }
 0x137   :  { %v2180_v34 = vadd.f32 %v1516_v33, %v1452_v42 }
 0x139   :  { %v1182_v37 = vpop.f32.mrb[32].mxu0  ;;  %v1214_v39 = vpop.f32.mrb[32].mxu1 }
 0x13a   :  { %v1183_v13 = vadd.f32 %v1182_v37, %v2156_v60  ;;  %v1184_v43 = vpop.f32.mrb[33].mxu0  ;;  %v1215_v51 = vadd.f32 %v1214_v39, %v1118_v53  ;;  %v1216_v44 = vpop.f32.mrb[33].mxu1 }
 0x13b   :  { %v1185_v45 = vpop.f32.mrb[34].mxu0  ;;  %v1217_v48 = vpop.f32.mrb[34].mxu1 }
 0x13c   :  { %v1303_v46 = vadd.f32 %v2185_v38, %v1183_v13  ;;  %v1186_v23 = vadd.f32 %v1185_v45, %v2158_v58  ;;  %v1187_v49 = vpop.f32.mrb[35].mxu0  ;;  %v1311_v52 = vadd.f32 %v2185_v38, %v1215_v51  ;;  %v1218_v57 = vadd.f32 %v1217_v48, %v1121_v54  ;;  %v1219_v55 = vpop.f32.mrb[35].mxu1 }
 0x13e   :  { %1319 = vst [vmem:[%s2269_s5] sm:$0xff] %v1303_v46  ;;  %v1304_v60 = vadd.f32 %v2185_v38, %v1186_v23  ;;  %1327 = vst [vmem:[%s2269_s5 + $0x40] sm:$0xff] %v1311_v52  ;;  %v1312_v53 = vadd.f32 %v2185_v38, %v1218_v57 }
 0x140   :  { %1320 = vst [vmem:[%s2269_s5 + $0x8] sm:$0xff] %v1304_v60  ;;  %1328 = vst [vmem:[%s2269_s5 + $0x48] sm:$0xff] %v1312_v53 }
 0x141   :  { %v1190_v58 = vpop.f32.mrb[36].mxu0 }
 0x142   :  { %v1191_v54 = vadd.f32 %v1190_v58, %v2160_v62  ;;  %v1192_v56 = vpop.f32.mrb[37].mxu0 }
 0x143   :  { %v1222_v24 = vpop.f32.mrb[36].mxu1  ;;  %v1193_v59 = vpop.f32.mrb[38].mxu0 }
 0x144   :  { %v1305_v63 = vadd.f32 %v2185_v38, %v1191_v54  ;;  %v1223_v61 = vadd.f32 %v1222_v24, %v1126_v6  ;;  %v1224_v0 = vpop.f32.mrb[37].mxu1  ;;  %v1194_v3 = vadd.f32 %v1193_v59, %v2162_v1  ;;  %v1195_v4 = vpop.f32.mrb[39].mxu0 }
 0x145   :  { %v1225_v5 = vpop.f32.mrb[38].mxu1 }
 0x146   :  { %1321 = vst [vmem:[%s2269_s5 + $0x10] sm:$0xff] %v1305_v63  ;;  %v1313_v8 = vadd.f32 %v2185_v38, %v1223_v61  ;;  %v1306_v9 = vadd.f32 %v2185_v38, %v1194_v3  ;;  %v1226_v62 = vadd.f32 %v1225_v5, %v2172_v7  ;;  %v1227_v10 = vpop.f32.mrb[39].mxu1 }
 0x148   :  { %1329 = vst [vmem:[%s2269_s5 + $0x50] sm:$0xff] %v1313_v8  ;;  %1322 = vst [vmem:[%s2269_s5 + $0x18] sm:$0xff] %v1306_v9  ;;  %v1314_v1 = vadd.f32 %v2185_v38, %v1226_v62 }
 0x14a   :  { %1330 = vst [vmem:[%s2269_s5 + $0x58] sm:$0xff] %v1314_v1 }
 0x14b   :  { %v1198_v6 = vpop.f32.mrb[40].mxu0 }
 0x14c   :  { %v1199_v50 = vadd.f32 %v1198_v6, %v2164_v25  ;;  %v1200_v11 = vpop.f32.mrb[41].mxu0 }
 0x14d   :  { %v1201_v7 = vpop.f32.mrb[42].mxu0  ;;  %v1230_v14 = vpop.f32.mrb[40].mxu1 }
 0x14e   :  { %v1307_v2 = vadd.f32 %v2185_v38, %v1199_v50  ;;  %v1202_v15 = vadd.f32 %v1201_v7, %v2166_v28  ;;  %v1203_v16 = vpop.f32.mrb[43].mxu0  ;;  %v1231_v17 = vadd.f32 %v1230_v14, %v2174_v20  ;;  %v1232_v18 = vpop.f32.mrb[41].mxu1 }
 0x14f   :  { %v1233_v22 = vpop.f32.mrb[42].mxu1 }
 0x150   :  { %1323 = vst [vmem:[%s2269_s5 + $0x20] sm:$0xff] %v1307_v2  ;;  %v1308_v19 = vadd.f32 %v2185_v38, %v1202_v15  ;;  %v1315_v25 = vadd.f32 %v2185_v38, %v1231_v17  ;;  %v1234_v41 = vadd.f32 %v1233_v22, %v2176_v21  ;;  %v1235_v27 = vpop.f32.mrb[43].mxu1 }
 0x152   :  { %1324 = vst [vmem:[%s2269_s5 + $0x28] sm:$0xff] %v1308_v19  ;;  %1331 = vst [vmem:[%s2269_s5 + $0x60] sm:$0xff] %v1315_v25  ;;  %v1316_v28 = vadd.f32 %v2185_v38, %v1234_v41 }
 0x153   :  { %v1206_v20 = vpop.f32.mrb[44].mxu0 }
 0x154   :  { %1332 = vst [vmem:[%s2269_s5 + $0x68] sm:$0xff] %v1316_v28  ;;  %v1207_v29 = vadd.f32 %v1206_v20, %v2168_v35  ;;  %v1208_v30 = vpop.f32.mrb[45].mxu0 }
 0x155   :  { %v1209_v31 = vpop.f32.mrb[46].mxu0 }
 0x156   :  { %v1238_v21 = vpop.f32.mrb[44].mxu1  ;;  %v1309_v40 = vadd.f32 %v2185_v38, %v1207_v29  ;;  %v1210_v42 = vadd.f32 %v1209_v31, %v2170_v36  ;;  %v1211_v47 = vpop.f32.mrb[47].mxu0 }
 0x157   :  { %v1239_v32 = vadd.f32 %v1238_v21, %v2178_v12  ;;  %v1240_v26 = vpop.f32.mrb[45].mxu1 }
 0x158   :  { %v1241_v33 = vpop.f32.mrb[46].mxu1  ;;  %1325 = vst [vmem:[%s2269_s5 + $0x30] sm:$0xff] %v1309_v40  ;;  %v1310_v35 = vadd.f32 %v2185_v38, %v1210_v42 }
 0x159   :  { %v1317_v37 = vadd.f32 %v2185_v38, %v1239_v32  ;;  %v1242_v13 = vadd.f32 %v1241_v33, %v2180_v34  ;;  %v1243_v39 = vpop.f32.mrb[47].mxu1 }
 0x15a   :  { %1326 = vst [vmem:[%s2269_s5 + $0x38] sm:$0xff] %v1310_v35 }
 0x15b   :  { %1333 = vst [vmem:[%s2269_s5 + $0x70] sm:$0xff] %v1317_v37  ;;  %v1318_v36 = vadd.f32 %v2185_v38, %v1242_v13 }
 0x15d   :  { %1334 = vst [vmem:[%s2269_s5 + $0x78] sm:$0xff] %v1318_v36 }

// kernel: densenet_forward.15
= control target key start
LH: loop header
LB: loop body
LE: loop exit
PB: predicated region body
PF: predicated region fallthrough
CT: control target
= control target key end

     0   :  { %s449_s15 = smov 0   ;;  %s475_s0 = inlined_call_operand.vmem [shape: f32[2,4,4,40], index: 0, kind: input, shape index: {}]   ;;  %s476_s1 = inlined_call_operand.vmem [shape: f32[2,4,4,40], index: 1, kind: input, shape index: {}]   ;;  %s477_s2 = inlined_call_operand.vmem [shape: f32[2,4,4,40], index: 2, kind: input, shape index: {}]   ;;  %s478_s3 = inlined_call_operand.vmem [shape: f32[2,4,4,40], index: 3, kind: input, shape index: {}]   ;;  %s479_s4 = inlined_call_operand.vmem [shape: f32[2,4,4,40], index: 4, kind: output, shape index: {}]  }
   0x1 LB: > { %s386_s16 = sadd.s32 4294967295, %s422_s15   ;;  %p390_p0 = scmp.ge.s32.totalorder %s422_s15, 1  ;;  %s422_s15 = sphi %s449_s15, %s14_s15  }
   0x2   : > { %p192_p1 = scmp.lt.s32.totalorder %s422_s15, 3 }
   0x4   : > { %p193_p2 = pnand %p390_p0, %p192_p1 }
   0x5   : > { %p233_p3 = scmp.lt.s32.totalorder (!%p193_p2), %s386_s16, 1  ;;  %vm290_vm0 = vcmask (!%p193_p2), 322560  }
   0x6   : > { %196 = sbr.rel (%p193_p2) target bundleno = 30 (0x1e), region = 36 }
   0xd   : > { %s481_s16 = smov (!%p233_p3, %s386_s16), 1 }
   0xe   : > { %s403_s17 = sshll.u32 %s481_s16, 4 }
   0xf   : > { %s237_s20 = scalar_lea.vmem %s475_s0, %s403_s17  ;;  %s242_s23 = scalar_lea.vmem %s476_s1, %s403_s17 }
  0x10   : > { %s247_s26 = scalar_lea.vmem %s477_s2, %s403_s17  ;;  %s252_s29 = scalar_lea.vmem %s478_s3, %s403_s17  ;;  %v258_v0 = vld [vmem:[%s237_s20] sm:$0xf]  ;;  %v259_v2 = vld [vmem:[%s237_s20 + $0x4] sm:$0xf]  ;;  %v260_v9 = vld [vmem:[%s237_s20 + $0x8] sm:$0xf] }
  0x11   : > { %v262_v1 = vld [vmem:[%s242_s23] sm:$0xf]  ;;  %v263_v5 = vld [vmem:[%s242_s23 + $0x4] sm:$0xf]  ;;  %v264_v12 = vld [vmem:[%s242_s23 + $0x8] sm:$0xf]  ;;  %s257_s6 = scalar_lea.vmem %s479_s4, %s403_s17 }
  0x12   : > { %v266_v3 = vadd.f32 %v262_v1, %v258_v0  ;;  %v270_v4 = vld [vmem:[%s247_s26] sm:$0xf]  ;;  %v267_v7 = vadd.f32 %v263_v5, %v259_v2  ;;  %v271_v8 = vld [vmem:[%s247_s26 + $0x4] sm:$0xf]  ;;  %v272_v13 = vld [vmem:[%s247_s26 + $0x8] sm:$0xf]  ;;  %v268_v15 = vadd.f32 %v264_v12, %v260_v9 }
  0x13   : > { %v278_v6 = vld [vmem:[%s252_s29] sm:$0xf]  ;;  %v279_v11 = vld [vmem:[%s252_s29 + $0x4] sm:$0xf]  ;;  %v261_v16 = vld [vmem:[%s237_s20 + $0xc] sm:$0xf] }
  0x14   : > { %v274_v10 = vadd.f32 %v270_v4, %v266_v3  ;;  %v275_v14 = vadd.f32 %v271_v8, %v267_v7  ;;  %v265_v17 = vld [vmem:[%s242_s23 + $0xc] sm:$0xf]  ;;  %v280_v20 = vld [vmem:[%s252_s29 + $0x8] sm:$0xf]  ;;  %v276_v23 = vadd.f32 %v272_v13, %v268_v15 }
  0x15   : > { %v273_v18 = vld [vmem:[%s247_s26 + $0xc] sm:$0xf]  ;;  %v269_v21 = vadd.f32 %v265_v17, %v261_v16 }
  0x16   : > { %v282_v19 = vadd.f32 %v278_v6, %v274_v10  ;;  %v283_v22 = vadd.f32 %v279_v11, %v275_v14  ;;  %v281_v24 = vld [vmem:[%s252_s29 + $0xc] sm:$0xf]  ;;  %v284_v28 = vadd.f32 %v280_v20, %v276_v23 }
  0x17   : > { %v277_v26 = vadd.f32 %v273_v18, %v269_v21 }
  0x18   : > { %v286_v25 = vmul.f32 0.25, %v282_v19  ;;  %v287_v27 = vmul.f32 0.25, %v283_v22  ;;  %v288_v30 = vmul.f32 0.25, %v284_v28 }
  0x19   : > { %v285_v29 = vadd.f32 %v281_v24, %v277_v26 }
  0x1a   : > { %291 = vst.msk [vmem:[%s257_s6] sm:$0xf] %vm290_vm0, %v286_v25  ;;  %292 = vst.msk [vmem:[%s257_s6 + $0x4] sm:$0xf] %vm290_vm0, %v287_v27 }
  0x1b   : > { %v289_v31 = vmul.f32 0.25, %v285_v29  ;;  %293 = vst.msk [vmem:[%s257_s6 + $0x8] sm:$0xf] %vm290_vm0, %v288_v30 }
  0x1d   : > { %294 = vst.msk [vmem:[%s257_s6 + $0xc] sm:$0xf] %vm290_vm0, %v289_v31 }
  0x1e PF: > { %s14_s15 = sadd.s32 1, %s422_s15  }
  0x1f   : > { %p11_p4 = scmp.ge.s32.totalorder %s14_s15, 4  }
  0x21   :  { %13 = sbr.rel (!%p11_p4) target bundleno = 1 (0x1), region = 75 }

// kernel: densenet_forward.14
= control target key start
LH: loop header
LB: loop body
LE: loop exit
PB: predicated region body
PF: predicated region fallthrough
CT: control target
= control target key end

     0   :  { %vm199_vm0 = vcmask 654336   ;;  %s694_s1 = inlined_call_operand.vmem [shape: bf16[80,128], index: 1, kind: input, shape index: {}]   ;;  %s695_s0 = inlined_call_operand.vmem [shape: bf16[128,80], index: 0, kind: input, shape index: {}]   ;;  %s696_s3 = inlined_call_operand.vmem [shape: f32[1,80], index: 3, kind: input, shape index: {}]   ;;  %s697_s4 = inlined_call_operand.vmem [shape: f32[1,80], index: 4, kind: input, shape index: {}]   ;;  %s698_s2 = inlined_call_operand.vmem [shape: f32[1,128], index: 2, kind: input, shape index: {}]   ;;  %s699_s5 = inlined_call_operand.vmem [shape: f32[128,128], index: 5, kind: output, shape index: {}]  }
   0x1   :  { %v519_v0 = vld [vmem:[%s694_s1] sm:$0xff]   ;;  %v520_v1 = vld [vmem:[%s694_s1 + $0x8] sm:$0xff]   ;;  %v521_v2 = vld [vmem:[%s694_s1 + $0x10] sm:$0xff]  }
   0x2   :  { %483 = vmatprep.subr.bf16.mxu0 %v519_v0  ;;  %509 = vmatprep.subr.bf16.mxu1 %v519_v0  ;;  %v432_v3 = vld [vmem:[%s695_s0] sm:$0xff]   ;;  %v463_v8 = vld [vmem:[%s695_s0 + $0x8] sm:$0xff]   ;;  %v522_v15 = vld [vmem:[%s694_s1 + $0x18] sm:$0xff]  }
   0x3   :  { %484 = vmatpush3.bf16.msra.mxu0 %v519_v0  ;;  %514 = vmatpush3.bf16.msra.mxu1 %v519_v0  ;;  %v569_v4 = vld [vmem:[%s696_s3] ss:$0 sm:$0xff]  ;;  %v433_v5 = vunpack.c.l.bf16 %v432_v3  ;;  %v434_v6 = vunpack.c.h.bf16 %v432_v3  ;;  %v467_v9 = vld [vmem:[%s695_s0 + $0x28] sm:$0xff]   ;;  %v437_v13 = vunpack.c.l.bf16 %v463_v8  ;;  %v438_v14 = vunpack.c.h.bf16 %v463_v8  ;;  %v464_v20 = vld [vmem:[%s695_s0 + $0x10] sm:$0xff]  }
   0x4   :  { %485 = vmatprep.subr.bf16.mxu0 %v520_v1  ;;  %510 = vmatprep.subr.bf16.mxu1 %v520_v1  ;;  %v466_v7 = vld [vmem:[%s695_s0 + $0x20] sm:$0xff]   ;;  %v453_v18 = vunpack.c.l.bf16 %v467_v9  ;;  %v454_v19 = vunpack.c.h.bf16 %v467_v9  ;;  %v441_v32 = vunpack.c.l.bf16 %v464_v20  ;;  %v468_v38 = vld [vmem:[%s695_s0 + $0x30] sm:$0xff]   ;;  %v465_v43 = vld [vmem:[%s695_s0 + $0x18] sm:$0xff]   ;;  %v442_v47 = vunpack.c.h.bf16 %v464_v20 }
   0x5   :  { %v583_v10 = vld [vmem:[%s697_s4] ss:$0 sm:$0xff]  ;;  %v449_v11 = vunpack.c.l.bf16 %v466_v7  ;;  %v450_v12 = vunpack.c.h.bf16 %v466_v7  ;;  %v80_v16 = vmul.f32 %v433_v5, %v569_v4  ;;  %v81_v17 = vmul.f32 %v434_v6, %v569_v4  ;;  %v469_v52 = vld [vmem:[%s695_s0 + $0x38] sm:$0xff]  }
   0x6   :  { %v82_v23 = vmul.f32 %v437_v13, %v569_v4  ;;  %v83_v24 = vmul.f32 %v438_v14, %v569_v4  ;;  %v90_v27 = vmul.f32 %v453_v18, %v569_v4  ;;  %v91_v28 = vmul.f32 %v454_v19, %v569_v4  ;;  %v523_v33 = vld [vmem:[%s694_s1 + $0x20] sm:$0xff]  }
   0x7   :  { %486 = vmatpush3.bf16.msra.mxu0 %v520_v1  ;;  %515 = vmatpush3.bf16.msra.mxu1 %v520_v1  ;;  %v88_v21 = vmul.f32 %v449_v11, %v569_v4  ;;  %v89_v22 = vmul.f32 %v450_v12, %v569_v4  ;;  %v103_v25 = vadd.f32 %v583_v10, %v80_v16  ;;  %v457_v51 = vunpack.c.l.bf16 %v468_v38 }
   0x8   :  { %487 = vmatprep.subr.bf16.mxu0 %v521_v2  ;;  %511 = vmatprep.subr.bf16.mxu1 %v521_v2  ;;  %v104_v26 = vadd.f32 %v583_v10, %v81_v17  ;;  %v105_v31 = vadd.f32 %v583_v10, %v82_v23  ;;  %v106_v36 = vadd.f32 %v583_v10, %v83_v24  ;;  %v458_v55 = vunpack.c.h.bf16 %v468_v38  ;;  %v430_v24 = vld [vmem:[%s698_s2] ss:$0 sm:$0xff] }
   0x9   :  { %v111_v29 = vadd.f32 %v583_v10, %v88_v21  ;;  %v112_v30 = vadd.f32 %v583_v10, %v89_v22  ;;  %v119_v34 = vmax.f32 %v103_v25, 0.0  ;;  %v113_v37 = vadd.f32 %v583_v10, %v90_v27 }
   0xa   :  { %v120_v35 = vmax.f32 %v104_v26, 0.0  ;;  %v121_v41 = vmax.f32 %v105_v31, 0.0  ;;  %v114_v42 = vadd.f32 %v583_v10, %v91_v28  ;;  %v122_v45 = vmax.f32 %v106_v36, 0.0 }
   0xb   :  { %488 = vmatpush3.bf16.msra.mxu0 %v521_v2  ;;  %516 = vmatpush3.bf16.msra.mxu1 %v521_v2  ;;  %v127_v39 = vmax.f32 %v111_v29, 0.0  ;;  %v128_v40 = vmax.f32 %v112_v30, 0.0  ;;  %v129_v46 = vmax.f32 %v113_v37, 0.0  ;;  %v84_v50 = vmul.f32 %v441_v32, %v569_v4 }
   0xc   :  { %489 = vmatprep.subr.bf16.mxu0 %v522_v15  ;;  %512 = vmatprep.subr.bf16.mxu1 %v522_v15  ;;  %v135_v44 = vpack.c.bf16 %v120_v35, %v119_v34  ;;  %v130_v49 = vmax.f32 %v114_v42, 0.0  ;;  %v136_v53 = vpack.c.bf16 %v122_v45, %v121_v41  ;;  %v85_v54 = vmul.f32 %v442_v47, %v569_v4 }
   0xd   :  { %v139_v48 = vpack.c.bf16 %v128_v40, %v127_v39  ;;  %v445_v56 = vunpack.c.l.bf16 %v465_v43  ;;  %v107_v58 = vadd.f32 %v583_v10, %v84_v50  ;;  %v92_v59 = vmul.f32 %v457_v51, %v569_v4 }
   0xe   :  { %493 = vmatprep.mubr.msk.bf16.mxu0 %vm199_vm0, %v135_v44  ;;  %v140_v57 = vpack.c.bf16 %v130_v49, %v129_v46  ;;  %v446_v60 = vunpack.c.h.bf16 %v465_v43  ;;  %v108_v61 = vadd.f32 %v583_v10, %v85_v54  ;;  %v93_v62 = vmul.f32 %v458_v55, %v569_v4 }
   0xf   :  { %490 = vmatpush3.bf16.msra.mxu0 %v522_v15  ;;  %517 = vmatpush3.bf16.msra.mxu1 %v522_v15  ;;  %v86_v63 = vmul.f32 %v445_v56, %v569_v4  ;;  %v461_v0 = vunpack.c.l.bf16 %v469_v52  ;;  %v123_v1 = vmax.f32 %v107_v58, 0.0  ;;  %v115_v2 = vadd.f32 %v583_v10, %v92_v59 }
  0x10   :  { %491 = vmatprep.subr.bf16.mxu0 %v523_v33  ;;  %513 = vmatprep.subr.bf16.mxu1 %v523_v33  ;;  %v87_v3 = vmul.f32 %v446_v60, %v569_v4  ;;  %v462_v5 = vunpack.c.h.bf16 %v469_v52  ;;  %v124_v6 = vmax.f32 %v108_v61, 0.0  ;;  %v116_v7 = vadd.f32 %v583_v10, %v93_v62 }
  0x11   :  { %501 = vmatprep.mubr.msk.bf16.mxu1 %vm199_vm0, %v139_v48  ;;  %v109_v8 = vadd.f32 %v583_v10, %v86_v63  ;;  %v94_v9 = vmul.f32 %v461_v0, %v569_v4  ;;  %v131_v11 = vmax.f32 %v115_v2, 0.0 }
  0x12   :  { %v110_v12 = vadd.f32 %v583_v10, %v87_v3  ;;  %v95_v13 = vmul.f32 %v462_v5, %v569_v4  ;;  %v137_v14 = vpack.c.bf16 %v124_v6, %v123_v1  ;;  %v132_v15 = vmax.f32 %v116_v7, 0.0 }
  0x13   :  { %492 = vmatpush3.bf16.msra.mxu0 %v523_v33  ;;  %518 = vmatpush3.bf16.msra.mxu1 %v523_v33  ;;  %v125_v16 = vmax.f32 %v109_v8, 0.0  ;;  %v117_v17 = vadd.f32 %v583_v10, %v94_v9 }
  0x14   :  { %v126_v18 = vmax.f32 %v110_v12, 0.0  ;;  %v118_v19 = vadd.f32 %v583_v10, %v95_v13  ;;  %v141_v20 = vpack.c.bf16 %v132_v15, %v131_v11 }
  0x15   :  { %v133_v21 = vmax.f32 %v117_v17, 0.0 }
  0x16   :  { %494 = vmatmul.mubr.msk.bf16.vlgmr.msra.gmra.mrb[0].mxu0 %vm199_vm0, %v136_v53  ;;  %502 = vmatmul.mubr.msk.bf16.vlgmr.msra.gmra.mrb[0].mxu1 %vm199_vm0, %v140_v57  ;;  %v134_v22 = vmax.f32 %v118_v19, 0.0  ;;  %v138_v4 = vpack.c.bf16 %v126_v18, %v125_v16 }
  0x17   :  { %497 = vmatprep.mubr.msk.bf16.mxu0 %vm199_vm0, %v137_v14  ;;  %505 = vmatprep.mubr.msk.bf16.mxu1 %vm199_vm0, %v141_v20 }
  0x18   :  { %v142_v23 = vpack.c.bf16 %v134_v22, %v133_v21 }
  0x1e   :  { %498 = vmatmul.mubr.msk.bf16.gmra.mrb[4].mxu0 %vm199_vm0, %v138_v4  ;;  %506 = vmatmul.mubr.msk.bf16.gmra.mrb[4].mxu1 %vm199_vm0, %v142_v23 }
  0xe9   :  { %v495_v25 = vpop.f32.mrb[0].mxu0  ;;  %v503_v26 = vpop.f32.mrb[0].mxu1 }
  0xea   :  { %v381_v10 = vadd.f32 %v495_v25, %v430_v24  ;;  %v389_v27 = vadd.f32 %v503_v26, %v430_v24  ;;  %v258_v28 = vpop.f32.mrb[1].mxu0  ;;  %v290_v29 = vpop.f32.mrb[1].mxu1 }
  0xeb   :  { %v379_v30 = vadd.f32 %v430_v24, %v258_v28  ;;  %v387_v31 = vadd.f32 %v430_v24, %v290_v29  ;;  %v496_v32 = vpop.f32.mrb[2].mxu0  ;;  %v504_v33 = vpop.f32.mrb[2].mxu1 }
  0xec   :  { %397 = vst [vmem:[%s699_s5 + $0x10] sm:$0xff] %v381_v10  ;;  %405 = vst [vmem:[%s699_s5 + $0x50] sm:$0xff] %v389_v27  ;;  %v382_v34 = vadd.f32 %v496_v32, %v430_v24  ;;  %v390_v35 = vadd.f32 %v504_v33, %v430_v24  ;;  %v261_v36 = vpop.f32.mrb[3].mxu0  ;;  %v293_v37 = vpop.f32.mrb[3].mxu1 }
  0xed   :  { %395 = vst [vmem:[%s699_s5] sm:$0xff] %v379_v30  ;;  %403 = vst [vmem:[%s699_s5 + $0x40] sm:$0xff] %v387_v31  ;;  %v380_v38 = vadd.f32 %v430_v24, %v261_v36  ;;  %v388_v39 = vadd.f32 %v430_v24, %v293_v37 }
  0xee   :  { %398 = vst [vmem:[%s699_s5 + $0x18] sm:$0xff] %v382_v34  ;;  %406 = vst [vmem:[%s699_s5 + $0x58] sm:$0xff] %v390_v35 }
  0xef   :  { %396 = vst [vmem:[%s699_s5 + $0x8] sm:$0xff] %v380_v38  ;;  %404 = vst [vmem:[%s699_s5 + $0x48] sm:$0xff] %v388_v39 }
  0xf1   :  { %v499_v40 = vpop.f32.mrb[4].mxu0  ;;  %v507_v41 = vpop.f32.mrb[4].mxu1 }
  0xf2   :  { %v385_v42 = vadd.f32 %v499_v40, %v430_v24  ;;  %v393_v43 = vadd.f32 %v507_v41, %v430_v24  ;;  %v274_v44 = vpop.f32.mrb[5].mxu0  ;;  %v306_v45 = vpop.f32.mrb[5].mxu1 }
  0xf3   :  { %v383_v46 = vadd.f32 %v430_v24, %v274_v44  ;;  %v391_v47 = vadd.f32 %v430_v24, %v306_v45  ;;  %v500_v48 = vpop.f32.mrb[6].mxu0  ;;  %v508_v49 = vpop.f32.mrb[6].mxu1 }
  0xf4   :  { %401 = vst [vmem:[%s699_s5 + $0x30] sm:$0xff] %v385_v42  ;;  %409 = vst [vmem:[%s699_s5 + $0x70] sm:$0xff] %v393_v43  ;;  %v386_v50 = vadd.f32 %v500_v48, %v430_v24  ;;  %v394_v51 = vadd.f32 %v508_v49, %v430_v24  ;;  %v277_v52 = vpop.f32.mrb[7].mxu0  ;;  %v309_v53 = vpop.f32.mrb[7].mxu1 }
  0xf5   :  { %399 = vst [vmem:[%s699_s5 + $0x20] sm:$0xff] %v383_v46  ;;  %407 = vst [vmem:[%s699_s5 + $0x60] sm:$0xff] %v391_v47  ;;  %v384_v54 = vadd.f32 %v430_v24, %v277_v52  ;;  %v392_v55 = vadd.f32 %v430_v24, %v309_v53 }
  0xf6   :  { %402 = vst [vmem:[%s699_s5 + $0x38] sm:$0xff] %v386_v50  ;;  %410 = vst [vmem:[%s699_s5 + $0x78] sm:$0xff] %v394_v51 }
  0xf7   :  { %400 = vst [vmem:[%s699_s5 + $0x28] sm:$0xff] %v384_v54  ;;  %408 = vst [vmem:[%s699_s5 + $0x68] sm:$0xff] %v392_v55 }

// kernel: densenet_forward.16
= control target key start
LH: loop header
LB: loop body
LE: loop exit
PB: predicated region body
PF: predicated region fallthrough
CT: control target
= control target key end

     0   :  { %v51_v12 = vlaneseq  ;;  %vm316_vm0 = vcmask 1043456   ;;  %vm309_vm1 = vcmask 850944   ;;  %s699_s1 = inlined_call_operand.vmem [shape: bf16[360,128], index: 1, kind: input, shape index: {}]   ;;  %s700_s0 = inlined_call_operand.vmem [shape: bf16[32,360], index: 0, kind: input, shape index: {}]   ;;  %s701_s3 = inlined_call_operand.vmem [shape: f32[1,360], index: 3, kind: input, shape index: {}]   ;;  %s702_s4 = inlined_call_operand.vmem [shape: f32[1,360], index: 4, kind: input, shape index: {}]   ;;  %s703_s2 = inlined_call_operand.vmem [shape: f32[1,128], index: 2, kind: input, shape index: {}]   ;;  %s704_s5 = inlined_call_operand.vmem [shape: f32[32,128], index: 5, kind: output, shape index: {}]  }
   0x1   :  { %v534_v0 = vld [vmem:[%s699_s1 + $0x40] sm:$0xff]   ;;  %v536_v2 = vld [vmem:[%s699_s1 + $0x48] sm:$0xff]   ;;  %v539_v5 = vld [vmem:[%s699_s1 + $0x50] sm:$0xff]  }
   0x2   :  { %v535_v1 = vld [vmem:[%s699_s1] sm:$0xff]   ;;  %478 = vmatprep.subr.bf16.mxu0 %v534_v0  ;;  %v537_v3 = vld [vmem:[%s699_s1 + $0x8] sm:$0xff]   ;;  %v540_v6 = vld [vmem:[%s699_s1 + $0x10] sm:$0xff]   ;;  %v52_v17 = vshrl.u32 %v51_v12, 7 }
   0x3   :  { %479 = vmatpush3.bf16.msra.mxu0 %v535_v1  ;;  %v538_v4 = vld [vmem:[%s699_s1 + $0x80] sm:$0xff]   ;;  %v541_v7 = vld [vmem:[%s699_s1 + $0x88] sm:$0xff]   ;;  %v542_v8 = vld [vmem:[%s699_s1 + $0x58] sm:$0xff]  }
   0x4   :  { %480 = vmatprep.subr.bf16.mxu0 %v536_v2  ;;  %515 = vmatprep.subr.bf16.mxu1 %v538_v4  ;;  %v544_v9 = vld [vmem:[%s699_s1 + $0x90] sm:$0xff]   ;;  %v543_v10 = vld [vmem:[%s699_s1 + $0x18] sm:$0xff]   ;;  %v545_v11 = vld [vmem:[%s699_s1 + $0x60] sm:$0xff]   ;;  %v57_v21 = vsub.s32 1, %v52_v17  ;;  %v53_v23 = vsub.s32 0, %v52_v17  ;;  %v61_v26 = vsub.s32 2, %v52_v17 }
   0x5   :  { %516 = vmatpush3.bf16.msra.mxu1 %v538_v4  ;;  %v547_v13 = vld [vmem:[%s699_s1 + $0x98] sm:$0xff]   ;;  %v546_v14 = vld [vmem:[%s699_s1 + $0x20] sm:$0xff]   ;;  %v548_v15 = vld [vmem:[%s699_s1 + $0x68] sm:$0xff]  }
   0x6   :  { %517 = vmatprep.subr.bf16.mxu1 %v541_v7  ;;  %v550_v16 = vld [vmem:[%s699_s1 + $0xa0] sm:$0xff]   ;;  %v549_v18 = vld [vmem:[%s699_s1 + $0x28] sm:$0xff]   ;;  %v551_v19 = vld [vmem:[%s699_s1 + $0x70] sm:$0xff]  }
   0x7   :  { %481 = vmatpush3.bf16.msra.mxu0 %v537_v3  ;;  %v553_v20 = vld [vmem:[%s699_s1 + $0xa8] sm:$0xff]   ;;  %v552_v22 = vld [vmem:[%s699_s1 + $0x30] sm:$0xff]   ;;  %v29_v25 = vld [vmem:[%s700_s0] sm:$0xff] }
   0x8   :  { %482 = vmatprep.subr.bf16.mxu0 %v539_v5  ;;  %v556_v24 = vld [vmem:[%s699_s1 + $0xb0] ss:$0 sps:$4 sm:$0xff]   ;;  %v37_v28 = vunpack.c.l.bf16 %v29_v25  ;;  %v38_v29 = vunpack.c.h.bf16 %v29_v25  ;;  %v49_v30 = vld [vmem:[%s701_s3] sm:$0x7]  ;;  %v554_v32 = vld [vmem:[%s699_s1 + $0x78] sm:$0xff]  }
   0x9   :  { %518 = vmatpush3.bf16.msra.mxu1 %v541_v7  ;;  %v31_v27 = vld [vmem:[%s700_s0 + $0xc] sm:$0xff]  ;;  %v78_v31 = vld [vmem:[%s702_s4] sm:$0x7]  ;;  %v58_v35 = vrot.slane %v49_v30, %v57_v21  ;;  %v30_v37 = vld [vmem:[%s700_s0 + $0x8] ss:$12 sps:$4 sm:$0xff]   ;;  %v318_v39 = vsel %vm316_vm0, %v556_v24, 0  ;;  %v54_v40 = vrot.slane %v49_v30, %v53_v23  ;;  %v62_v46 = vrot.slane %v49_v30, %v61_v26 }
   0xa   :  { %519 = vmatprep.subr.bf16.mxu1 %v544_v9  ;;  %v40_v33 = vunpack.c.l.bf16 %v31_v27  ;;  %v41_v34 = vunpack.c.h.bf16 %v31_v27  ;;  %v87_v36 = vrot.slane %v78_v31, %v57_v21  ;;  %v34_v38 = vld [vmem:[%s700_s0 + $0x20] ss:$12 sps:$4 sm:$0xff]   ;;  %v83_v41 = vrot.slane %v78_v31, %v53_v23  ;;  %v555_v47 = vld [vmem:[%s699_s1 + $0x38] sm:$0xff]   ;;  %v35_v1 = vld [vmem:[%s700_s0 + $0x24] sm:$0xff] }
   0xb   :  { %483 = vmatpush3.bf16.msra.mxu0 %v540_v6  ;;  %v39_v42 = vunpack.c.l.bf16 %v30_v37  ;;  %v67_v43 = vmul.f32 %v58_v35, %v38_v29  ;;  %v42_v45 = vunpack.c.h.bf16 %v30_v37  ;;  %v66_v48 = vmul.f32 %v54_v40, %v37_v28  ;;  %v33_v60 = vld [vmem:[%s700_s0 + $0x18] sm:$0xff] }
   0xc   :  { %484 = vmatprep.subr.bf16.mxu0 %v542_v8  ;;  %v70_v44 = vmul.f32 %v58_v35, %v41_v34  ;;  %v69_v49 = vmul.f32 %v54_v40, %v40_v33  ;;  %v91_v50 = vrot.slane %v78_v31, %v61_v26  ;;  %v45_v51 = vunpack.c.l.bf16 %v34_v38 }
   0xd   :  { %520 = vmatpush3.bf16.msra.mxu1 %v544_v9  ;;  %v96_v52 = vadd.f32 %v87_v36, %v67_v43  ;;  %v68_v54 = vmul.f32 %v62_v46, %v39_v42  ;;  %v48_v55 = vunpack.c.h.bf16 %v34_v38  ;;  %v95_v56 = vadd.f32 %v83_v41, %v66_v48  ;;  %v477_v42 = vld [vmem:[%s703_s2] ss:$0 sm:$0xff] }
   0xe   :  { %521 = vmatprep.subr.bf16.mxu1 %v547_v13  ;;  %v99_v53 = vadd.f32 %v87_v36, %v70_v44  ;;  %v98_v57 = vadd.f32 %v83_v41, %v69_v49  ;;  %v71_v58 = vmul.f32 %v62_v46, %v42_v45  ;;  %v74_v59 = vmul.f32 %v62_v46, %v45_v51 }
   0xf   :  { %485 = vmatpush3.bf16.msra.mxu0 %v543_v10  ;;  %v108_v61 = vmax.f32 %v96_v52, 0.0  ;;  %v97_v63 = vadd.f32 %v91_v50, %v68_v54  ;;  %v77_v0 = vmul.f32 %v62_v46, %v48_v55  ;;  %v107_v2 = vmax.f32 %v95_v56, 0.0 }
  0x10   :  { %486 = vmatprep.subr.bf16.mxu0 %v545_v11  ;;  %v111_v62 = vmax.f32 %v99_v53, 0.0  ;;  %v110_v3 = vmax.f32 %v98_v57, 0.0  ;;  %v100_v4 = vadd.f32 %v91_v50, %v71_v58  ;;  %v103_v5 = vadd.f32 %v91_v50, %v74_v59 }
  0x11   :  { %522 = vmatpush3.bf16.msra.mxu1 %v547_v13  ;;  %v109_v7 = vmax.f32 %v97_v63, 0.0  ;;  %v106_v8 = vadd.f32 %v91_v50, %v77_v0  ;;  %v44_v9 = vunpack.c.h.bf16 %v33_v60  ;;  %v47_v13 = vunpack.c.h.bf16 %v35_v1 }
  0x12   :  { %523 = vmatprep.subr.bf16.mxu1 %v550_v16  ;;  %v120_v6 = vpack.c.bf16 %v111_v62, %v108_v61  ;;  %v119_v10 = vpack.c.bf16 %v110_v3, %v107_v2  ;;  %v112_v11 = vmax.f32 %v100_v4, 0.0  ;;  %v115_v12 = vmax.f32 %v103_v5, 0.0 }
  0x13   :  { %487 = vmatpush3.bf16.msra.mxu0 %v546_v14  ;;  %v118_v14 = vmax.f32 %v106_v8, 0.0  ;;  %v46_v17 = vunpack.c.l.bf16 %v35_v1 }
  0x14   :  { %488 = vmatprep.subr.bf16.mxu0 %v548_v15  ;;  %352 = vmatprep.mubr.bf16.mxu0 %v120_v6  ;;  %v73_v15 = vmul.f32 %v58_v35, %v44_v9 }
  0x15   :  { %524 = vmatpush3.bf16.msra.mxu1 %v550_v16  ;;  %v43_v16 = vunpack.c.l.bf16 %v33_v60  ;;  %v75_v23 = vmul.f32 %v54_v40, %v46_v17 }
  0x16   :  { %525 = vmatprep.subr.bf16.mxu1 %v553_v20  ;;  %v102_v21 = vadd.f32 %v87_v36, %v73_v15 }
  0x17   :  { %489 = vmatpush3.bf16.msra.mxu0 %v549_v18  ;;  %v121_v18 = vpack.c.bf16 %v112_v11, %v109_v7  ;;  %v104_v27 = vadd.f32 %v83_v41, %v75_v23 }
  0x18   :  { %490 = vmatprep.subr.bf16.mxu0 %v551_v19  ;;  %v76_v19 = vmul.f32 %v58_v35, %v47_v13  ;;  %v114_v25 = vmax.f32 %v102_v21, 0.0 }
  0x19   :  { %526 = vmatpush3.bf16.msra.mxu1 %v553_v20  ;;  %v124_v20 = vpack.c.bf16 %v118_v14, %v115_v12  ;;  %529 = vmatprep.mubr.msk.bf16.mxu1 %vm309_vm1, %v121_v18  ;;  %v116_v30 = vmax.f32 %v104_v27, 0.0 }
  0x1a   :  { %533 = vmatprep.subr.msk.bf16.mxu1 %vm316_vm0, %v556_v24  ;;  %v105_v24 = vadd.f32 %v87_v36, %v76_v19 }
  0x1b   :  { %491 = vmatpush3.bf16.msra.mxu0 %v552_v22  ;;  %v72_v22 = vmul.f32 %v54_v40, %v43_v16 }
  0x1c   :  { %492 = vmatprep.subr.bf16.mxu0 %v554_v32  ;;  %v117_v28 = vmax.f32 %v105_v24, 0.0 }
  0x1d   :  { %528 = vmatpush3.bf16.msra.mxu1 %v318_v39  ;;  %v101_v26 = vadd.f32 %v83_v41, %v72_v22 }
  0x1e   :  { %v123_v31 = vpack.c.bf16 %v117_v28, %v114_v25 }
  0x1f   :  { %493 = vmatpush3.bf16.msra.mxu0 %v555_v47  ;;  %v113_v29 = vmax.f32 %v101_v26, 0.0 }
  0x20   :  { %530 = vmatmul.mubr.msk.bf16.vlgmr.msra.gmra.mrb[0].mxu1 %vm309_vm1, %v124_v20 }
  0x21   :  { %v122_v32 = vpack.c.bf16 %v116_v30, %v113_v29 }
  0x22   :  { %353 = vmatmul.mubr.bf16.vlgmr.msra.gmra.mrb[0].mxu0 %v119_v10 }
  0x23   :  { %360 = vmatprep.mubr.bf16.mxu0 %v123_v31 }
  0x2a   :  { %361 = vmatmul.mubr.bf16.gmra.mrb[4].mxu0 %v122_v32 }
  0xf3   :  { %v531_v38 = vpop.f32.mrb[0].mxu1 }
  0xf4   :  { %v403_v36 = vpop.f32.mrb[1].mxu1 }
  0xf5   :  { %v494_v33 = vpop.f32.mrb[0].mxu0  ;;  %v532_v43 = vpop.f32.mrb[2].mxu1 }
  0xf6   :  { %v495_v34 = vpop.f32.mrb[1].mxu0  ;;  %v406_v44 = vpop.f32.mrb[3].mxu1 }
  0xf7   :  { %v496_v35 = vadd.f32 %v495_v34, %v494_v33  ;;  %v497_v37 = vpop.f32.mrb[2].mxu0 }
  0xf8   :  { %v498_v39 = vpop.f32.mrb[3].mxu0 }
  0xf9   :  { %v499_v40 = vadd.f32 %v498_v39, %v497_v37  ;;  %v404_v41 = vadd.f32 %v496_v35, %v403_v36 }
  0xfb   :  { %v440_v45 = vadd.f32 %v477_v42, %v404_v41  ;;  %v407_v46 = vadd.f32 %v499_v40, %v406_v44 }
  0xfd   :  { %444 = vst [vmem:[%s704_s5] sm:$0xff] %v440_v45  ;;  %v441_v47 = vadd.f32 %v477_v42, %v407_v46  ;;  %v500_v48 = vpop.f32.mrb[4].mxu0 }
  0xfe   :  { %v501_v49 = vpop.f32.mrb[5].mxu0 }
  0xff   :  { %445 = vst [vmem:[%s704_s5 + $0x8] sm:$0xff] %v441_v47  ;;  %v502_v50 = vadd.f32 %v501_v49, %v500_v48  ;;  %v503_v51 = vpop.f32.mrb[6].mxu0 }
 0x100   :  { %v504_v52 = vpop.f32.mrb[7].mxu0 }
 0x101   :  { %v412_v53 = vadd.f32 %v531_v38, %v502_v50  ;;  %v505_v54 = vadd.f32 %v504_v52, %v503_v51 }
 0x103   :  { %v442_v55 = vadd.f32 %v477_v42, %v412_v53  ;;  %v415_v56 = vadd.f32 %v532_v43, %v505_v54 }
 0x105   :  { %446 = vst [vmem:[%s704_s5 + $0x10] sm:$0xff] %v442_v55  ;;  %v443_v57 = vadd.f32 %v477_v42, %v415_v56 }
 0x107   :  { %447 = vst [vmem:[%s704_s5 + $0x18] sm:$0xff] %v443_v57 }

// kernel: densenet_forward.17
= control target key start
LH: loop header
LB: loop body
LE: loop exit
PB: predicated region body
PF: predicated region fallthrough
CT: control target
= control target key end

     0   :  { %v598_v0 = vmov 0   ;;  %v55_v14 = vlaneseq  ;;  %vm373_vm0 = vcmask 392192   ;;  %s810_s1 = inlined_call_operand.vmem [shape: bf16[432,128], index: 1, kind: input, shape index: {}]   ;;  %s811_s0 = inlined_call_operand.vmem [shape: bf16[32,432], index: 0, kind: input, shape index: {}]   ;;  %s812_s3 = inlined_call_operand.vmem [shape: f32[1,432], index: 3, kind: input, shape index: {}]   ;;  %s813_s4 = inlined_call_operand.vmem [shape: f32[1,432], index: 4, kind: input, shape index: {}]   ;;  %s814_s2 = inlined_call_operand.vmem [shape: f32[1,128], index: 2, kind: input, shape index: {}]   ;;  %s815_s5 = inlined_call_operand.vmem [shape: f32[32,128], index: 5, kind: output, shape index: {}]  }
   0x1   :  { %429 = vmatprep.subr.bf16.mxu1 %v598_v0  ;;  %v571_v1 = vld [vmem:[%s810_s1 + $0x80] sm:$0xff]   ;;  %v572_v2 = vld [vmem:[%s810_s1 + $0x88] sm:$0xff]   ;;  %v575_v5 = vld [vmem:[%s810_s1 + $0x90] sm:$0xff]  }
   0x2   :  { %430 = vmatpush1.bf16.msra.mxu1 %v571_v1  ;;  %v573_v3 = vld [vmem:[%s810_s1 + $0x40] sm:$0xff]   ;;  %v576_v6 = vld [vmem:[%s810_s1 + $0x48] sm:$0xff]   ;;  %v579_v8 = vld [vmem:[%s810_s1 + $0x50] sm:$0xff]   ;;  %v56_v18 = vshrl.u32 %v55_v14, 7 }
   0x3   :  { %431 = vmatprep.subr.bf16.mxu1 %v598_v0  ;;  %v574_v4 = vld [vmem:[%s810_s1] sm:$0xff]   ;;  %542 = vmatprep.subr.bf16.mxu0 %v573_v3  ;;  %v577_v7 = vld [vmem:[%s810_s1 + $0x8] sm:$0xff]   ;;  %v580_v9 = vld [vmem:[%s810_s1 + $0x10] sm:$0xff]  }
   0x4   :  { %543 = vmatpush3.bf16.msra.mxu0 %v574_v4  ;;  %v578_v10 = vld [vmem:[%s810_s1 + $0x98] sm:$0xff]   ;;  %v581_v12 = vld [vmem:[%s810_s1 + $0xa0] sm:$0xff]   ;;  %v584_v16 = vld [vmem:[%s810_s1 + $0xa8] sm:$0xff]   ;;  %v61_v22 = vsub.s32 1, %v56_v18  ;;  %v57_v24 = vsub.s32 0, %v56_v18  ;;  %v69_v26 = vsub.s32 3, %v56_v18 }
   0x5   :  { %544 = vmatprep.subr.bf16.mxu0 %v576_v6  ;;  %v582_v11 = vld [vmem:[%s810_s1 + $0x58] sm:$0xff]   ;;  %v585_v15 = vld [vmem:[%s810_s1 + $0x60] sm:$0xff]   ;;  %v588_v19 = vld [vmem:[%s810_s1 + $0x68] sm:$0xff]   ;;  %v65_v29 = vsub.s32 2, %v56_v18 }
   0x6   :  { %432 = vmatpush1.bf16.msra.mxu1 %v572_v2  ;;  %v583_v13 = vld [vmem:[%s810_s1 + $0x18] sm:$0xff]   ;;  %v586_v17 = vld [vmem:[%s810_s1 + $0x20] sm:$0xff]   ;;  %v587_v20 = vld [vmem:[%s810_s1 + $0xb0] sm:$0xff]  }
   0x7   :  { %433 = vmatprep.subr.bf16.mxu1 %v598_v0  ;;  %v589_v21 = vld [vmem:[%s810_s1 + $0x28] sm:$0xff]   ;;  %v591_v23 = vld [vmem:[%s810_s1 + $0x70] sm:$0xff]   ;;  %v590_v27 = vld [vmem:[%s810_s1 + $0xb8] sm:$0xff]  }
   0x8   :  { %545 = vmatpush3.bf16.msra.mxu0 %v577_v7  ;;  %v592_v25 = vld [vmem:[%s810_s1 + $0x30] sm:$0xff]   ;;  %v594_v28 = vld [vmem:[%s810_s1 + $0x78] sm:$0xff]   ;;  %v29_v30 = vld [vmem:[%s811_s0] sm:$0xff] }
   0x9   :  { %546 = vmatprep.subr.bf16.mxu0 %v579_v8  ;;  %v31_v31 = vld [vmem:[%s811_s0 + $0x10] sm:$0xff]  ;;  %v53_v32 = vld [vmem:[%s812_s3] sm:$0xf]  ;;  %v37_v33 = vunpack.c.l.bf16 %v29_v30  ;;  %v38_v34 = vunpack.c.h.bf16 %v29_v30  ;;  %v30_v42 = vld [vmem:[%s811_s0 + $0x8] sm:$0xff] }
   0xa   :  { %434 = vmatpush1.bf16.msra.mxu1 %v575_v5  ;;  %v41_v35 = vunpack.c.l.bf16 %v31_v31  ;;  %v42_v36 = vunpack.c.h.bf16 %v31_v31  ;;  %v91_v37 = vld [vmem:[%s813_s4] sm:$0xf]  ;;  %v62_v38 = vrot.slane %v53_v32, %v61_v22  ;;  %v720_v40 = vrot.slane %v53_v32, %v57_v24  ;;  %v32_v43 = vld [vmem:[%s811_s0 + $0x18] sm:$0xff]  ;;  %v35_v4 = vld [vmem:[%s811_s0 + $0x30] sm:$0xff] }
   0xb   :  { %435 = vmatprep.subr.bf16.mxu1 %v598_v0  ;;  %v718_v39 = vrot.slane %v91_v37, %v61_v22  ;;  %v722_v41 = vrot.slane %v91_v37, %v57_v24  ;;  %v730_v44 = vrot.slane %v53_v32, %v69_v26  ;;  %v732_v45 = vrot.slane %v91_v37, %v69_v26  ;;  %v595_v48 = vld [vmem:[%s810_s1 + $0x38] sm:$0xff]   ;;  %v593_v53 = vld [vmem:[%s810_s1 + $0xc0] sm:$0xff]   ;;  %v34_v18 = vld [vmem:[%s811_s0 + $0x28] sm:$0xff] }
   0xc   :  { %547 = vmatpush3.bf16.msra.mxu0 %v580_v9  ;;  %v734_v46 = vrot.slane %v53_v32, %v65_v29  ;;  %v736_v47 = vrot.slane %v91_v37, %v65_v29  ;;  %v76_v49 = vmul.f32 %v62_v38, %v38_v34  ;;  %v80_v50 = vmul.f32 %v62_v38, %v42_v36  ;;  %v33_v3 = vld [vmem:[%s811_s0 + $0x20] sm:$0xff]  ;;  %v596_v9 = vld [vmem:[%s810_s1 + $0xc8] sm:$0xff]  }
   0xd   :  { %548 = vmatprep.subr.bf16.mxu0 %v582_v11  ;;  %v75_v51 = vmul.f32 %v720_v40, %v37_v33  ;;  %v79_v52 = vmul.f32 %v720_v40, %v41_v35  ;;  %v39_v54 = vunpack.c.l.bf16 %v30_v42  ;;  %v40_v55 = vunpack.c.h.bf16 %v30_v42 }
   0xe   :  { %436 = vmatpush1.bf16.msra.mxu1 %v578_v10  ;;  %v43_v56 = vunpack.c.l.bf16 %v32_v43  ;;  %v44_v57 = vunpack.c.h.bf16 %v32_v43  ;;  %v114_v58 = vadd.f32 %v718_v39, %v76_v49  ;;  %v118_v59 = vadd.f32 %v718_v39, %v80_v50 }
   0xf   :  { %437 = vmatprep.subr.bf16.mxu1 %v598_v0  ;;  %v113_v60 = vadd.f32 %v722_v41, %v75_v51  ;;  %v117_v61 = vadd.f32 %v722_v41, %v79_v52  ;;  %v78_v62 = vmul.f32 %v730_v44, %v40_v55  ;;  %v77_v1 = vmul.f32 %v734_v46, %v39_v54 }
  0x10   :  { %549 = vmatpush3.bf16.msra.mxu0 %v583_v13  ;;  %v82_v63 = vmul.f32 %v730_v44, %v44_v57  ;;  %v81_v2 = vmul.f32 %v734_v46, %v43_v56  ;;  %v130_v5 = vmax.f32 %v114_v58, 0.0  ;;  %v134_v6 = vmax.f32 %v118_v59, 0.0 }
  0x11   :  { %550 = vmatprep.subr.bf16.mxu0 %v585_v15  ;;  %v129_v7 = vmax.f32 %v113_v60, 0.0  ;;  %v133_v8 = vmax.f32 %v117_v61, 0.0  ;;  %v116_v10 = vadd.f32 %v732_v45, %v78_v62  ;;  %v45_v26 = vunpack.c.l.bf16 %v33_v3 }
  0x12   :  { %438 = vmatpush1.bf16.msra.mxu1 %v581_v12  ;;  %v120_v11 = vadd.f32 %v732_v45, %v82_v63  ;;  %v115_v12 = vadd.f32 %v736_v47, %v77_v1  ;;  %v119_v13 = vadd.f32 %v736_v47, %v81_v2  ;;  %v146_v14 = vpack.c.bf16 %v134_v6, %v130_v5 }
  0x13   :  { %439 = vmatprep.subr.bf16.mxu1 %v598_v0  ;;  %v145_v15 = vpack.c.bf16 %v133_v8, %v129_v7  ;;  %v48_v31 = vunpack.c.h.bf16 %v34_v18  ;;  %v83_v35 = vmul.f32 %v720_v40, %v45_v26  ;;  %v47_v42 = vunpack.c.l.bf16 %v34_v18 }
  0x14   :  { %551 = vmatpush3.bf16.msra.mxu0 %v586_v17  ;;  %v50_v17 = vunpack.c.h.bf16 %v35_v4  ;;  %v131_v22 = vmax.f32 %v115_v12, 0.0  ;;  %412 = vmatprep.mubr.bf16.mxu0 %v146_v14 }
  0x15   :  { %552 = vmatprep.subr.bf16.mxu0 %v588_v19  ;;  %v36_v19 = vld [vmem:[%s811_s0 + $0x38] sm:$0xff]  ;;  %v86_v37 = vmul.f32 %v730_v44, %v48_v31 }
  0x16   :  { %440 = vmatpush1.bf16.msra.mxu1 %v584_v16  ;;  %v46_v16 = vunpack.c.h.bf16 %v33_v3  ;;  %v52_v32 = vunpack.c.h.bf16 %v36_v19  ;;  %v51_v43 = vunpack.c.l.bf16 %v36_v19 }
  0x17   :  { %441 = vmatprep.subr.bf16.mxu1 %v598_v0 }
  0x18   :  { %553 = vmatpush3.bf16.msra.mxu0 %v589_v21  ;;  %v136_v21 = vmax.f32 %v120_v11, 0.0  ;;  %v84_v24 = vmul.f32 %v62_v38, %v46_v16  ;;  %v89_v52 = vmul.f32 %v734_v46, %v51_v43 }
  0x19   :  { %554 = vmatprep.subr.bf16.mxu0 %v591_v23  ;;  %v135_v23 = vmax.f32 %v119_v13, 0.0 }
  0x1a   :  { %442 = vmatpush1.bf16.msra.mxu1 %v587_v20  ;;  %v132_v20 = vmax.f32 %v116_v10, 0.0  ;;  %v122_v33 = vadd.f32 %v718_v39, %v84_v24  ;;  %v127_v58 = vadd.f32 %v736_v47, %v89_v52 }
  0x1b   :  { %443 = vmatprep.subr.bf16.mxu1 %v598_v0  ;;  %v147_v30 = vpack.c.bf16 %v135_v23, %v131_v22 }
  0x1c   :  { %555 = vmatpush3.bf16.msra.mxu0 %v592_v25  ;;  %v88_v25 = vmul.f32 %v62_v38, %v50_v17  ;;  %v148_v29 = vpack.c.bf16 %v136_v21, %v132_v20  ;;  %v90_v38 = vmul.f32 %v730_v44, %v52_v32  ;;  %v143_v61 = vmax.f32 %v127_v58, 0.0 }
  0x1d   :  { %556 = vmatprep.subr.bf16.mxu0 %v594_v28  ;;  %v597_v28 = vld [vmem:[%s810_s1 + $0xd0] sm:$0xff]  }
  0x1e   :  { %444 = vmatpush1.bf16.msra.mxu1 %v590_v27  ;;  %v49_v27 = vunpack.c.l.bf16 %v35_v4  ;;  %v126_v34 = vadd.f32 %v718_v39, %v88_v25  ;;  %539 = vmatprep.mubr.msk.bf16.mxu1 %vm373_vm0, %v148_v29  ;;  %v124_v39 = vadd.f32 %v732_v45, %v86_v37  ;;  %v128_v51 = vadd.f32 %v732_v45, %v90_v38 }
  0x1f   :  { %445 = vmatprep.subr.bf16.mxu1 %v598_v0 }
  0x20   :  { %557 = vmatpush3.bf16.msra.mxu0 %v595_v48  ;;  %v87_v36 = vmul.f32 %v720_v40, %v49_v27  ;;  %v138_v48 = vmax.f32 %v122_v33, 0.0  ;;  %v142_v49 = vmax.f32 %v126_v34, 0.0  ;;  %v85_v40 = vmul.f32 %v734_v46, %v47_v42 }
  0x21   :  { %v140_v55 = vmax.f32 %v124_v39, 0.0  ;;  %v144_v56 = vmax.f32 %v128_v51, 0.0 }
  0x22   :  { %446 = vmatpush1.bf16.msra.mxu1 %v593_v53  ;;  %v125_v50 = vadd.f32 %v722_v41, %v87_v36  ;;  %v150_v53 = vpack.c.bf16 %v142_v49, %v138_v48  ;;  %v123_v57 = vadd.f32 %v736_v47, %v85_v40  ;;  %v541_v47 = vld [vmem:[%s814_s2] ss:$0 sm:$0xff] }
  0x23   :  { %447 = vmatprep.subr.bf16.mxu1 %v598_v0  ;;  %413 = vmatmul.mubr.bf16.vlgmr.msra.gmra.mrb[0].mxu0 %v145_v15  ;;  %v152_v59 = vpack.c.bf16 %v144_v56, %v140_v55 }
  0x24   :  { %v141_v44 = vmax.f32 %v125_v50, 0.0  ;;  %420 = vmatprep.mubr.bf16.mxu0 %v150_v53  ;;  %v139_v60 = vmax.f32 %v123_v57, 0.0 }
  0x26   :  { %448 = vmatpush1.bf16.msra.mxu1 %v596_v9  ;;  %v151_v45 = vpack.c.bf16 %v143_v61, %v139_v60 }
  0x27   :  { %449 = vmatprep.subr.bf16.mxu1 %v598_v0  ;;  %v121_v0 = vadd.f32 %v722_v41, %v83_v35 }
  0x29   :  { %v137_v54 = vmax.f32 %v121_v0, 0.0 }
  0x2a   :  { %450 = vmatpush1.bf16.msra.mxu1 %v597_v28 }
  0x2b   :  { %v149_v41 = vpack.c.bf16 %v141_v44, %v137_v54 }
  0x2d   :  { %462 = vmatmul.mubr.bf16.vlgmr.msra.gmra.mrb[0].mxu1 %v147_v30  ;;  %421 = vmatmul.mubr.bf16.gmra.mrb[4].mxu0 %v149_v41 }
  0x2e   :  { %540 = vmatprep.mubr.msk.bf16.mxu1 %vm373_vm0, %v152_v59 }
  0x35   :  { %470 = vmatmul.mubr.bf16.gmra.mrb[4].mxu1 %v151_v45 }
  0xf6   :  { %v558_v46 = vpop.f32.mrb[0].mxu0 }
  0xf7   :  { %v559_v62 = vpop.f32.mrb[1].mxu0 }
  0xf8   :  { %v560_v63 = vadd.f32 %v559_v62, %v558_v46  ;;  %v561_v1 = vpop.f32.mrb[2].mxu0 }
  0xf9   :  { %v562_v2 = vpop.f32.mrb[3].mxu0 }
  0xfa   :  { %v563_v3 = vadd.f32 %v562_v2, %v561_v1 }
 0x100   :  { %v463_v4 = vpop.f32.mrb[0].mxu1  ;;  %v564_v7 = vpop.f32.mrb[4].mxu0 }
 0x101   :  { %v464_v5 = vadd.f32 %v560_v63, %v463_v4  ;;  %v465_v6 = vpop.f32.mrb[1].mxu1  ;;  %v565_v11 = vpop.f32.mrb[5].mxu0 }
 0x102   :  { %v466_v8 = vpop.f32.mrb[2].mxu1  ;;  %v566_v13 = vadd.f32 %v565_v11, %v564_v7  ;;  %v567_v14 = vpop.f32.mrb[6].mxu0 }
 0x103   :  { %v500_v9 = vadd.f32 %v541_v47, %v464_v5  ;;  %v467_v10 = vadd.f32 %v563_v3, %v466_v8  ;;  %v468_v12 = vpop.f32.mrb[3].mxu1  ;;  %v568_v16 = vpop.f32.mrb[7].mxu0 }
 0x104   :  { %v569_v17 = vadd.f32 %v568_v16, %v567_v14 }
 0x105   :  { %504 = vst [vmem:[%s815_s5] sm:$0xff] %v500_v9  ;;  %v501_v15 = vadd.f32 %v541_v47, %v467_v10 }
 0x107   :  { %505 = vst [vmem:[%s815_s5 + $0x8] sm:$0xff] %v501_v15 }
 0x108   :  { %v471_v18 = vpop.f32.mrb[4].mxu1 }
 0x109   :  { %v472_v19 = vadd.f32 %v566_v13, %v471_v18  ;;  %v473_v20 = vpop.f32.mrb[5].mxu1 }
 0x10a   :  { %v474_v21 = vpop.f32.mrb[6].mxu1 }
 0x10b   :  { %v502_v22 = vadd.f32 %v541_v47, %v472_v19  ;;  %v475_v23 = vadd.f32 %v569_v17, %v474_v21  ;;  %v476_v24 = vpop.f32.mrb[7].mxu1 }
 0x10d   :  { %506 = vst [vmem:[%s815_s5 + $0x10] sm:$0xff] %v502_v22  ;;  %v503_v25 = vadd.f32 %v541_v47, %v475_v23 }
 0x10f   :  { %507 = vst [vmem:[%s815_s5 + $0x18] sm:$0xff] %v503_v25 }

// kernel: densenet_forward.18
= control target key start
LH: loop header
LB: loop body
LE: loop exit
PB: predicated region body
PF: predicated region fallthrough
CT: control target
= control target key end

     0   :  { %s303_s12 = smov 0   ;;  %s330_s0 = inlined_call_operand.vmem [shape: f32[2,4,4,56], index: 0, kind: input, shape index: {}]   ;;  %s331_s1 = inlined_call_operand.vmem [shape: f32[1,1,1,56], index: 1, kind: input, shape index: {}]   ;;  %s332_s2 = inlined_call_operand.vmem [shape: f32[1,1,1,56], index: 2, kind: input, shape index: {}]   ;;  %s333_s3 = inlined_call_operand.vmem [shape: f32[2,1,1,56], index: 3, kind: output, shape index: {}]  }
   0x1 LB: > { %s255_s13 = sadd.s32 4294967295, %s281_s12   ;;  %p259_p0 = scmp.ge.s32.totalorder %s281_s12, 1  ;;  %s281_s12 = sphi %s303_s12, %s13_s12  }
   0x2   : > { %p137_p1 = scmp.lt.s32.totalorder %s281_s12, 3 }
   0x4   : > { %p138_p2 = pnand %p259_p0, %p137_p1 }
   0x5   : > { %p159_p3 = scmp.lt.s32.totalorder (!%p138_p2), %s255_s13, 1  ;;  %v262_v0 = vld [vmem:[%s331_s1] ss:$0 sm:$0xff] (!%p138_p2)  ;;  %vm193_vm0 = vcmask (!%p138_p2), 452608   ;;  %vm206_vm1 = vcmask (!%p138_p2), 450560  }
   0x6   : > { %141 = sbr.rel (%p138_p2) target bundleno = 43 (0x2b), region = 32  ;;  %v263_v1 = vld [vmem:[%s332_s2] ss:$0 sm:$0xff] (!%p138_p2) }
   0xd   : > { %s335_s13 = smov (!%p159_p3, %s255_s13), 1 }
   0xe   : > { %s266_s14 = sshll.u32 %s335_s13, 4  ;;  %s166_s24 = scalar_lea.vmem %s333_s3, %s335_s13 }
   0xf   : > { %s163_s19 = scalar_lea.vmem %s330_s0, %s266_s14 }
  0x10   : > { %v169_v2 = vld [vmem:[%s163_s19] sm:$0x7]  ;;  %v170_v3 = vld [vmem:[%s163_s19 + $0x4] sm:$0x7]  ;;  %v171_v4 = vld [vmem:[%s163_s19 + $0x8] sm:$0x7] }
  0x11   : > { %v178_v5 = vmul.f32 %v262_v0, %v169_v2  ;;  %v179_v6 = vmul.f32 %v262_v0, %v170_v3  ;;  %v180_v7 = vmul.f32 %v262_v0, %v171_v4 }
  0x13   : > { %v187_v8 = vadd.f32 %v263_v1, %v178_v5  ;;  %v188_v9 = vadd.f32 %v263_v1, %v179_v6  ;;  %v189_v10 = vadd.f32 %v263_v1, %v180_v7 }
  0x15   : > { %v190_v11 = vmax.f32 %v187_v8, 0.0  ;;  %v191_v12 = vmax.f32 %v188_v9, 0.0  ;;  %v192_v13 = vmax.f32 %v189_v10, 0.0 }
  0x17   : > { %v194_v14 = vsel %vm193_vm0, %v190_v11, 0.0  ;;  %v195_v15 = vsel %vm193_vm0, %v191_v12, 0.0  ;;  %v197_v16 = vsel %vm193_vm0, %v192_v13, 0.0 }
  0x18   : > { %v196_v17 = vadd.f32 %v195_v15, %v194_v14 }
  0x1a   : > { %v198_v18 = vadd.f32 %v197_v16, %v196_v17 }
  0x1c   : > { %v199_v19 = vrot.slane %v198_v18, 4 }
  0x1e   : > { %v200_v20 = vadd.f32 %v199_v19, %v198_v18 }
  0x20   : > { %v201_v21 = vrot.slane %v200_v20, 2 }
  0x22   : > { %v202_v22 = vadd.f32 %v201_v21, %v200_v20 }
  0x24   : > { %v203_v23 = vrot.slane %v202_v22, 1 }
  0x26   : > { %v204_v24 = vadd.f32 %v203_v23, %v202_v22 }
  0x28   : > { %v205_v25 = vmul.f32 0.11111111, %v204_v24 }
  0x2a   : > { %207 = vst.msk [vmem:[%s166_s24] sm:$0x1] %vm206_vm1, %v205_v25 }
  0x2b PF: > { %s13_s12 = sadd.s32 1, %s281_s12  }
  0x2c   : > { %p10_p4 = scmp.ge.s32.totalorder %s13_s12, 4  }
  0x2e   :  { %12 = sbr.rel (!%p10_p4) target bundleno = 1 (0x1), region = 62 }

// kernel: densenet_forward.19
= control target key start
LH: loop header
LB: loop body
LE: loop exit
PB: predicated region body
PF: predicated region fallthrough
CT: control target
= control target key end

     0   :  { %v146_v0 = vmov 0.0   ;;  %vm147_vm0 = vmmov 0   ;;  %vm54_vm1 = vcmask 1043456   ;;  %vm50_vm2 = vcmask 457728   ;;  %s189_s1 = inlined_call_operand.vmem [shape: bf16[56,128], index: 1, kind: input, shape index: {}]   ;;  %s190_s0 = inlined_call_operand.vmem [shape: bf16[8,56], index: 0, kind: input, shape index: {}]   ;;  %s191_s2 = inlined_call_operand.vmem [shape: f32[1,128], index: 2, kind: input, shape index: {}]   ;;  %s192_s3 = inlined_call_operand.vmem [shape: f32[8,128], index: 3, kind: output, shape index: {}]  }
   0x1   :  { %128 = vmatprep.subr.bf16.mxu0 %v146_v0  ;;  %v142_v1 = vld [vmem:[%s189_s1] sm:$0xff]   ;;  %136 = vmatprep.mubr.msk.bf16.mxu0 %vm147_vm0, %v146_v0  ;;  %v143_v2 = vld [vmem:[%s189_s1 + $0x8] sm:$0xff]   ;;  %v144_v3 = vld [vmem:[%s189_s1 + $0x10] sm:$0xff]  }
   0x2   :  { %129 = vmatpush3.bf16.msra.mxu0 %v142_v1  ;;  %v145_v4 = vld [vmem:[%s189_s1 + $0x18] ss:$0 sps:$4 sm:$0xff]   ;;  %v20_v6 = vld [vmem:[%s190_s0] sm:$0xf] }
   0x3   :  { %130 = vmatprep.subr.bf16.mxu0 %v146_v0  ;;  %v56_v5 = vsel %vm54_vm1, %v145_v4, 0  ;;  %v122_v7 = vld [vmem:[%s191_s2] ss:$0 sm:$0xff] }
   0x6   :  { %131 = vmatpush3.bf16.msra.mxu0 %v143_v2 }
   0x7   :  { %132 = vmatprep.subr.bf16.mxu0 %v146_v0 }
   0xa   :  { %133 = vmatpush3.bf16.msra.mxu0 %v144_v3 }
   0xb   :  { %134 = vmatprep.subr.bf16.mxu0 %v146_v0 }
   0xe   :  { %135 = vmatpush3.bf16.msra.mxu0 %v56_v5 }
  0x11   :  { %137 = vmatmul.mubr.msk.bf16.vlgmr.msra.gmra.mrb[0].mxu0 %vm50_vm2, %v20_v6 }
  0xe4   :  { %v92_v8 = vpop.f32.mrb[0].mxu0 }
  0xe5   :  { %v111_v9 = vadd.f32 %v122_v7, %v92_v8  ;;  %v138_v10 = vpop.f32.mrb[1].mxu0 }
  0xe6   :  { %v95_v11 = vpop.f32.mrb[2].mxu0 }
  0xe7   :  { %112 = vst [vmem:[%s192_s3] sm:$0xff] %v111_v9  ;;  %v139_v12 = vpop.f32.mrb[3].mxu0 }

</bundles_post_ra>
